<compile_context>
chip_gen: v7x
topology: tpu7x:2x2x1
jax: 0.10.0
libtpu: 0.0.40
codegen_flags: <defaults>
</compile_context>

<pallas_src>
import math
from functools import partial

import jax
import jax.numpy as jnp
from jax.experimental import pallas as pl
from jax.experimental.pallas import tpu as pltpu

MAGIC = math.sqrt(2.0) / 2.0   # torch.sqrt(torch.tensor(2)) / 2

# Padded layer widths (multiples of 128 lanes).
D1, D2, D3 = 640, 512, 256     # 520 -> 640, 500 -> 512, 200 -> 256
CRIT_PAD = 128                 # critic output 1 -> 128


def _leaky(x, slope):
    return jnp.where(x >= 0, x, slope * x)


def _round_up(n, m):
    return ((n + m - 1) // m) * m


def _pad_dim(n):
    return _round_up(n, 128)


# ----------------------------------------------------------------------------
# Kernel
# ----------------------------------------------------------------------------
def acnetwork_kernel(x_ref, w_in_ref, w1_ref, w2_ref, wslab_ref, b_ref, out_ref,
                     *, w_offs, b_offs, act_pad):
    """One (TILE_B, *) batch tile of the ACNetwork forward pass.

    w_offs / b_offs map segment name -> (column offset, width) into the
    consolidated (256, W) weight slab / (1, B) bias slab.  All offsets and
    widths are static multiples of 128, so every slice is lane-aligned.
    """

    def bias(name):
        off, width = b_offs[name]
        return b_ref[:, off:off + width]          # (1, width) f32

    def slab_w(name):
        off, width = w_offs[name]
        return wslab_ref[:, off:off + width]      # (256, width) bf16

    def dense(h, w, name, slope=None):
        # bf16 x bf16 -> f32 on the MXU; bias add / LeakyReLU stay in f32.
        y = jnp.dot(h.astype(jnp.bfloat16), w,
                    preferred_element_type=jnp.float32) + bias(name)
        if slope is not None:
            y = _leaky(y, slope)
        return y

    x = x_ref[...]  # f32, (TILE_B, indim)

    # network1: Linear(indim,520) LReLU(0.1) Linear(520,500) LReLU(0.1) Linear(500,200)
    h = dense(x, w_in_ref[...], "n1_0", 0.1)
    h = dense(h, w1_ref[...], "n1_1", 0.1)
    x_ = dense(h, w2_ref[...], "n1_2")

    # network2 (sqrt(2)/2 pre-folded into weight+bias) with scaled residual:
    #   x2 = MAGIC*leaky(W x_ + b, .01) + MAGIC*x_ == leaky(MAGIC*W x_ + MAGIC*b, .01) + MAGIC*x_
    x2 = dense(x_, slab_w("n2"), "n2", 0.01) + MAGIC * x_

    # Merged actor[0] | critic[0] head: one MXU pass over x2 feeds 512 cols.
    y0 = dense(x2, slab_w("head0"), "head0")
    a = _leaky(y0[:, :D3], 0.3)      # actor half, LeakyReLU(0.3)
    c = _leaky(y0[:, D3:], 0.5)      # critic half, LeakyReLU(0.5)

    # Remaining actor / critic chains are independent -> interleave them so
    # MXU push/drain of one overlaps the other.
    a = dense(a, slab_w("a1"), "a1", 0.3)
    c = dense(c, slab_w("c1"), "c1", 0.6)
    a = dense(a, slab_w("a2"), "a2", 0.5)
    c = dense(c, slab_w("c2"), "c2")          # critic head (value in col 0)
    a = dense(a, slab_w("a3"), "a3")          # actor head

    # Single lane-dense combined output: actor | critic.
    out_ref[:, :act_pad] = a
    out_ref[:, act_pad:] = c


# ----------------------------------------------------------------------------
# Parameters
# ----------------------------------------------------------------------------
def init_linear(key, fan_in, fan_out):
    """PyTorch nn.Linear default init: U(-1/sqrt(fan_in), 1/sqrt(fan_in)).
    Weight stored pre-transposed as [in, out]; bias as [out]."""
    kw, kb = jax.random.split(key)
    bound = 1.0 / math.sqrt(fan_in)
    w = jax.random.uniform(kw, (fan_in, fan_out), jnp.float32, -bound, bound)
    b = jax.random.uniform(kb, (fan_out,), jnp.float32, -bound, bound)
    return w, b


def make_params(key, indim, action_space, add_one=False):
    last_dim = action_space + (1 if add_one else 0)
    dims = [
        (indim, 520), (520, 500), (500, 200),                  # network1
        (200, 200),                                            # network2
        (200, 200), (200, 200), (200, 200), (200, last_dim),   # actor
        (200, 200), (200, 200), (200, 1),                      # critic
    ]
    keys = jax.random.split(key, len(dims))
    params = []
    for k, (fi, fo) in zip(keys, dims):
        w, b = init_linear(k, fi, fo)
        params.extend([w, b])
    return params, last_dim


def build_kernel_params(params, indim, last_dim):
    """Pad to 128-lane widths, fold MAGIC into network2, merge actor[0]|critic[0],
    and consolidate into 5 tensors: w_in, w1, w2 (bf16), one (256, W) bf16
    weight slab for every fan-in-256 layer, and one (1, B) f32 bias slab."""
    act_pad = _pad_dim(last_dim)

    def w_of(i): return params[2 * i]
    def b_of(i): return params[2 * i + 1]

    def padw(w, fi_p, fo_p):
        fi, fo = w.shape
        return jnp.zeros((fi_p, fo_p), jnp.float32).at[:fi, :fo].set(w)

    def padb(b, fo_p):
        return jnp.zeros((fo_p,), jnp.float32).at[:b.shape[0]].set(b)

    # Large early layers stay separate inputs (distinct fan-ins).
    w_in = padw(w_of(0), indim, D1).astype(jnp.bfloat16)
    w1 = padw(w_of(1), D1, D2).astype(jnp.bfloat16)
    w2 = padw(w_of(2), D2, D3).astype(jnp.bfloat16)

    # sqrt(2)/2 folded into network2 (LeakyReLU is positively homogeneous).
    w_n2 = MAGIC * w_of(3)
    b_n2 = MAGIC * b_of(3)

    # Fan-in-256 weight slab segments, in kernel-use order.
    segs = [
        ("n2",    padw(w_n2, D3, D3),                          padb(b_n2, D3)),
        ("head0",
         jnp.concatenate([padw(w_of(4), D3, D3), padw(w_of(8), D3, D3)], axis=1),
         jnp.concatenate([padb(b_of(4), D3), padb(b_of(8), D3)])),
        ("a1",    padw(w_of(5), D3, D3),                       padb(b_of(5), D3)),
        ("a2",    padw(w_of(6), D3, D3),                       padb(b_of(6), D3)),
        ("a3",    padw(w_of(7), D3, act_pad),                  padb(b_of(7), act_pad)),
        ("c1",    padw(w_of(9), D3, D3),                       padb(b_of(9), D3)),
        ("c2",    padw(w_of(10), D3, CRIT_PAD),                padb(b_of(10), CRIT_PAD)),
    ]

    w_offs, slab_cols, off = {}, [], 0
    for name, wseg, _ in segs:
        w_offs[name] = (off, wseg.shape[1])
        slab_cols.append(wseg)
        off += wseg.shape[1]
    w_slab = jnp.concatenate(slab_cols, axis=1).astype(jnp.bfloat16)

    # Bias slab: early-layer biases first, then the slab segment biases.
    b_list = [("n1_0", padb(b_of(0), D1)),
              ("n1_1", padb(b_of(1), D2)),
              ("n1_2", padb(b_of(2), D3))] + [(n, b) for n, _, b in segs]
    b_offs, b_cols, off = {}, [], 0
    for name, bseg in b_list:
        b_offs[name] = (off, bseg.shape[0])
        b_cols.append(bseg)
        off += bseg.shape[0]
    b_all = jnp.concatenate(b_cols).reshape(1, -1)

    kparams = (w_in, w1, w2, w_slab, b_all)
    meta = dict(w_offs=w_offs, b_offs=b_offs, act_pad=act_pad, last_dim=last_dim)
    return kparams, meta


# ----------------------------------------------------------------------------
# Wrapper
# ----------------------------------------------------------------------------
def _pick_tile_b(b_pad):
    # 256-row tiles fill the 256-row MXUs of v6e/v7x and halve per-grid-step
    # overhead, but only adopt them when >= 2 tiles remain so the "parallel"
    # batch axis can still span both v7x TensorCores.  Otherwise 128 (which
    # already fills v5e's 128-row MXU).
    if b_pad % 256 == 0 and b_pad // 256 >= 2:
        return 256
    return 128


def acnetwork_forward(x, kparams, meta):
    w_in, w1, w2, w_slab, b_all = kparams
    act_pad = meta["act_pad"]
    last_dim = meta["last_dim"]
    out_cols = act_pad + CRIT_PAD

    B, indim = x.shape
    B_pad = _round_up(B, 128)
    tile_b = _pick_tile_b(B_pad)
    x_p = jnp.pad(x, ((0, B_pad - B), (0, 0))) if B_pad != B else x
    grid = (B_pad // tile_b,)

    x_spec = pl.BlockSpec((tile_b, indim), lambda i: (i, 0))
    # Full-array blocks with constant index_maps: each weight/bias tensor is
    # DMA'd once and stays VMEM-resident across all batch tiles.  Resident
    # footprint today is ~4.5 MiB double-buffered (fits every chip's scoped
    # default); if the real byol_encoder makes indim large, single-buffer the
    # constant specs (pl.Buffered(1)) / re-tile the first layer.
    param_specs = [pl.BlockSpec(p.shape, lambda i: (0, 0))
                   for p in (w_in, w1, w2, w_slab, b_all)]
    out_spec = pl.BlockSpec((tile_b, out_cols), lambda i: (i, 0))

    # Advisory cost estimate so XLA can overlap the weight fetch with
    # neighbouring ops (this kernel is DMA/dispatch dominated at small B).
    flops = 2 * B_pad * (indim * D1 + D1 * D2 + D2 * D3 + D3 * w_slab.shape[1])
    bytes_accessed = (x_p.size * 4
                      + sum(int(p.size) * p.dtype.itemsize
                            for p in (w_in, w1, w2, w_slab, b_all))
                      + B_pad * out_cols * 4)

    kernel = partial(acnetwork_kernel, w_offs=meta["w_offs"],
                     b_offs=meta["b_offs"], act_pad=act_pad)

    out = pl.pallas_call(
        kernel,
        out_shape=jax.ShapeDtypeStruct((B_pad, out_cols), jnp.float32),
        grid_spec=pltpu.PrefetchScalarGridSpec(
            num_scalar_prefetch=0,
            grid=grid,
            in_specs=[x_spec] + param_specs,
            out_specs=out_spec,
        ),
        compiler_params=pltpu.CompilerParams(
            dimension_semantics=("parallel",),
            vmem_limit_bytes=32 * 1024 * 1024,
        ),
        cost_estimate=pl.CostEstimate(flops=flops, transcendentals=0,
                                      bytes_accessed=bytes_accessed),
    )(x_p, w_in, w1, w2, w_slab, b_all)

    actor = out[:B, :last_dim]
    critic = out[:B, act_pad:act_pad + 1]
    return actor, critic


# ----------------------------------------------------------------------------
# Pure-JAX reference (module semantics with the kernel's bf16 rounding)
# ----------------------------------------------------------------------------
def acnetwork_reference(x, params):
    def lin(h, i, scale=1.0):
        w = (scale * params[2 * i]).astype(jnp.bfloat16).astype(jnp.float32)
        b = scale * params[2 * i + 1]
        hq = h.astype(jnp.bfloat16).astype(jnp.float32)
        return jnp.dot(hq, w, precision=jax.lax.Precision.HIGHEST) + b

    x = x.astype(jnp.float32)
    h = _leaky(lin(x, 0), 0.1)
    h = _leaky(lin(h, 1), 0.1)
    x_ = lin(h, 2)
    x2 = _leaky(lin(x_, 3, scale=MAGIC), 0.01) + MAGIC * x_
    a = _leaky(lin(x2, 4), 0.3)
    a = _leaky(lin(a, 5), 0.3)
    a = _leaky(lin(a, 6), 0.5)
    a = lin(a, 7)
    c = _leaky(lin(x2, 8), 0.5)
    c = _leaky(lin(c, 9), 0.6)
    c = lin(c, 10)
    return a, c


if __name__ == "__main__":
    key = jax.random.PRNGKey(0)
    k_x, k_p = jax.random.split(key)

    # 2 batch tiles of 128 rows: exercises the batch grid + resident weights
    # while staying a small problem (256 x 32 f32 input).
    B, indim, action_space = 256, 32, 6
    x = jax.random.normal(k_x, (B, indim), jnp.float32)

    params, last_dim = make_params(k_p, indim, action_space, add_one=False)
    kparams, meta = build_kernel_params(params, indim, last_dim)

    fwd = jax.jit(partial(acnetwork_forward, meta=meta))
    actor_out, critic_out = fwd(x, kparams)
    jax.block_until_ready((actor_out, critic_out))

    a_ref, c_ref = acnetwork_reference(x, params)
    assert actor_out.shape == (B, last_dim) and critic_out.shape == (B, 1)
    assert jnp.allclose(actor_out, a_ref, atol=2e-3, rtol=2e-3), \
        float(jnp.max(jnp.abs(actor_out - a_ref)))
    assert jnp.allclose(critic_out, c_ref, atol=2e-3, rtol=2e-3), \
        float(jnp.max(jnp.abs(critic_out - c_ref)))

    print("KERNEL_OK")
</pallas_src>

<mosaic_0001>
module attributes {stable_mosaic.version = 11 : i64} {
  func.func @acnetwork_kernel(%arg0: i32, %arg1: memref<128x32xf32, #tpu.memory_space<vmem>>, %arg2: memref<32x640xbf16, #tpu.memory_space<vmem>>, %arg3: memref<640x512xbf16, #tpu.memory_space<vmem>>, %arg4: memref<512x256xbf16, #tpu.memory_space<vmem>>, %arg5: memref<256x1792xbf16, #tpu.memory_space<vmem>>, %arg6: memref<1x3200xf32, #tpu.memory_space<vmem>>, %arg7: memref<128x256xf32, #tpu.memory_space<vmem>>) attributes {dimension_semantics = [#tpu.dimension_semantics<parallel>], iteration_bounds = array<i64: 2>, scalar_prefetch = 0 : i64, scratch_operands = 0 : i64, tpu.core_type = #tpu.core_type<tc>, window_params = [{transform_indices = @transform_0, window_bounds = array<i64: 128, 32>}, {pipeline_mode = #tpu.pipeline_mode<synchronous>, transform_indices = @transform_1, window_bounds = array<i64: 32, 640>}, {pipeline_mode = #tpu.pipeline_mode<synchronous>, transform_indices = @transform_2, window_bounds = array<i64: 640, 512>}, {pipeline_mode = #tpu.pipeline_mode<synchronous>, transform_indices = @transform_3, window_bounds = array<i64: 512, 256>}, {pipeline_mode = #tpu.pipeline_mode<synchronous>, transform_indices = @transform_4, window_bounds = array<i64: 256, 1792>}, {pipeline_mode = #tpu.pipeline_mode<synchronous>, transform_indices = @transform_5, window_bounds = array<i64: 1, 3200>}, {transform_indices = @transform_6, window_bounds = array<i64: 128, 256>}]} {
    %c0 = arith.constant 0 : index
    %c0_0 = arith.constant 0 : index
    %0 = vector.load %arg1[%c0, %c0_0] : memref<128x32xf32, #tpu.memory_space<vmem>>, vector<128x32xf32>
    %c0_1 = arith.constant 0 : index
    %c0_2 = arith.constant 0 : index
    %1 = vector.load %arg2[%c0_1, %c0_2] : memref<32x640xbf16, #tpu.memory_space<vmem>>, vector<32x640xbf16>
    %2 = arith.truncf %0 : vector<128x32xf32> to vector<128x32xbf16>
    %cst = arith.constant dense<0.000000e+00> : vector<128x640xf32>
    %3 = tpu.matmul %2, %1, %cst {dimension_numbers = #tpu.dot_dimension_numbers<[1], [0], [0], [1], [0, 0, 1, 1], [], []>} : vector<128x32xbf16>, vector<32x640xbf16>, vector<128x640xf32> -> vector<128x640xf32>
    %c0_3 = arith.constant 0 : index
    %c0_4 = arith.constant 0 : index
    %4 = vector.load %arg6[%c0_3, %c0_4] : memref<1x3200xf32, #tpu.memory_space<vmem>>, vector<1x640xf32>
    %5 = vector.broadcast %4 : vector<1x640xf32> to vector<128x640xf32>
    %6 = arith.addf %3, %5 : vector<128x640xf32>
    %cst_5 = arith.constant 0.000000e+00 : f32
    %7 = vector.broadcast %cst_5 : f32 to vector<128x640xf32>
    %8 = arith.cmpf oge, %6, %7 : vector<128x640xf32>
    %cst_6 = arith.constant 1.000000e-01 : f32
    %9 = vector.broadcast %cst_6 : f32 to vector<128x640xf32>
    %10 = arith.mulf %9, %6 : vector<128x640xf32>
    %11 = arith.select %8, %6, %10 : vector<128x640xi1>, vector<128x640xf32>
    %c0_7 = arith.constant 0 : index
    %c0_8 = arith.constant 0 : index
    %12 = vector.load %arg3[%c0_7, %c0_8] : memref<640x512xbf16, #tpu.memory_space<vmem>>, vector<640x512xbf16>
    %13 = arith.truncf %11 : vector<128x640xf32> to vector<128x640xbf16>
    %cst_9 = arith.constant dense<0.000000e+00> : vector<128x512xf32>
    %14 = tpu.matmul %13, %12, %cst_9 {dimension_numbers = #tpu.dot_dimension_numbers<[1], [0], [0], [1], [0, 0, 1, 1], [], []>} : vector<128x640xbf16>, vector<640x512xbf16>, vector<128x512xf32> -> vector<128x512xf32>
    %c0_10 = arith.constant 0 : index
    %c640 = arith.constant 640 : index
    %15 = vector.load %arg6[%c0_10, %c640] : memref<1x3200xf32, #tpu.memory_space<vmem>>, vector<1x512xf32>
    %16 = vector.broadcast %15 : vector<1x512xf32> to vector<128x512xf32>
    %17 = arith.addf %14, %16 : vector<128x512xf32>
    %cst_11 = arith.constant 0.000000e+00 : f32
    %18 = vector.broadcast %cst_11 : f32 to vector<128x512xf32>
    %19 = arith.cmpf oge, %17, %18 : vector<128x512xf32>
    %cst_12 = arith.constant 1.000000e-01 : f32
    %20 = vector.broadcast %cst_12 : f32 to vector<128x512xf32>
    %21 = arith.mulf %20, %17 : vector<128x512xf32>
    %22 = arith.select %19, %17, %21 : vector<128x512xi1>, vector<128x512xf32>
    %c0_13 = arith.constant 0 : index
    %c0_14 = arith.constant 0 : index
    %23 = vector.load %arg4[%c0_13, %c0_14] : memref<512x256xbf16, #tpu.memory_space<vmem>>, vector<512x256xbf16>
    %24 = arith.truncf %22 : vector<128x512xf32> to vector<128x512xbf16>
    %cst_15 = arith.constant dense<0.000000e+00> : vector<128x256xf32>
    %25 = tpu.matmul %24, %23, %cst_15 {dimension_numbers = #tpu.dot_dimension_numbers<[1], [0], [0], [1], [0, 0, 1, 1], [], []>} : vector<128x512xbf16>, vector<512x256xbf16>, vector<128x256xf32> -> vector<128x256xf32>
    %c0_16 = arith.constant 0 : index
    %c1152 = arith.constant 1152 : index
    %26 = vector.load %arg6[%c0_16, %c1152] : memref<1x3200xf32, #tpu.memory_space<vmem>>, vector<1x256xf32>
    %27 = vector.broadcast %26 : vector<1x256xf32> to vector<128x256xf32>
    %28 = arith.addf %25, %27 : vector<128x256xf32>
    %c0_17 = arith.constant 0 : index
    %c0_18 = arith.constant 0 : index
    %29 = vector.load %arg5[%c0_17, %c0_18] : memref<256x1792xbf16, #tpu.memory_space<vmem>>, vector<256x256xbf16>
    %30 = arith.truncf %28 : vector<128x256xf32> to vector<128x256xbf16>
    %cst_19 = arith.constant dense<0.000000e+00> : vector<128x256xf32>
    %31 = tpu.matmul %30, %29, %cst_19 {dimension_numbers = #tpu.dot_dimension_numbers<[1], [0], [0], [1], [0, 0, 1, 1], [], []>} : vector<128x256xbf16>, vector<256x256xbf16>, vector<128x256xf32> -> vector<128x256xf32>
    %c0_20 = arith.constant 0 : index
    %c1408 = arith.constant 1408 : index
    %32 = vector.load %arg6[%c0_20, %c1408] : memref<1x3200xf32, #tpu.memory_space<vmem>>, vector<1x256xf32>
    %33 = vector.broadcast %32 : vector<1x256xf32> to vector<128x256xf32>
    %34 = arith.addf %31, %33 : vector<128x256xf32>
    %cst_21 = arith.constant 0.000000e+00 : f32
    %35 = vector.broadcast %cst_21 : f32 to vector<128x256xf32>
    %36 = arith.cmpf oge, %34, %35 : vector<128x256xf32>
    %cst_22 = arith.constant 0.00999999977 : f32
    %37 = vector.broadcast %cst_22 : f32 to vector<128x256xf32>
    %38 = arith.mulf %37, %34 : vector<128x256xf32>
    %39 = arith.select %36, %34, %38 : vector<128x256xi1>, vector<128x256xf32>
    %cst_23 = arith.constant 0.707106769 : f32
    %40 = vector.broadcast %cst_23 : f32 to vector<128x256xf32>
    %41 = arith.mulf %40, %28 : vector<128x256xf32>
    %42 = arith.addf %39, %41 : vector<128x256xf32>
    %c0_24 = arith.constant 0 : index
    %c256 = arith.constant 256 : index
    %43 = vector.load %arg5[%c0_24, %c256] : memref<256x1792xbf16, #tpu.memory_space<vmem>>, vector<256x512xbf16>
    %44 = arith.truncf %42 : vector<128x256xf32> to vector<128x256xbf16>
    %cst_25 = arith.constant dense<0.000000e+00> : vector<128x512xf32>
    %45 = tpu.matmul %44, %43, %cst_25 {dimension_numbers = #tpu.dot_dimension_numbers<[1], [0], [0], [1], [0, 0, 1, 1], [], []>} : vector<128x256xbf16>, vector<256x512xbf16>, vector<128x512xf32> -> vector<128x512xf32>
    %c0_26 = arith.constant 0 : index
    %c1664 = arith.constant 1664 : index
    %46 = vector.load %arg6[%c0_26, %c1664] : memref<1x3200xf32, #tpu.memory_space<vmem>>, vector<1x512xf32>
    %47 = vector.broadcast %46 : vector<1x512xf32> to vector<128x512xf32>
    %48 = arith.addf %45, %47 : vector<128x512xf32>
    %49 = vector.extract_strided_slice %48 {offsets = [0, 0], sizes = [128, 256], strides = [1, 1]} : vector<128x512xf32> to vector<128x256xf32>
    %cst_27 = arith.constant 0.000000e+00 : f32
    %50 = vector.broadcast %cst_27 : f32 to vector<128x256xf32>
    %51 = arith.cmpf oge, %49, %50 : vector<128x256xf32>
    %cst_28 = arith.constant 3.000000e-01 : f32
    %52 = vector.broadcast %cst_28 : f32 to vector<128x256xf32>
    %53 = arith.mulf %52, %49 : vector<128x256xf32>
    %54 = arith.select %51, %49, %53 : vector<128x256xi1>, vector<128x256xf32>
    %55 = vector.extract_strided_slice %48 {offsets = [0, 256], sizes = [128, 256], strides = [1, 1]} : vector<128x512xf32> to vector<128x256xf32>
    %cst_29 = arith.constant 0.000000e+00 : f32
    %56 = vector.broadcast %cst_29 : f32 to vector<128x256xf32>
    %57 = arith.cmpf oge, %55, %56 : vector<128x256xf32>
    %cst_30 = arith.constant 5.000000e-01 : f32
    %58 = vector.broadcast %cst_30 : f32 to vector<128x256xf32>
    %59 = arith.mulf %58, %55 : vector<128x256xf32>
    %60 = arith.select %57, %55, %59 : vector<128x256xi1>, vector<128x256xf32>
    %c0_31 = arith.constant 0 : index
    %c768 = arith.constant 768 : index
    %61 = vector.load %arg5[%c0_31, %c768] : memref<256x1792xbf16, #tpu.memory_space<vmem>>, vector<256x256xbf16>
    %62 = arith.truncf %54 : vector<128x256xf32> to vector<128x256xbf16>
    %cst_32 = arith.constant dense<0.000000e+00> : vector<128x256xf32>
    %63 = tpu.matmul %62, %61, %cst_32 {dimension_numbers = #tpu.dot_dimension_numbers<[1], [0], [0], [1], [0, 0, 1, 1], [], []>} : vector<128x256xbf16>, vector<256x256xbf16>, vector<128x256xf32> -> vector<128x256xf32>
    %c0_33 = arith.constant 0 : index
    %c2176 = arith.constant 2176 : index
    %64 = vector.load %arg6[%c0_33, %c2176] : memref<1x3200xf32, #tpu.memory_space<vmem>>, vector<1x256xf32>
    %65 = vector.broadcast %64 : vector<1x256xf32> to vector<128x256xf32>
    %66 = arith.addf %63, %65 : vector<128x256xf32>
    %cst_34 = arith.constant 0.000000e+00 : f32
    %67 = vector.broadcast %cst_34 : f32 to vector<128x256xf32>
    %68 = arith.cmpf oge, %66, %67 : vector<128x256xf32>
    %cst_35 = arith.constant 3.000000e-01 : f32
    %69 = vector.broadcast %cst_35 : f32 to vector<128x256xf32>
    %70 = arith.mulf %69, %66 : vector<128x256xf32>
    %71 = arith.select %68, %66, %70 : vector<128x256xi1>, vector<128x256xf32>
    %c0_36 = arith.constant 0 : index
    %c1408_37 = arith.constant 1408 : index
    %72 = vector.load %arg5[%c0_36, %c1408_37] : memref<256x1792xbf16, #tpu.memory_space<vmem>>, vector<256x256xbf16>
    %73 = arith.truncf %60 : vector<128x256xf32> to vector<128x256xbf16>
    %cst_38 = arith.constant dense<0.000000e+00> : vector<128x256xf32>
    %74 = tpu.matmul %73, %72, %cst_38 {dimension_numbers = #tpu.dot_dimension_numbers<[1], [0], [0], [1], [0, 0, 1, 1], [], []>} : vector<128x256xbf16>, vector<256x256xbf16>, vector<128x256xf32> -> vector<128x256xf32>
    %c0_39 = arith.constant 0 : index
    %c2816 = arith.constant 2816 : index
    %75 = vector.load %arg6[%c0_39, %c2816] : memref<1x3200xf32, #tpu.memory_space<vmem>>, vector<1x256xf32>
    %76 = vector.broadcast %75 : vector<1x256xf32> to vector<128x256xf32>
    %77 = arith.addf %74, %76 : vector<128x256xf32>
    %cst_40 = arith.constant 0.000000e+00 : f32
    %78 = vector.broadcast %cst_40 : f32 to vector<128x256xf32>
    %79 = arith.cmpf oge, %77, %78 : vector<128x256xf32>
    %cst_41 = arith.constant 6.000000e-01 : f32
    %80 = vector.broadcast %cst_41 : f32 to vector<128x256xf32>
    %81 = arith.mulf %80, %77 : vector<128x256xf32>
    %82 = arith.select %79, %77, %81 : vector<128x256xi1>, vector<128x256xf32>
    %c0_42 = arith.constant 0 : index
    %c1024 = arith.constant 1024 : index
    %83 = vector.load %arg5[%c0_42, %c1024] : memref<256x1792xbf16, #tpu.memory_space<vmem>>, vector<256x256xbf16>
    %84 = arith.truncf %71 : vector<128x256xf32> to vector<128x256xbf16>
    %cst_43 = arith.constant dense<0.000000e+00> : vector<128x256xf32>
    %85 = tpu.matmul %84, %83, %cst_43 {dimension_numbers = #tpu.dot_dimension_numbers<[1], [0], [0], [1], [0, 0, 1, 1], [], []>} : vector<128x256xbf16>, vector<256x256xbf16>, vector<128x256xf32> -> vector<128x256xf32>
    %c0_44 = arith.constant 0 : index
    %c2432 = arith.constant 2432 : index
    %86 = vector.load %arg6[%c0_44, %c2432] : memref<1x3200xf32, #tpu.memory_space<vmem>>, vector<1x256xf32>
    %87 = vector.broadcast %86 : vector<1x256xf32> to vector<128x256xf32>
    %88 = arith.addf %85, %87 : vector<128x256xf32>
    %cst_45 = arith.constant 0.000000e+00 : f32
    %89 = vector.broadcast %cst_45 : f32 to vector<128x256xf32>
    %90 = arith.cmpf oge, %88, %89 : vector<128x256xf32>
    %cst_46 = arith.constant 5.000000e-01 : f32
    %91 = vector.broadcast %cst_46 : f32 to vector<128x256xf32>
    %92 = arith.mulf %91, %88 : vector<128x256xf32>
    %93 = arith.select %90, %88, %92 : vector<128x256xi1>, vector<128x256xf32>
    %c0_47 = arith.constant 0 : index
    %c1664_48 = arith.constant 1664 : index
    %94 = vector.load %arg5[%c0_47, %c1664_48] : memref<256x1792xbf16, #tpu.memory_space<vmem>>, vector<256x128xbf16>
    %95 = arith.truncf %82 : vector<128x256xf32> to vector<128x256xbf16>
    %cst_49 = arith.constant dense<0.000000e+00> : vector<128x128xf32>
    %96 = tpu.matmul %95, %94, %cst_49 {dimension_numbers = #tpu.dot_dimension_numbers<[1], [0], [0], [1], [0, 0, 1, 1], [], []>} : vector<128x256xbf16>, vector<256x128xbf16>, vector<128x128xf32> -> vector<128x128xf32>
    %c0_50 = arith.constant 0 : index
    %c3072 = arith.constant 3072 : index
    %97 = vector.load %arg6[%c0_50, %c3072] : memref<1x3200xf32, #tpu.memory_space<vmem>>, vector<1x128xf32>
    %98 = vector.broadcast %97 : vector<1x128xf32> to vector<128x128xf32>
    %99 = arith.addf %96, %98 : vector<128x128xf32>
    %c0_51 = arith.constant 0 : index
    %c1280 = arith.constant 1280 : index
    %100 = vector.load %arg5[%c0_51, %c1280] : memref<256x1792xbf16, #tpu.memory_space<vmem>>, vector<256x128xbf16>
    %101 = arith.truncf %93 : vector<128x256xf32> to vector<128x256xbf16>
    %cst_52 = arith.constant dense<0.000000e+00> : vector<128x128xf32>
    %102 = tpu.matmul %101, %100, %cst_52 {dimension_numbers = #tpu.dot_dimension_numbers<[1], [0], [0], [1], [0, 0, 1, 1], [], []>} : vector<128x256xbf16>, vector<256x128xbf16>, vector<128x128xf32> -> vector<128x128xf32>
    %c0_53 = arith.constant 0 : index
    %c2688 = arith.constant 2688 : index
    %103 = vector.load %arg6[%c0_53, %c2688] : memref<1x3200xf32, #tpu.memory_space<vmem>>, vector<1x128xf32>
    %104 = vector.broadcast %103 : vector<1x128xf32> to vector<128x128xf32>
    %105 = arith.addf %102, %104 : vector<128x128xf32>
    %c0_54 = arith.constant 0 : index
    %c0_55 = arith.constant 0 : index
    %106 = vector.load %arg7[%c0_54, %c0_55] : memref<128x256xf32, #tpu.memory_space<vmem>>, vector<128x128xf32>
    tpu.vector_store %arg7[%c0_54, %c0_55], %105 {strides = array<i32>} : memref<128x256xf32, #tpu.memory_space<vmem>>, vector<128x128xf32>,
    %c0_56 = arith.constant 0 : index
    %c128 = arith.constant 128 : index
    %107 = vector.load %arg7[%c0_56, %c128] : memref<128x256xf32, #tpu.memory_space<vmem>>, vector<128x128xf32>
    tpu.vector_store %arg7[%c0_56, %c128], %99 {strides = array<i32>} : memref<128x256xf32, #tpu.memory_space<vmem>>, vector<128x128xf32>,
    return
  }
  func.func @transform_0(%arg0: i32) -> (i32, i32) {
    %c0_i32 = arith.constant 0 : i32
    %c0_i32_0 = arith.constant 0 : i32
    return %arg0, %c0_i32 : i32, i32
  }
  func.func @transform_1(%arg0: i32) -> (i32, i32) {
    %c0_i32 = arith.constant 0 : i32
    %c0_i32_0 = arith.constant 0 : i32
    %c0_i32_1 = arith.constant 0 : i32
    return %c0_i32, %c0_i32_0 : i32, i32
  }
  func.func @transform_2(%arg0: i32) -> (i32, i32) {
    %c0_i32 = arith.constant 0 : i32
    %c0_i32_0 = arith.constant 0 : i32
    %c0_i32_1 = arith.constant 0 : i32
    return %c0_i32, %c0_i32_0 : i32, i32
  }
  func.func @transform_3(%arg0: i32) -> (i32, i32) {
    %c0_i32 = arith.constant 0 : i32
    %c0_i32_0 = arith.constant 0 : i32
    %c0_i32_1 = arith.constant 0 : i32
    return %c0_i32, %c0_i32_0 : i32, i32
  }
  func.func @transform_4(%arg0: i32) -> (i32, i32) {
    %c0_i32 = arith.constant 0 : i32
    %c0_i32_0 = arith.constant 0 : i32
    %c0_i32_1 = arith.constant 0 : i32
    return %c0_i32, %c0_i32_0 : i32, i32
  }
  func.func @transform_5(%arg0: i32) -> (i32, i32) {
    %c0_i32 = arith.constant 0 : i32
    %c0_i32_0 = arith.constant 0 : i32
    %c0_i32_1 = arith.constant 0 : i32
    return %c0_i32, %c0_i32_0 : i32, i32
  }
  func.func @transform_6(%arg0: i32) -> (i32, i32) {
    %c0_i32 = arith.constant 0 : i32
    %c0_i32_0 = arith.constant 0 : i32
    return %arg0, %c0_i32 : i32, i32
  }
}

</mosaic_0001>

<bundles_post_ra>
// kernel: acnetwork_forward.1
= control target key start
LH: loop header
LB: loop body
LE: loop exit
PB: predicated region body
PF: predicated region fallthrough
CT: control target
= control target key end

     0   :  { %11 = vsyncpa [#allocation3], 0  ;;  %s10593_s0 = inlined_call_operand.vmem [shape: f32[256,32], index: 0, kind: input, shape index: {}]   ;;  %s10594_s1 = inlined_call_operand.vmem [shape: bf16[32,640], index: 1, kind: input, shape index: {}]   ;;  %s10595_s2 = inlined_call_operand.hbm [shape: bf16[640,512], index: 2, kind: input, shape index: {}]   ;;  %s10596_s3 = inlined_call_operand.hbm [shape: bf16[512,256], index: 3, kind: input, shape index: {}]   ;;  %s10597_s4 = inlined_call_operand.hbm [shape: bf16[256,1792], index: 4, kind: input, shape index: {}]   ;;  %s10598_s5 = inlined_call_operand.vmem [shape: f32[1,3200], index: 5, kind: input, shape index: {}]   ;;  %s10599_s6 = inlined_call_operand.vmem [shape: f32[256,256], index: 6, kind: output, shape index: {}]  }
   0x1   :  { %12 = vsyncpa [#allocation5], 0  ;;  %s8570_s21 = smov 0  }
   0x2 LB: > { %s8525_s22 = smov [#allocation4]   ;;  %s6788_s24 = sadd.s32 4294967295, %s8523_s21   ;;  %s8523_s21 = sphi %s8570_s21, %s18_s21  }
   0x3   : > { %s208_s23 = sshll.u32 %s8525_s22, 4  ;;  %p6790_p0 = scmp.ge.s32.totalorder %s8523_s21, 1  ;;  %s8584_s23 = int_to_ptr.vmem [resolvable:$true] %s208_s23 }
   0x4   : > { %p180_p1 = scmp.lt.s32.totalorder %s8523_s21, 3  ;;  %p8580_p2 = scmp.eq.s32.totalorder %s6788_s24, 0 }
   0x5   : > { %s8526_s27 = smov [#allocation2]   ;;  %s8527_s30 = smov [#allocation6]  }
   0x6   : > { %s10618_s25 = scalar_select %p8580_p2, 1, 0 }
   0x7   : > { %p8586_p3 = pnand %p6790_p0, %p180_p1  ;;  %s195_s28 = sshll.u32 %s8526_s27, 4  ;;  %s8592_s28 = int_to_ptr.vmem [resolvable:$true] %s195_s28 }
   0x8   : > { %s8600_s7 = sshll.u32 %s8527_s30, 4  ;;  %s8425_s10 = scalar_lea.hbm %s10596_s3, 8192  ;;  %s222_s7 = int_to_ptr.vmem [resolvable:$true] %s8600_s7 }
   0x9   : > { %s10619_s26 = scalar_select %p8586_p3, 1, 0 }
   0xa   : > { %p7721_p4 = pneg %p8586_p3  ;;  %p8426_p6 = scmp.ne.s32.totalorder %s10596_s3, %s8425_s10 }
   0xb   : > { %p8432_p10 = scmp.lt.u32.totalorder %s8425_s10, %s10596_s3 }
   0xc   : > { %p8596_p5 = pnand %p8580_p2, %p7721_p4 }
   0xe   : > { %p8610_p7 = pneg %p8596_p5 }
  0x10   : > { %p8428_p8 = pnand %p8610_p7, %p8426_p6 }
  0x12   : > { %p8429_p9 = pneg %p8428_p8 }
  0x14   : > { %p8434_p11 = pnand %p8432_p10, %p8429_p9 }
  0x16   : > { %8437 = shalt.err (!%p8434_p11)
}
  0x17   : > { %s8438_s16 = scalar_lea.vmem %s8584_s23, 8192  ;;  %p8446_p1 = scmp.lt.s32.totalorder %s8584_s23, %s8584_s23 }
  0x18   : > { %p8439_p12 = scmp.ne.s32.totalorder %s8584_s23, %s8438_s16  ;;  %p8447_p4 = scmp.lt.s32.totalorder %s8438_s16, %s8438_s16 }
  0x1a   : > { %p8441_p13 = pnand %p8439_p12, %p8610_p7  ;;  %p8448_p6 = por %p8447_p4, %p8446_p1 }
  0x1c   : > { %p8442_p0 = pneg %p8441_p13 }
  0x1e   : > { %p8449_p8 = pnand %p8448_p6, %p8442_p0 }
  0x20   : > { %8452 = shalt.err (!%p8449_p8)
}
  0x21   : > { %s8528_s17 = smov 128   ;;  %s8529_s18 = smov 8  }
  0x22   : > { %7727 = dma.hbm_to_vmem [thread:$0]  (!%p8596_p5), %s10596_s3, 8192, %s8584_s23, [#allocation5], %s8528_s17, %s8528_s17, %s8529_s18  }
  0x23   : > { %s8453_s30 = scalar_lea.hbm %s10595_s2, 20480 }
  0x24   : > { %p8454_p9 = scmp.ne.s32.totalorder %s10595_s2, %s8453_s30  ;;  %p8460_p12 = scmp.lt.u32.totalorder %s8453_s30, %s10595_s2 }
  0x26   : > { %p8456_p10 = pnand %p8454_p9, %p8610_p7 }
  0x28   : > { %p8457_p11 = pneg %p8456_p10 }
  0x2a   : > { %p8462_p13 = pnand %p8460_p12, %p8457_p11 }
  0x2c   : > { %8465 = shalt.err (!%p8462_p13)
}
  0x2d   : > { %s8466_s23 = scalar_lea.vmem %s8592_s28, 20480  ;;  %p8474_p6 = scmp.lt.s32.totalorder %s8592_s28, %s8592_s28 }
  0x2e   : > { %p8467_p0 = scmp.ne.s32.totalorder %s8592_s28, %s8466_s23  ;;  %p8475_p8 = scmp.lt.s32.totalorder %s8466_s23, %s8466_s23 }
  0x30   : > { %p8469_p1 = pnand %p8467_p0, %p8610_p7  ;;  %p8476_p9 = por %p8475_p8, %p8474_p6 }
  0x32   : > { %p8470_p4 = pneg %p8469_p1 }
  0x34   : > { %p8477_p10 = pnand %p8476_p9, %p8470_p4 }
  0x36   : > { %8480 = shalt.err (!%p8477_p10)
}
  0x37   : > { %s8530_s12 = smov 256   ;;  %s8531_s14 = smov 16  }
  0x38   : > { %7724 = dma.hbm_to_vmem [thread:$0]  (!%p8596_p5), %s10595_s2, 20480, %s8592_s28, [#allocation3], %s8530_s12, %s8530_s12, %s8531_s14  }
  0x39   : > { %s8481_s19 = scalar_lea.hbm %s10597_s4, 28672 }
  0x3a   : > { %p8482_p11 = scmp.ne.s32.totalorder %s10597_s4, %s8481_s19  ;;  %p8488_p0 = scmp.lt.u32.totalorder %s8481_s19, %s10597_s4 }
  0x3c   : > { %p8484_p12 = pnand %p8482_p11, %p8610_p7 }
  0x3e   : > { %p8485_p13 = pneg %p8484_p12 }
  0x40   : > { %p8490_p1 = pnand %p8488_p0, %p8485_p13 }
  0x42   : > { %8493 = shalt.err (!%p8490_p1)
}
  0x43   : > { %s8494_s8 = scalar_lea.vmem %s222_s7, 28672  ;;  %p8502_p9 = scmp.lt.s32.totalorder %s222_s7, %s222_s7 }
  0x44   : > { %p8495_p4 = scmp.ne.s32.totalorder %s222_s7, %s8494_s8  ;;  %p8503_p10 = scmp.lt.s32.totalorder %s8494_s8, %s8494_s8 }
  0x46   : > { %p8497_p6 = pnand %p8495_p4, %p8610_p7  ;;  %p8504_p2 = por %p8503_p10, %p8502_p9 }
  0x48   : > { %p8498_p8 = pneg %p8497_p6 }
  0x4a   : > { %p8505_p3 = pnand %p8504_p2, %p8498_p8 }
  0x4c   : > { %8508 = shalt.err (!%p8505_p3)
}
  0x4d   : > { %s8532_s28 = smov 896   ;;  %s8533_s9 = smov 56  }
  0x4e   : > { %7730 = dma.hbm_to_vmem [thread:$0]  (!%p8596_p5), %s10597_s4, 28672, %s222_s7, [#allocation5], %s8532_s28, %s8532_s28, %s8533_s9  }
  0x4f   : > { %p10622_p11 = scmp.ne.s32.totalorder %s10619_s26, 0 }
  0x51   : > { %249 = sbr.rel (%p10622_p11) target bundleno = 2153 (0x869), region = 44 }
  0x58   : > { %p10623_p12 = scmp.ne.s32.totalorder %s10618_s25, 0 }
  0x5a   : > { %8514 = dma.done.wait (%p10623_p12), [#allocation3], 20480  }
  0x5b   : > { %8516 = vsyncadd (%p10623_p12), [#allocation3], 4294946816 }
  0x5c   : > { %8518 = dma.done.wait (%p10623_p12), [#allocation5], 36864  }
  0x5d   : > { %8520 = vsyncadd (%p10623_p12), [#allocation5], 4294930432  ;;  %s6799_s29 = sshll.u32 %s6788_s24, 4  ;;  %v8534_v0 = vmov 0   ;;  %v7755_v1 = vld [vmem:[%s10594_s1 + $0x4] ss:$20 sps:$4 sm:$0xff]  }
  0x5e   : > { %474 = vmatprep.mubr.bf16.mxu0 %v8534_v0  ;;  %p289_p2 = scmp.lt.s32.totalorder %s6799_s29, 31  ;;  %514 = vmatprep.mubr.bf16.mxu1 %v8534_v0  ;;  %v7757_v2 = vld [vmem:[%s10594_s1] ss:$20 sps:$4 sm:$0xff]   ;;  %v7760_v4 = vld [vmem:[%s10594_s1 + $0x28] ss:$20 sps:$4 sm:$0xff]   ;;  %vm417_vm0 = vcmask 261120  }
  0x5f   : > { %442 = vmatprep.subr.bf16.mxu0 %v7755_v1  ;;  %v7758_v3 = vld [vmem:[%s10594_s1 + $0x2c] ss:$20 sps:$4 sm:$0xff]   ;;  %7449 = vmatprep.subr.bf16.mxu1 %v7755_v1  ;;  %v7761_v11 = vld [vmem:[%s10594_s1 + $0x8] ss:$20 sps:$4 sm:$0xff]   ;;  %v7764_v18 = vld [vmem:[%s10594_s1 + $0x30] ss:$20 sps:$4 sm:$0xff]  }
  0x60   : > { %s10662_s29 = smov (!%p289_p2, %s6799_s29), 31  ;;  %443 = vmatpush1.bf16.msra.mxu0 %v7757_v2  ;;  %7451 = vmatpush1.bf16.msra.mxu1 %v7757_v2  ;;  %v7763_v12 = vld [vmem:[%s10594_s1 + $0xc] ss:$20 sps:$4 sm:$0xff]   ;;  %v7766_v16 = vld [vmem:[%s10594_s1 + $0x34] ss:$20 sps:$4 sm:$0xff]  }
  0x61   : > { %s6800_s26 = sshll.u32 %s10662_s29, 3  ;;  %444 = vmatprep.subr.bf16.mxu0 %v7758_v3  ;;  %7450 = vmatprep.subr.bf16.mxu1 %v7758_v3  ;;  %v7767_v19 = vld [vmem:[%s10594_s1 + $0x10] ss:$20 sps:$4 sm:$0xff]   ;;  %v7768_v20 = vld [vmem:[%s10594_s1 + $0x38] ss:$20 sps:$4 sm:$0xff]   ;;  %s7290_s28 = sshll.u32 %s10662_s29, 4 }
  0x62   : > { %s8696_s12 = scalar_lea.vmem %s10593_s0, %s6800_s26  ;;  %v7771_v21 = vld [vmem:[#allocation2 + $0x4] ss:$16 sps:$4 sm:$0xff]   ;;  %v7774_v26 = vld [vmem:[#allocation2 + $0xc] ss:$16 sps:$4 sm:$0xff]   ;;  %v7769_v37 = vld [vmem:[#allocation2] ss:$16 sps:$4 sm:$0xff]   ;;  %s10491_s29 = scalar_lea.vmem %s10599_s6, %s7290_s28 }
  0x63   : > { %v302_v5 = vld [vmem:[%s8696_s12] sm:$0xff]  ;;  %v303_v6 = vld [vmem:[%s8696_s12 + $0x8] sm:$0xff]  ;;  %v304_v13 = vld [vmem:[%s8696_s12 + $0x10] sm:$0xff] }
  0x64   : > { %v310_v7 = vld [vmem:[%s8696_s12 + $0x40] sm:$0xff]  ;;  %v311_v8 = vld [vmem:[%s8696_s12 + $0x48] sm:$0xff]  ;;  %v330_v9 = vpack.c.bf16 %v303_v6, %v302_v5  ;;  %445 = vmatpush1.bf16.msra.mxu0 %v7760_v4  ;;  %7452 = vmatpush1.bf16.msra.mxu1 %v7760_v4  ;;  %v305_v14 = vld [vmem:[%s8696_s12 + $0x18] sm:$0xff] }
  0x65   : > { %v8711_v10 = vpack.c.bf16 %v311_v8, %v310_v7  ;;  %555 = vmatprep.subr.bf16.mxu1 %v7763_v12  ;;  %v312_v15 = vld [vmem:[%s8696_s12 + $0x50] sm:$0xff]  ;;  %v313_v17 = vld [vmem:[%s8696_s12 + $0x58] sm:$0xff]  ;;  %7429 = vmatprep.subr.bf16.mxu0 %v7767_v19  ;;  %v331_v22 = vpack.c.bf16 %v305_v14, %v304_v13  ;;  %v306_v24 = vld [vmem:[%s8696_s12 + $0x20] sm:$0xff] }
  0x66   : > { %v8740_v23 = vpack.c.bf16 %v313_v17, %v312_v15  ;;  %v307_v25 = vld [vmem:[%s8696_s12 + $0x28] sm:$0xff]  ;;  %v314_v27 = vld [vmem:[%s8696_s12 + $0x60] sm:$0xff]  ;;  %v308_v31 = vld [vmem:[%s8696_s12 + $0x30] sm:$0xff] }
  0x67   : > { %6814 = vmatmul.mubr.msk.bf16.vlgmr.msra.gmra.mrb[0].mxu0 %vm417_vm0, %v330_v9  ;;  %6818 = vmatmul.mubr.msk.bf16.vlgmr.msra.gmra.mrb[0].mxu1 %vm417_vm0, %v8711_v10  ;;  %v315_v28 = vld [vmem:[%s8696_s12 + $0x68] sm:$0xff]  ;;  %v332_v29 = vpack.c.bf16 %v307_v25, %v306_v24  ;;  %v309_v32 = vld [vmem:[%s8696_s12 + $0x38] sm:$0xff]  ;;  %v316_v33 = vld [vmem:[%s8696_s12 + $0x70] sm:$0xff] }
  0x68   : > { %484 = vmatprep.mubr.bf16.mxu0 %v8534_v0  ;;  %556 = vmatpush1.bf16.msra.mxu1 %v7761_v11  ;;  %v8751_v30 = vpack.c.bf16 %v315_v28, %v314_v27  ;;  %v317_v34 = vld [vmem:[%s8696_s12 + $0x78] sm:$0xff]  ;;  %v8762_v35 = vpack.c.bf16 %v309_v32, %v308_v31  ;;  %v7777_v39 = vld [vmem:[#allocation2 + $0x24] ss:$16 sps:$4 sm:$0xff]   ;;  %v7775_v41 = vld [vmem:[#allocation2 + $0x20] ss:$16 sps:$4 sm:$0xff]  }
  0x69   : > { %524 = vmatprep.mubr.bf16.mxu1 %v8534_v0  ;;  %557 = vmatprep.subr.bf16.mxu1 %v7766_v16  ;;  %v8764_v36 = vpack.c.bf16 %v317_v34, %v316_v33  ;;  %v7772_v38 = vld [vmem:[#allocation2 + $0x8] ss:$16 sps:$4 sm:$0xff]   ;;  %v7780_v40 = vld [vmem:[#allocation2 + $0x2c] ss:$16 sps:$4 sm:$0xff]   ;;  %v7783_v43 = vld [vmem:[#allocation2 + $0x44] ss:$16 sps:$4 sm:$0xff]  }
  0x6a   : > { %7430 = vmatpush3.bf16.msra.mxu0 %v7767_v19  ;;  %v7778_v42 = vld [vmem:[#allocation2 + $0x28] ss:$16 sps:$4 sm:$0xff]   ;;  %v7786_v44 = vld [vmem:[#allocation2 + $0x4c] ss:$16 sps:$4 sm:$0xff]   ;;  %v7781_v45 = vld [vmem:[#allocation2 + $0x40] ss:$16 sps:$4 sm:$0xff]  }
  0x6b   : > { %7431 = vmatprep.subr.bf16.mxu0 %v7768_v20  ;;  %v7784_v46 = vld [vmem:[#allocation2 + $0x48] ss:$16 sps:$4 sm:$0xff]   ;;  %v7789_v47 = vld [vmem:[#allocation2 + $0x64] ss:$16 sps:$4 sm:$0xff]   ;;  %v7792_v48 = vld [vmem:[#allocation2 + $0x6c] ss:$16 sps:$4 sm:$0xff]  }
  0x6c   : > { %558 = vmatpush1.bf16.msra.mxu1 %v7764_v18  ;;  %v7787_v49 = vld [vmem:[#allocation2 + $0x60] ss:$16 sps:$4 sm:$0xff]   ;;  %v7790_v50 = vld [vmem:[#allocation2 + $0x68] ss:$16 sps:$4 sm:$0xff]   ;;  %v7795_v51 = vld [vmem:[#allocation2 + $0x84] ss:$16 sps:$4 sm:$0xff]  }
  0x6d   : > { %2027 = vmatprep.subr.bf16.mxu1 %v7771_v21  ;;  %v7798_v52 = vld [vmem:[#allocation2 + $0x8c] ss:$16 sps:$4 sm:$0xff]   ;;  %v7793_v53 = vld [vmem:[#allocation2 + $0x80] ss:$16 sps:$4 sm:$0xff]   ;;  %v7796_v54 = vld [vmem:[#allocation2 + $0x88] ss:$16 sps:$4 sm:$0xff]  }
  0x6e   : > { %7432 = vmatpush3.bf16.msra.mxu0 %v7768_v20  ;;  %v7801_v55 = vld [vmem:[#allocation2 + $0xa4] ss:$16 sps:$4 sm:$0xff]   ;;  %v7804_v56 = vld [vmem:[#allocation2 + $0xac] ss:$16 sps:$4 sm:$0xff]   ;;  %v7799_v57 = vld [vmem:[#allocation2 + $0xa0] ss:$16 sps:$4 sm:$0xff]  }
  0x6f   : > { %6815 = vmatmul.mubr.msk.bf16.gmra.mrb[4].mxu0 %vm417_vm0, %v331_v22  ;;  %6819 = vmatmul.mubr.msk.bf16.gmra.mrb[4].mxu1 %vm417_vm0, %v8740_v23  ;;  %v7802_v58 = vld [vmem:[#allocation2 + $0xa8] ss:$16 sps:$4 sm:$0xff]   ;;  %v7807_v59 = vld [vmem:[#allocation2 + $0xc4] ss:$16 sps:$4 sm:$0xff]   ;;  %v7810_v60 = vld [vmem:[#allocation2 + $0xcc] ss:$16 sps:$4 sm:$0xff]  }
  0x70   : > { %494 = vmatprep.mubr.bf16.mxu0 %v8534_v0  ;;  %534 = vmatprep.mubr.bf16.mxu1 %v8534_v0  ;;  %v7805_v61 = vld [vmem:[#allocation2 + $0xc0] ss:$16 sps:$4 sm:$0xff]   ;;  %v7808_v62 = vld [vmem:[#allocation2 + $0xc8] ss:$16 sps:$4 sm:$0xff]   ;;  %v7813_v63 = vld [vmem:[#allocation2 + $0xe4] ss:$16 sps:$4 sm:$0xff]  }
  0x71   : > { %2366 = vmatprep.subr.bf16.mxu0 %v7774_v26  ;;  %v7816_v1 = vld [vmem:[#allocation2 + $0xec] ss:$16 sps:$4 sm:$0xff]   ;;  %v7811_v2 = vld [vmem:[#allocation2 + $0xe0] ss:$16 sps:$4 sm:$0xff]   ;;  %v7814_v3 = vld [vmem:[#allocation2 + $0xe8] ss:$16 sps:$4 sm:$0xff]  }
  0x72   : > { %v7819_v4 = vld [vmem:[#allocation2 + $0x104] ss:$16 sps:$4 sm:$0xff]   ;;  %v7822_v5 = vld [vmem:[#allocation2 + $0x10c] ss:$16 sps:$4 sm:$0xff]   ;;  %v7817_v6 = vld [vmem:[#allocation2 + $0x100] ss:$16 sps:$4 sm:$0xff]  }
  0x73   : > { %v7820_v7 = vld [vmem:[#allocation2 + $0x108] ss:$16 sps:$4 sm:$0xff]   ;;  %v7825_v8 = vld [vmem:[#allocation2 + $0x124] ss:$16 sps:$4 sm:$0xff]   ;;  %v7823_v11 = vld [vmem:[#allocation2 + $0x120] ss:$16 sps:$4 sm:$0xff]  }
  0x74   : > { %v7826_v12 = vld [vmem:[#allocation2 + $0x128] ss:$16 sps:$4 sm:$0xff]   ;;  %v7831_v13 = vld [vmem:[#allocation2 + $0x144] ss:$16 sps:$4 sm:$0xff]   ;;  %v7834_v14 = vld [vmem:[#allocation2 + $0x14c] ss:$16 sps:$4 sm:$0xff]  }
  0x75   : > { %v7829_v15 = vld [vmem:[#allocation2 + $0x140] ss:$16 sps:$4 sm:$0xff]   ;;  %v7832_v16 = vld [vmem:[#allocation2 + $0x148] ss:$16 sps:$4 sm:$0xff]   ;;  %v7837_v17 = vld [vmem:[#allocation2 + $0x164] ss:$16 sps:$4 sm:$0xff]  }
  0x76   : > { %v7840_v18 = vld [vmem:[#allocation2 + $0x16c] ss:$16 sps:$4 sm:$0xff]   ;;  %v7838_v19 = vld [vmem:[#allocation2 + $0x168] ss:$16 sps:$4 sm:$0xff]   ;;  %v7843_v20 = vld [vmem:[#allocation2 + $0x184] ss:$16 sps:$4 sm:$0xff]  }
  0x77   : > { %6816 = vmatmul.mubr.msk.bf16.gmra.mrb[8].mxu0 %vm417_vm0, %v332_v29  ;;  %6820 = vmatmul.mubr.msk.bf16.gmra.mrb[8].mxu1 %vm417_vm0, %v8751_v30  ;;  %v7846_v21 = vld [vmem:[#allocation2 + $0x18c] ss:$16 sps:$4 sm:$0xff]   ;;  %v7844_v24 = vld [vmem:[#allocation2 + $0x188] ss:$16 sps:$4 sm:$0xff]   ;;  %v7849_v25 = vld [vmem:[#allocation2 + $0x1a4] ss:$16 sps:$4 sm:$0xff]  }
  0x78   : > { %504 = vmatprep.mubr.bf16.mxu0 %v8534_v0  ;;  %544 = vmatprep.mubr.bf16.mxu1 %v8534_v0  ;;  %v7852_v26 = vld [vmem:[#allocation2 + $0x1ac] ss:$16 sps:$4 sm:$0xff]   ;;  %v7850_v27 = vld [vmem:[#allocation2 + $0x1a8] ss:$16 sps:$4 sm:$0xff]   ;;  %v7855_v28 = vld [vmem:[#allocation2 + $0x1c4] ss:$16 sps:$4 sm:$0xff]  }
  0x79   : > { %v7853_v31 = vld [vmem:[#allocation2 + $0x1c0] ss:$16 sps:$4 sm:$0xff]   ;;  %v7856_v32 = vld [vmem:[#allocation2 + $0x1c8] ss:$16 sps:$4 sm:$0xff]   ;;  %v7864_v33 = vld [vmem:[#allocation2 + $0x1ec] ss:$16 sps:$4 sm:$0xff]  }
  0x7a   : > { %v7859_v34 = vld [vmem:[#allocation2 + $0x1e0] ss:$16 sps:$4 sm:$0xff]  }
  0x7f   : > { %6817 = vmatmul.mubr.msk.bf16.gmra.mrb[12].mxu0 %vm417_vm0, %v8762_v35  ;;  %6821 = vmatmul.mubr.msk.bf16.gmra.mrb[12].mxu1 %vm417_vm0, %v8764_v36 }
  0x80   : > { %587 = vmatprep.mubr.bf16.mxu1 %v8534_v0  ;;  %7433 = vmatprep.mubr.msk.bf16.mxu0 %vm417_vm0, %v330_v9 }
  0x87   : > { %6822 = vmatmul.mubr.msk.bf16.vlgmr.msra.gmra.mrb[16].mxu1 %vm417_vm0, %v330_v9  ;;  %7434 = vmatmul.mubr.msk.bf16.vlgmr.msra.gmra.mrb[16].mxu0 %vm417_vm0, %v331_v22  ;;  %v7828_v9 = vld [vmem:[#allocation2 + $0x12c] ss:$16 sps:$4 sm:$0xff]  }
  0x88   : > { %597 = vmatprep.mubr.bf16.mxu1 %v8534_v0  ;;  %7437 = vmatprep.mubr.msk.bf16.mxu0 %vm417_vm0, %v332_v29 }
  0x89   : > { %2028 = vmatpush1.bf16.msra.mxu1 %v7769_v37  ;;  %2367 = vmatpush1.bf16.msra.mxu0 %v7772_v38  ;;  %v7867_v37 = vld [vmem:[#allocation2 + $0x204] ss:$16 sps:$4 sm:$0xff]   ;;  %v7870_v38 = vld [vmem:[#allocation2 + $0x20c] ss:$16 sps:$4 sm:$0xff]  }
  0x8a   : > { %2029 = vmatprep.subr.bf16.mxu1 %v7777_v39  ;;  %2368 = vmatprep.subr.bf16.mxu0 %v7780_v40  ;;  %v340_v39 = vlaneseq }
  0x8c   : > { %v341_v40 = vshrl.u32 %v340_v39, 7  ;;  %v7879_v39 = vld [vmem:[#allocation2 + $0x244] ss:$16 sps:$4 sm:$0xff]  }
  0x8d   : > { %2030 = vmatpush1.bf16.msra.mxu1 %v7775_v41  ;;  %2369 = vmatpush1.bf16.msra.mxu0 %v7778_v42 }
  0x8e   : > { %2031 = vmatprep.subr.bf16.mxu1 %v7783_v43  ;;  %2370 = vmatprep.subr.bf16.mxu0 %v7786_v44  ;;  %v8804_v41 = vsub.s32 0, %v341_v40  ;;  %v8809_v42 = vsub.s32 1, %v341_v40 }
  0x8f   : > { %6823 = vmatmul.mubr.msk.bf16.gmra.mrb[20].mxu1 %vm417_vm0, %v331_v22  ;;  %7438 = vmatmul.mubr.msk.bf16.gmra.mrb[20].mxu0 %vm417_vm0, %v8762_v35  ;;  %v7841_v22 = vld [vmem:[#allocation2 + $0x180] ss:$16 sps:$4 sm:$0xff]  }
  0x90   : > { %607 = vmatprep.mubr.bf16.mxu1 %v8534_v0  ;;  %7441 = vmatprep.mubr.msk.bf16.mxu0 %vm417_vm0, %v8711_v10  ;;  %10624 = vst [vmem:[#allocation9_spill] sm:$0xff] %v8804_v41  ;;  %10625 = vst [vmem:[#allocation10_spill] sm:$0xff] %v8809_v42 }
  0x91   : > { %2032 = vmatpush1.bf16.msra.mxu1 %v7781_v45  ;;  %2371 = vmatpush1.bf16.msra.mxu0 %v7784_v46 }
  0x92   : > { %2033 = vmatprep.subr.bf16.mxu1 %v7789_v47  ;;  %2372 = vmatprep.subr.bf16.mxu0 %v7792_v48 }
  0x95   : > { %2034 = vmatpush1.bf16.msra.mxu1 %v7787_v49  ;;  %2373 = vmatpush1.bf16.msra.mxu0 %v7790_v50 }
  0x96   : > { %2035 = vmatprep.subr.bf16.mxu1 %v7795_v51  ;;  %2374 = vmatprep.subr.bf16.mxu0 %v7798_v52 }
  0x97   : > { %6824 = vmatmul.mubr.msk.bf16.gmra.mrb[24].mxu1 %vm417_vm0, %v332_v29  ;;  %7442 = vmatmul.mubr.msk.bf16.gmra.mrb[24].mxu0 %vm417_vm0, %v8740_v23  ;;  %v7858_v29 = vld [vmem:[#allocation2 + $0x1cc] ss:$16 sps:$4 sm:$0xff]  }
  0x98   : > { %617 = vmatprep.mubr.bf16.mxu1 %v8534_v0  ;;  %7445 = vmatprep.mubr.msk.bf16.mxu0 %vm417_vm0, %v8751_v30 }
  0x99   : > { %2036 = vmatpush1.bf16.msra.mxu1 %v7793_v53  ;;  %2375 = vmatpush1.bf16.msra.mxu0 %v7796_v54 }
  0x9a   : > { %2037 = vmatprep.subr.bf16.mxu1 %v7801_v55  ;;  %2376 = vmatprep.subr.bf16.mxu0 %v7804_v56 }
  0x9d   : > { %2038 = vmatpush1.bf16.msra.mxu1 %v7799_v57  ;;  %2377 = vmatpush1.bf16.msra.mxu0 %v7802_v58 }
  0x9e   : > { %2039 = vmatprep.subr.bf16.mxu1 %v7807_v59  ;;  %2378 = vmatprep.subr.bf16.mxu0 %v7810_v60  ;;  %v8822_v60 = vsub.s32 2, %v341_v40 }
  0x9f   : > { %6825 = vmatmul.mubr.msk.bf16.gmra.mrb[28].mxu1 %vm417_vm0, %v8762_v35  ;;  %7446 = vmatmul.mubr.msk.bf16.gmra.mrb[28].mxu0 %vm417_vm0, %v8764_v36  ;;  %v7862_v35 = vld [vmem:[#allocation2 + $0x1e8] ss:$16 sps:$4 sm:$0xff]  }
  0xa0   : > { %627 = vmatprep.mubr.bf16.mxu1 %v8534_v0  ;;  %10626 = vst [vmem:[#allocation11_spill] sm:$0xff] %v8822_v60 }
  0xa1   : > { %2040 = vmatpush1.bf16.msra.mxu1 %v7805_v61  ;;  %2379 = vmatpush1.bf16.msra.mxu0 %v7808_v62  ;;  %v8824_v61 = vsub.s32 3, %v341_v40 }
  0xa2   : > { %2041 = vmatprep.subr.bf16.mxu1 %v7813_v63  ;;  %2380 = vmatprep.subr.bf16.mxu0 %v7816_v1  ;;  %v358_v63 = vsub.s32 4, %v341_v40 }
  0xa3   : > { %10627 = vst [vmem:[#allocation12_spill] sm:$0xff] %v8824_v61 }
  0xa5   : > { %2042 = vmatpush1.bf16.msra.mxu1 %v7811_v2  ;;  %2381 = vmatpush1.bf16.msra.mxu0 %v7814_v3 }
  0xa6   : > { %2043 = vmatprep.subr.bf16.mxu1 %v7819_v4  ;;  %2382 = vmatprep.subr.bf16.mxu0 %v7822_v5  ;;  %v7865_v5 = vld [vmem:[#allocation2 + $0x200] ss:$16 sps:$4 sm:$0xff]  }
  0xa7   : > { %6826 = vmatmul.mubr.msk.bf16.gmra.mrb[32].mxu1 %vm417_vm0, %v8711_v10  ;;  %v7835_v10 = vld [vmem:[#allocation2 + $0x160] ss:$16 sps:$4 sm:$0xff]  }
  0xa8   : > { %637 = vmatprep.mubr.bf16.mxu1 %v8534_v0 }
  0xa9   : > { %2044 = vmatpush1.bf16.msra.mxu1 %v7817_v6  ;;  %2383 = vmatpush1.bf16.msra.mxu0 %v7820_v7  ;;  %v7868_v6 = vld [vmem:[#allocation2 + $0x208] ss:$16 sps:$4 sm:$0xff]  }
  0xaa   : > { %2045 = vmatprep.subr.bf16.mxu1 %v7825_v8  ;;  %2384 = vmatprep.subr.bf16.mxu0 %v7828_v9 }
  0xad   : > { %2046 = vmatpush1.bf16.msra.mxu1 %v7823_v11  ;;  %2385 = vmatpush1.bf16.msra.mxu0 %v7826_v12 }
  0xae   : > { %2047 = vmatprep.subr.bf16.mxu1 %v7831_v13  ;;  %2386 = vmatprep.subr.bf16.mxu0 %v7834_v14 }
  0xaf   : > { %6827 = vmatmul.mubr.msk.bf16.gmra.mrb[36].mxu1 %vm417_vm0, %v8740_v23  ;;  %v7847_v23 = vld [vmem:[#allocation2 + $0x1a0] ss:$16 sps:$4 sm:$0xff]  }
  0xb0   : > { %647 = vmatprep.mubr.bf16.mxu1 %v8534_v0 }
  0xb1   : > { %2048 = vmatpush1.bf16.msra.mxu1 %v7829_v15  ;;  %2387 = vmatpush1.bf16.msra.mxu0 %v7832_v16 }
  0xb2   : > { %2049 = vmatprep.subr.bf16.mxu1 %v7837_v17  ;;  %2388 = vmatprep.subr.bf16.mxu0 %v7840_v18 }
  0xb5   : > { %2050 = vmatpush1.bf16.msra.mxu1 %v7835_v10  ;;  %2389 = vmatpush1.bf16.msra.mxu0 %v7838_v19  ;;  %v7873_v10 = vld [vmem:[#allocation2 + $0x224] ss:$16 sps:$4 sm:$0xff]   ;;  %v7876_v19 = vld [vmem:[#allocation2 + $0x22c] ss:$16 sps:$4 sm:$0xff]  }
  0xb6   : > { %2051 = vmatprep.subr.bf16.mxu1 %v7843_v20  ;;  %2390 = vmatprep.subr.bf16.mxu0 %v7846_v21 }
  0xb7   : > { %6828 = vmatmul.mubr.msk.bf16.gmra.mrb[40].mxu1 %vm417_vm0, %v8751_v30  ;;  %v7861_v30 = vld [vmem:[#allocation2 + $0x1e4] ss:$16 sps:$4 sm:$0xff]  }
  0xb8   : > { %657 = vmatprep.mubr.bf16.mxu1 %v8534_v0 }
  0xb9   : > { %2052 = vmatpush1.bf16.msra.mxu1 %v7841_v22  ;;  %2391 = vmatpush1.bf16.msra.mxu0 %v7844_v24 }
  0xba   : > { %2053 = vmatprep.subr.bf16.mxu1 %v7849_v25  ;;  %2392 = vmatprep.subr.bf16.mxu0 %v7852_v26 }
  0xbd   : > { %2054 = vmatpush1.bf16.msra.mxu1 %v7847_v23  ;;  %2393 = vmatpush1.bf16.msra.mxu0 %v7850_v27 }
  0xbe   : > { %2055 = vmatprep.subr.bf16.mxu1 %v7855_v28  ;;  %2394 = vmatprep.subr.bf16.mxu0 %v7858_v29 }
  0xbf   : > { %6829 = vmatmul.mubr.msk.bf16.gmra.mrb[44].mxu1 %vm417_vm0, %v8764_v36  ;;  %v338_v36 = vld [vmem:[%s10598_s5] sm:$0x1f] }
  0xc0   : > { %v8812_v43 = vrot.slane %v338_v36, %v8804_v41  ;;  %v8815_v44 = vrot.slane %v338_v36, %v8809_v42  ;;  %v8834_v15 = vrot.slane %v338_v36, %v8822_v60  ;;  %v8838_v21 = vrot.slane %v338_v36, %v8824_v61 }
  0xc1   : > { %2056 = vmatpush1.bf16.msra.mxu1 %v7853_v31  ;;  %2395 = vmatpush1.bf16.msra.mxu0 %v7856_v32  ;;  %v8840_v22 = vrot.slane %v338_v36, %v358_v63  ;;  %v7871_v32 = vld [vmem:[#allocation2 + $0x220] ss:$16 sps:$4 sm:$0xff]   ;;  %v7882_v36 = vld [vmem:[#allocation2 + $0x24c] ss:$16 sps:$4 sm:$0xff]  }
  0xc2   : > { %2057 = vmatprep.subr.bf16.mxu1 %v7861_v30  ;;  %2396 = vmatprep.subr.bf16.mxu0 %v7864_v33  ;;  %v7874_v30 = vld [vmem:[#allocation2 + $0x228] ss:$16 sps:$4 sm:$0xff]  }
  0xc5   : > { %2058 = vmatpush1.bf16.msra.mxu1 %v7859_v34  ;;  %2397 = vmatpush1.bf16.msra.mxu0 %v7862_v35 }
  0xc6   : > { %2140 = vmatprep.subr.bf16.mxu1 %v7867_v37  ;;  %2479 = vmatprep.subr.bf16.mxu0 %v7870_v38 }
 0x13a   : > { %v476_v45 = vpop.f32.mrb[0].mxu0  ;;  %v516_v46 = vpop.f32.mrb[0].mxu1 }
 0x13b   : > { %v477_v47 = vadd.f32 %v476_v45, %v8812_v43  ;;  %v478_v48 = vpop.f32.mrb[1].mxu0  ;;  %v518_v49 = vpop.f32.mrb[1].mxu1  ;;  %v8827_v3 = vadd.f32 %v516_v46, %v8812_v43 }
 0x13c   : > { %v479_v50 = vadd.f32 %v478_v48, %v8815_v44  ;;  %v480_v51 = vpop.f32.mrb[2].mxu0  ;;  %v520_v52 = vpop.f32.mrb[2].mxu1  ;;  %v519_v56 = vadd.f32 %v518_v49, %v8815_v44  ;;  %v7877_v49 = vld [vmem:[#allocation2 + $0x240] ss:$16 sps:$4 sm:$0xff]  }
 0x13d   : > { %vm765_vm1 = vcmp.ge.f32.partialorder %v477_v47, 0.0  ;;  %v845_v53 = vmul.f32 0.1, %v477_v47  ;;  %v481_v54 = vadd.f32 %v480_v51, %v8812_v43  ;;  %v482_v55 = vpop.f32.mrb[3].mxu0  ;;  %v522_v57 = vpop.f32.mrb[3].mxu1  ;;  %vm805_vm6 = vcmp.ge.f32.partialorder %v8827_v3, 0.0 }
 0x13e   : > { %v846_v58 = vmul.f32 0.1, %v479_v50  ;;  %v483_v59 = vadd.f32 %v482_v55, %v8815_v44  ;;  %vm766_vm2 = vcmp.ge.f32.partialorder %v479_v50, 0.0  ;;  %vm806_vm5 = vcmp.ge.f32.partialorder %v519_v56, 0.0 }
 0x13f   : > { %vm770_vm3 = vcmp.ge.f32.partialorder %v481_v54, 0.0  ;;  %v850_v62 = vmul.f32 0.1, %v481_v54  ;;  %v925_v1 = vsel %vm765_vm1, %v477_v47, %v845_v53  ;;  %v886_v7 = vmul.f32 0.1, %v519_v56 }
 0x140   : > { %vm771_vm4 = vcmp.ge.f32.partialorder %v483_v59, 0.0  ;;  %v851_v2 = vmul.f32 0.1, %v483_v59  ;;  %v8830_v8 = vadd.f32 %v522_v57, %v8815_v44  ;;  %v926_v12 = vsel %vm766_vm2, %v479_v50, %v846_v58  ;;  %v7885_v57 = vld [vmem:[#allocation2 + $0x264] ss:$16 sps:$4 sm:$0xff]  }
 0x141   : > { %v930_v4 = vsel %vm770_vm3, %v481_v54, %v850_v62  ;;  %v885_v23 = vmul.f32 0.1, %v8827_v3  ;;  %v8846_v26 = vadd.f32 %v520_v52, %v8812_v43  ;;  %v966_v35 = vsel %vm806_vm5, %v519_v56, %v886_v7  ;;  %v7880_v52 = vld [vmem:[#allocation2 + $0x248] ss:$16 sps:$4 sm:$0xff]  }
 0x142   : > { %v1165_v9 = vpack.c.bf16 %v930_v4, %v925_v1  ;;  %v486_v11 = vpop.f32.mrb[4].mxu0  ;;  %v931_v13 = vsel %vm771_vm4, %v483_v59, %v851_v2  ;;  %v526_v14 = vpop.f32.mrb[4].mxu1  ;;  %v891_v33 = vmul.f32 0.1, %v8830_v8  ;;  %vm811_vm10 = vcmp.ge.f32.partialorder %v8830_v8, 0.0 }
 0x143   : > { %v487_v16 = vadd.f32 %v486_v11, %v8812_v43  ;;  %v488_v17 = vpop.f32.mrb[5].mxu0  ;;  %v1166_v18 = vpack.c.bf16 %v931_v13, %v926_v12  ;;  %v528_v20 = vpop.f32.mrb[5].mxu1  ;;  %v8854_v45 = vadd.f32 %v526_v14, %v8812_v43  ;;  %vm810_vm12 = vcmp.ge.f32.partialorder %v8846_v26, 0.0  ;;  %v7888_v4 = vld [vmem:[#allocation2 + $0x26c] ss:$16 sps:$4 sm:$0xff]  }
 0x144   : > { %v489_v24 = vadd.f32 %v488_v17, %v8815_v44  ;;  %v490_v25 = vpop.f32.mrb[6].mxu0  ;;  %v530_v27 = vpop.f32.mrb[6].mxu1  ;;  %v8858_v47 = vadd.f32 %v528_v20, %v8815_v44  ;;  %v890_v53 = vmul.f32 0.1, %v8846_v26  ;;  %v971_v59 = vsel %vm811_vm10, %v8830_v8, %v891_v33 }
 0x145   : > { %v855_v28 = vmul.f32 0.1, %v487_v16  ;;  %v491_v29 = vadd.f32 %v490_v25, %v8812_v43  ;;  %v492_v31 = vpop.f32.mrb[7].mxu0  ;;  %2059 = vmatprep.mubr.bf16.mxu1 %v1166_v18  ;;  %2398 = vmatprep.mubr.bf16.mxu0 %v1166_v18  ;;  %v532_v34 = vpop.f32.mrb[7].mxu1  ;;  %vm775_vm7 = vcmp.ge.f32.partialorder %v487_v16, 0.0  ;;  %v8865_v58 = vadd.f32 %v530_v27, %v8812_v43 }
 0x146   : > { %vm776_vm8 = vcmp.ge.f32.partialorder %v489_v24, 0.0  ;;  %v856_v37 = vmul.f32 0.1, %v489_v24  ;;  %v493_v38 = vadd.f32 %v492_v31, %v8815_v44  ;;  %2060 = vmatmul.mubr.bf16.vlgmr.msra.gmra.mrb[48].mxu1 %v1165_v9  ;;  %2399 = vmatmul.mubr.bf16.vlgmr.msra.gmra.mrb[32].mxu0 %v1165_v9  ;;  %v965_v7 = vsel %vm805_vm6, %v8827_v3, %v885_v23  ;;  %v7883_v3 = vld [vmem:[#allocation2 + $0x260] ss:$16 sps:$4 sm:$0xff]  }
 0x147   : > { %vm780_vm9 = vcmp.ge.f32.partialorder %v491_v29, 0.0  ;;  %v860_v40 = vmul.f32 0.1, %v491_v29  ;;  %2141 = vmatpush1.bf16.msra.mxu1 %v7865_v5  ;;  %2480 = vmatpush1.bf16.msra.mxu0 %v7868_v6  ;;  %v935_v50 = vsel %vm775_vm7, %v487_v16, %v855_v28  ;;  %v8872_v5 = vmul.f32 0.1, %v8854_v45 }
 0x148   : > { %vm781_vm11 = vcmp.ge.f32.partialorder %v493_v38, 0.0  ;;  %v861_v46 = vmul.f32 0.1, %v493_v38  ;;  %2142 = vmatprep.subr.bf16.mxu1 %v7873_v10  ;;  %2481 = vmatprep.subr.bf16.mxu0 %v7876_v19  ;;  %v936_v48 = vsel %vm776_vm8, %v489_v24, %v856_v37  ;;  %vm816_vm13 = vcmp.ge.f32.partialorder %v8858_v47, 0.0  ;;  %v7886_v18 = vld [vmem:[#allocation2 + $0x268] ss:$16 sps:$4 sm:$0xff]  }
 0x149   : > { %v940_v51 = vsel %vm780_vm9, %v491_v29, %v860_v40  ;;  %v8880_v8 = vmul.f32 0.1, %v8858_v47  ;;  %v8882_v12 = vpack.c.bf16 %v971_v59, %v966_v35  ;;  %v8888_v10 = vadd.f32 %v532_v34, %v8815_v44  ;;  %v7891_v23 = vld [vmem:[#allocation2 + $0x284] ss:$16 sps:$4 sm:$0xff]   ;;  %v7894_v28 = vld [vmem:[#allocation2 + $0x28c] ss:$16 sps:$4 sm:$0xff]  }
 0x14a   : > { %v496_v54 = vpop.f32.mrb[8].mxu0  ;;  %v941_v55 = vsel %vm781_vm11, %v493_v38, %v861_v46  ;;  %v1170_v56 = vpack.c.bf16 %v940_v51, %v935_v50  ;;  %v536_v62 = vpop.f32.mrb[8].mxu1  ;;  %v970_v19 = vsel %vm810_vm12, %v8846_v26, %v890_v53  ;;  %vm815_vm15 = vcmp.ge.f32.partialorder %v8854_v45, 0.0  ;;  %v7892_v35 = vld [vmem:[#allocation2 + $0x288] ss:$16 sps:$4 sm:$0xff]  }
 0x14b   : > { %v497_v63 = vadd.f32 %v496_v54, %v8812_v43  ;;  %2143 = vmatpush1.bf16.msra.mxu1 %v7871_v32  ;;  %v498_v1 = vpop.f32.mrb[9].mxu0  ;;  %2482 = vmatpush1.bf16.msra.mxu0 %v7874_v30  ;;  %v1171_v2 = vpack.c.bf16 %v941_v55, %v936_v48  ;;  %v538_v6 = vpop.f32.mrb[9].mxu1  ;;  %vm820_vm0 = vcmp.ge.f32.partialorder %v8865_v58, 0.0  ;;  %v8897_v26 = vadd.f32 %v536_v62, %v8812_v43  ;;  %v7889_v30 = vld [vmem:[#allocation2 + $0x280] ss:$16 sps:$4 sm:$0xff]  }
 0x14c   : > { %v499_v9 = vadd.f32 %v498_v1, %v8815_v44  ;;  %v500_v11 = vpop.f32.mrb[10].mxu0  ;;  %2144 = vmatprep.subr.bf16.mxu1 %v7879_v39  ;;  %2483 = vmatprep.subr.bf16.mxu0 %v7882_v36  ;;  %v8884_v13 = vpop.f32.mrb[10].mxu1  ;;  %v8900_v31 = vmul.f32 0.1, %v8865_v58  ;;  %v8903_v32 = vadd.f32 %v538_v6, %v8815_v44  ;;  %v901_v37 = vmul.f32 0.1, %v8888_v10 }
 0x14d   : > { %v865_v14 = vmul.f32 0.1, %v497_v63  ;;  %v501_v16 = vadd.f32 %v500_v11, %v8812_v43  ;;  %v502_v17 = vpop.f32.mrb[11].mxu0  ;;  %2069 = vmatprep.mubr.bf16.mxu1 %v1171_v2  ;;  %2408 = vmatprep.mubr.bf16.mxu0 %v1171_v2  ;;  %v542_v20 = vpop.f32.mrb[11].mxu1  ;;  %vm785_vm14 = vcmp.ge.f32.partialorder %v497_v63, 0.0  ;;  %v8907_v38 = vpack.c.bf16 %v970_v19, %v965_v7 }
 0x14e   : > { %v866_v24 = vmul.f32 0.1, %v499_v9  ;;  %v503_v25 = vadd.f32 %v502_v17, %v8815_v44  ;;  %2070 = vmatmul.mubr.bf16.gmra.mrb[52].mxu1 %v1170_v56  ;;  %2409 = vmatmul.mubr.bf16.gmra.mrb[36].mxu0 %v1170_v56  ;;  %vm786_vm1 = vcmp.ge.f32.partialorder %v499_v9, 0.0  ;;  %v7897_v48 = vld [vmem:[#allocation2 + $0x2a4] ss:$16 sps:$4 sm:$0xff]   ;;  %v8911_v50 = vadd.f32 %v542_v20, %v8815_v44 }
 0x14f   : > { %vm790_vm2 = vcmp.ge.f32.partialorder %v501_v16, 0.0  ;;  %v870_v27 = vmul.f32 0.1, %v501_v16  ;;  %2145 = vmatpush1.bf16.msra.mxu1 %v7877_v49  ;;  %2484 = vmatpush1.bf16.msra.mxu0 %v7880_v52  ;;  %v945_v33 = vsel %vm785_vm14, %v497_v63, %v865_v14  ;;  %v7900_v49 = vld [vmem:[#allocation2 + $0x2ac] ss:$16 sps:$4 sm:$0xff]   ;;  %vm821_vm4 = vcmp.ge.f32.partialorder %v8888_v10, 0.0 }
 0x150   : > { %vm791_vm3 = vcmp.ge.f32.partialorder %v503_v25, 0.0  ;;  %v871_v29 = vmul.f32 0.1, %v503_v25  ;;  %2146 = vmatprep.subr.bf16.mxu1 %v7885_v57  ;;  %2485 = vmatprep.subr.bf16.mxu0 %v7888_v4  ;;  %v946_v40 = vsel %vm786_vm1, %v499_v9, %v866_v24  ;;  %v8916_v55 = vmul.f32 0.1, %v8897_v26 }
 0x151   : > { %v950_v34 = vsel %vm790_vm2, %v501_v16, %v870_v27  ;;  %vm826_vm5 = vcmp.ge.f32.partialorder %v8903_v32, 0.0  ;;  %v906_v62 = vmul.f32 0.1, %v8903_v32  ;;  %v976_v63 = vsel %vm816_vm13, %v8858_v47, %v8880_v8  ;;  %v7895_v7 = vld [vmem:[#allocation2 + $0x2a0] ss:$16 sps:$4 sm:$0xff]  }
 0x152   : > { %v506_v39 = vpop.f32.mrb[12].mxu0  ;;  %v951_v36 = vsel %vm791_vm3, %v503_v25, %v871_v29  ;;  %v1175_v46 = vpack.c.bf16 %v950_v34, %v945_v33  ;;  %v546_v51 = vpop.f32.mrb[12].mxu1  ;;  %v7898_v9 = vld [vmem:[#allocation2 + $0x2a8] ss:$16 sps:$4 sm:$0xff]   ;;  %vm825_vm6 = vcmp.ge.f32.partialorder %v8897_v26, 0.0  ;;  %v8929_v11 = vadd.f32 %v8884_v13, %v8812_v43 }
 0x153   : > { %v507_v52 = vadd.f32 %v506_v39, %v8812_v43  ;;  %2147 = vmatpush1.bf16.msra.mxu1 %v7883_v3  ;;  %v508_v53 = vpop.f32.mrb[13].mxu0  ;;  %2486 = vmatpush1.bf16.msra.mxu0 %v7886_v18  ;;  %v1176_v54 = vpack.c.bf16 %v951_v36, %v946_v40  ;;  %v548_v56 = vpop.f32.mrb[13].mxu1  ;;  %vm831_vm7 = vcmp.ge.f32.partialorder %v8911_v50, 0.0  ;;  %v7903_v8 = vld [vmem:[#allocation2 + $0x2c4] ss:$16 sps:$4 sm:$0xff]   ;;  %v981_v16 = vsel %vm821_vm4, %v8888_v10, %v901_v37 }
 0x154   : > { %v509_v57 = vadd.f32 %v508_v53, %v8815_v44  ;;  %v510_v59 = vpop.f32.mrb[14].mxu0  ;;  %2148 = vmatprep.subr.bf16.mxu1 %v7891_v23  ;;  %2487 = vmatprep.subr.bf16.mxu0 %v7894_v28  ;;  %v550_v1 = vpop.f32.mrb[14].mxu1  ;;  %v7906_v13 = vld [vmem:[#allocation2 + $0x2cc] ss:$16 sps:$4 sm:$0xff]   ;;  %v8936_v18 = vpack.c.bf16 %v981_v16, %v976_v63  ;;  %v911_v20 = vmul.f32 0.1, %v8911_v50  ;;  %v8940_v24 = vadd.f32 %v546_v51, %v8812_v43 }
 0x155   : > { %v875_v2 = vmul.f32 0.1, %v507_v52  ;;  %v511_v4 = vadd.f32 %v510_v59, %v8812_v43  ;;  %v512_v6 = vpop.f32.mrb[15].mxu0  ;;  %2079 = vmatprep.mubr.bf16.mxu1 %v1176_v54  ;;  %2418 = vmatprep.mubr.bf16.mxu0 %v1176_v54  ;;  %vm795_vm8 = vcmp.ge.f32.partialorder %v507_v52, 0.0  ;;  %v552_v17 = vpop.f32.mrb[15].mxu1  ;;  %v975_v23 = vsel %vm815_vm15, %v8854_v45, %v8872_v5 }
 0x156   : > { %v876_v14 = vmul.f32 0.1, %v509_v57  ;;  %v513_v47 = vadd.f32 %v512_v6, %v8815_v44  ;;  %2080 = vmatmul.mubr.bf16.gmra.mrb[56].mxu1 %v1175_v46  ;;  %2419 = vmatmul.mubr.bf16.gmra.mrb[40].mxu0 %v1175_v46  ;;  %vm796_vm9 = vcmp.ge.f32.partialorder %v509_v57, 0.0  ;;  %v980_v27 = vsel %vm820_vm0, %v8865_v58, %v8900_v31  ;;  %v7904_v34 = vld [vmem:[#allocation2 + $0x2c8] ss:$16 sps:$4 sm:$0xff]  }
 0x157   : > { %vm800_vm10 = vcmp.ge.f32.partialorder %v511_v4, 0.0  ;;  %v880_v3 = vmul.f32 0.1, %v511_v4  ;;  %2149 = vmatpush1.bf16.msra.mxu1 %v7889_v30  ;;  %2488 = vmatpush1.bf16.msra.mxu0 %v7892_v35  ;;  %v955_v10 = vsel %vm795_vm8, %v507_v52, %v875_v2  ;;  %v7901_v30 = vld [vmem:[#allocation2 + $0x2c0] ss:$16 sps:$4 sm:$0xff]   ;;  %v549_v35 = vadd.f32 %v548_v56, %v8815_v44 }
 0x158   : > { %vm801_vm11 = vcmp.ge.f32.partialorder %v513_v47, 0.0  ;;  %v881_v19 = vmul.f32 0.1, %v513_v47  ;;  %2150 = vmatprep.subr.bf16.mxu1 %v7897_v48  ;;  %2489 = vmatprep.subr.bf16.mxu0 %v7900_v49  ;;  %v956_v28 = vsel %vm796_vm9, %v509_v57, %v876_v14  ;;  %vm830_vm12 = vcmp.ge.f32.partialorder %v8929_v11, 0.0  ;;  %v7909_v36 = vld [vmem:[#allocation2 + $0x2e4] ss:$16 sps:$4 sm:$0xff]  }
 0x159   : > { %v960_v25 = vsel %vm800_vm10, %v511_v4, %v880_v3  ;;  %v910_v45 = vmul.f32 0.1, %v8929_v11  ;;  %v8957_v5 = vpack.c.bf16 %v980_v27, %v975_v23  ;;  %vm835_vm13 = vcmp.ge.f32.partialorder %v8940_v24, 0.0  ;;  %v7907_v53 = vld [vmem:[#allocation2 + $0x2e0] ss:$16 sps:$4 sm:$0xff]  }
 0x15a   : > { %v961_v29 = vsel %vm801_vm11, %v513_v47, %v881_v19  ;;  %v1180_v33 = vpack.c.bf16 %v960_v25, %v955_v10  ;;  %v589_v37 = vpop.f32.mrb[16].mxu1  ;;  %v8953_v39 = vpop.f32.mrb[16].mxu0  ;;  %v8963_v46 = vadd.f32 %v550_v1, %v8812_v43  ;;  %v553_v48 = vadd.f32 %v552_v17, %v8815_v44  ;;  %v7912_v54 = vld [vmem:[#allocation2 + $0x2ec] ss:$16 sps:$4 sm:$0xff]   ;;  %v7910_v1 = vld [vmem:[#allocation2 + $0x2e8] ss:$16 sps:$4 sm:$0xff]  }
 0x15b   : > { %2151 = vmatpush1.bf16.msra.mxu1 %v7895_v7  ;;  %2490 = vmatpush1.bf16.msra.mxu0 %v7898_v9  ;;  %v1181_v40 = vpack.c.bf16 %v961_v29, %v956_v28  ;;  %v591_v58 = vpop.f32.mrb[17].mxu1  ;;  %v8959_v31 = vpop.f32.mrb[17].mxu0  ;;  %v986_v49 = vsel %vm826_vm5, %v8903_v32, %v906_v62  ;;  %v915_v56 = vmul.f32 0.1, %v8940_v24  ;;  %v991_v43 = vsel %vm831_vm7, %v8911_v50, %v911_v20  ;;  %v7915_v4 = vld [vmem:[#allocation2 + $0x304] ss:$16 sps:$4 sm:$0xff]  }
 0x15c   : > { %2152 = vmatprep.subr.bf16.mxu1 %v7903_v8  ;;  %2491 = vmatprep.subr.bf16.mxu0 %v7906_v13  ;;  %v593_v51 = vpop.f32.mrb[18].mxu1  ;;  %v8969_v52 = vpop.f32.mrb[18].mxu0  ;;  %v590_v57 = vadd.f32 %v589_v37, %v8834_v15  ;;  %v8977_v44 = vadd.f32 %v591_v58, %v8838_v21  ;;  %vm836_vm14 = vcmp.ge.f32.partialorder %v549_v35, 0.0  ;;  %v916_v62 = vmul.f32 0.1, %v549_v35 }
 0x15d   : > { %2089 = vmatprep.mubr.bf16.mxu1 %v1181_v40  ;;  %2428 = vmatprep.mubr.bf16.mxu0 %v1181_v40  ;;  %v595_v59 = vpop.f32.mrb[19].mxu1  ;;  %v8979_v32 = vpop.f32.mrb[19].mxu0  ;;  %vm840_vm15 = vcmp.ge.f32.partialorder %v8963_v46, 0.0  ;;  %v921_v63 = vmul.f32 0.1, %v553_v48  ;;  %vm841_vm0 = vcmp.ge.f32.partialorder %v553_v48, 0.0  ;;  %v8982_v50 = vpack.c.bf16 %v991_v43, %v986_v49 }
 0x15e   : > { %2090 = vmatmul.mubr.bf16.gmra.mrb[60].mxu1 %v1180_v33  ;;  %2429 = vmatmul.mubr.bf16.gmra.mrb[44].mxu0 %v1180_v33  ;;  %vm767_vm1 = vcmp.ge.f32.partialorder %v590_v57, 0.0  ;;  %v847_v2 = vmul.f32 0.1, %v590_v57  ;;  %v7918_v6 = vld [vmem:[#allocation2 + $0x30c] ss:$16 sps:$4 sm:$0xff]   ;;  %v985_v9 = vsel %vm825_vm6, %v8897_v26, %v8916_v55  ;;  %v990_v14 = vsel %vm830_vm12, %v8929_v11, %v910_v45 }
 0x15f   : > { %2153 = vmatpush1.bf16.msra.mxu1 %v7901_v30  ;;  %2492 = vmatpush1.bf16.msra.mxu0 %v7904_v34  ;;  %v920_v7 = vmul.f32 0.1, %v8963_v46  ;;  %v594_v47 = vadd.f32 %v593_v51, %v8834_v15  ;;  %v7913_v8 = vld [vmem:[#allocation2 + $0x300] ss:$16 sps:$4 sm:$0xff]   ;;  %v7916_v16 = vld [vmem:[#allocation2 + $0x308] ss:$16 sps:$4 sm:$0xff]   ;;  %v8996_v17 = vpack.c.bf16 %v990_v14, %v985_v9  ;;  %v596_v3 = vadd.f32 %v595_v59, %v8838_v21 }
 0x160   : > { %2099 = vmatprep.mubr.bf16.mxu1 %v8882_v12  ;;  %2438 = vmatprep.mubr.bf16.mxu0 %v8882_v12  ;;  %v927_v12 = vsel %vm767_vm1, %v590_v57, %v847_v2  ;;  %vm768_vm2 = vcmp.ge.f32.partialorder %v8977_v44, 0.0  ;;  %v996_v26 = vsel %vm836_vm14, %v549_v35, %v916_v62  ;;  %v1001_v55 = vsel %vm841_vm0, %v553_v48, %v921_v63  ;;  %v7921_v20 = vld [vmem:[#allocation2 + $0x324] ss:$16 sps:$4 sm:$0xff]   ;;  %v7924_v30 = vld [vmem:[#allocation2 + $0x32c] ss:$16 sps:$4 sm:$0xff]  }
 0x161   : > { %2154 = vmatprep.subr.bf16.mxu1 %v7909_v36  ;;  %2493 = vmatprep.subr.bf16.mxu0 %v7912_v54  ;;  %vm772_vm3 = vcmp.ge.f32.partialorder %v594_v47, 0.0  ;;  %v852_v13 = vmul.f32 0.1, %v594_v47  ;;  %v848_v10 = vmul.f32 0.1, %v8977_v44  ;;  %v9004_v23 = vpack.c.bf16 %v1001_v55, %v996_v26 }
 0x162   : > { %v599_v11 = vpop.f32.mrb[20].mxu1  ;;  %v9001_v19 = vpop.f32.mrb[20].mxu0  ;;  %v853_v25 = vmul.f32 0.1, %v596_v3  ;;  %vm773_vm4 = vcmp.ge.f32.partialorder %v596_v3, 0.0  ;;  %v995_v35 = vsel %vm835_vm13, %v8940_v24, %v915_v56  ;;  %v1000_v36 = vsel %vm840_vm15, %v8963_v46, %v920_v7 }
 0x163   : > { %2155 = vmatpush1.bf16.msra.mxu1 %v7907_v53  ;;  %2494 = vmatpush1.bf16.msra.mxu0 %v7910_v1  ;;  %v600_v27 = vadd.f32 %v599_v11, %v8834_v15  ;;  %v601_v28 = vpop.f32.mrb[21].mxu1  ;;  %v9007_v29 = vpop.f32.mrb[21].mxu0  ;;  %v932_v33 = vsel %vm772_vm3, %v594_v47, %v852_v13  ;;  %v9025_v51 = vpack.c.bf16 %v1000_v36, %v995_v35  ;;  %v7919_v54 = vld [vmem:[#allocation2 + $0x320] ss:$16 sps:$4 sm:$0xff]   ;;  %v7922_v56 = vld [vmem:[#allocation2 + $0x328] ss:$16 sps:$4 sm:$0xff]  }
 0x164   : > { %2156 = vmatprep.subr.bf16.mxu1 %v7915_v4  ;;  %2495 = vmatprep.subr.bf16.mxu0 %v7918_v6  ;;  %v602_v34 = vadd.f32 %v601_v28, %v8838_v21  ;;  %v603_v37 = vpop.f32.mrb[22].mxu1  ;;  %v9014_v40 = vpop.f32.mrb[22].mxu0  ;;  %v9016_v45 = vpack.c.bf16 %v932_v33, %v927_v12  ;;  %v7927_v43 = vld [vmem:[#allocation2 + $0x344] ss:$16 sps:$4 sm:$0xff]   ;;  %v928_v57 = vsel %vm768_vm2, %v8977_v44, %v848_v10  ;;  %v7925_v14 = vld [vmem:[#allocation2 + $0x340] ss:$16 sps:$4 sm:$0xff]  }
 0x165   : > { %vm777_vm5 = vcmp.ge.f32.partialorder %v600_v27, 0.0  ;;  %v857_v58 = vmul.f32 0.1, %v600_v27  ;;  %v605_v48 = vpop.f32.mrb[23].mxu1  ;;  %v9021_v49 = vpop.f32.mrb[23].mxu0  ;;  %v604_v53 = vadd.f32 %v603_v37, %v8834_v15  ;;  %v933_v59 = vsel %vm773_vm4, %v596_v3, %v853_v25 }
 0x166   : > { %2100 = vmatmul.mubr.bf16.gmra.mrb[64].mxu1 %v8907_v38  ;;  %2439 = vmatmul.mubr.bf16.gmra.mrb[48].mxu0 %v8907_v38  ;;  %vm778_vm6 = vcmp.ge.f32.partialorder %v602_v34, 0.0  ;;  %v858_v24 = vmul.f32 0.1, %v602_v34  ;;  %v606_v46 = vadd.f32 %v605_v48, %v8838_v21  ;;  %v7930_v38 = vld [vmem:[#allocation2 + $0x34c] ss:$16 sps:$4 sm:$0xff]   ;;  %v9035_v63 = vpack.c.bf16 %v933_v59, %v928_v57 }
 0x167   : > { %2157 = vmatpush1.bf16.msra.mxu1 %v7913_v8  ;;  %2496 = vmatpush1.bf16.msra.mxu0 %v7916_v16  ;;  %vm782_vm7 = vcmp.ge.f32.partialorder %v604_v53, 0.0  ;;  %v862_v62 = vmul.f32 0.1, %v604_v53  ;;  %v937_v4 = vsel %vm777_vm5, %v600_v27, %v857_v58  ;;  %v9041_v7 = vadd.f32 %v8953_v39, %v8840_v22  ;;  %v7928_v47 = vld [vmem:[#allocation2 + $0x348] ss:$16 sps:$4 sm:$0xff]  }
 0x168   : > { %2109 = vmatprep.mubr.bf16.mxu1 %v8936_v18  ;;  %2448 = vmatprep.mubr.bf16.mxu0 %v8936_v18  ;;  %vm783_vm8 = vcmp.ge.f32.partialorder %v606_v46, 0.0  ;;  %v863_v1 = vmul.f32 0.1, %v606_v46  ;;  %v938_v2 = vsel %vm778_vm6, %v602_v34, %v858_v24  ;;  %v703_v18 = vadd.f32 %v8959_v31, %v8840_v22  ;;  %v7933_v39 = vld [vmem:[#allocation2 + $0x364] ss:$16 sps:$4 sm:$0xff]  }
 0x169   : > { %2158 = vmatprep.subr.bf16.mxu1 %v7921_v20  ;;  %2497 = vmatprep.subr.bf16.mxu0 %v7924_v30  ;;  %v942_v6 = vsel %vm782_vm7, %v604_v53, %v862_v62  ;;  %v7936_v26 = vld [vmem:[#allocation2 + $0x36c] ss:$16 sps:$4 sm:$0xff]   ;;  %v706_v20 = vadd.f32 %v8979_v32, %v8840_v22  ;;  %v7931_v25 = vld [vmem:[#allocation2 + $0x360] ss:$16 sps:$4 sm:$0xff]   ;;  %v7934_v27 = vld [vmem:[#allocation2 + $0x368] ss:$16 sps:$4 sm:$0xff]  }
 0x16a   : > { %v609_v44 = vpop.f32.mrb[24].mxu1  ;;  %v9045_v9 = vpop.f32.mrb[24].mxu0  ;;  %v943_v12 = vsel %vm783_vm8, %v606_v46, %v863_v1  ;;  %v9048_v3 = vpack.c.bf16 %v942_v6, %v937_v4  ;;  %v849_v34 = vmul.f32 0.1, %v703_v18  ;;  %vm769_vm11 = vcmp.ge.f32.partialorder %v703_v18, 0.0 }
 0x16b   : > { %2159 = vmatpush1.bf16.msra.mxu1 %v7919_v54  ;;  %2498 = vmatpush1.bf16.msra.mxu0 %v7922_v56  ;;  %v610_v8 = vadd.f32 %v609_v44, %v8834_v15  ;;  %v611_v16 = vpop.f32.mrb[25].mxu1  ;;  %v9050_v13 = vpop.f32.mrb[25].mxu0  ;;  %v9053_v11 = vpack.c.bf16 %v943_v12, %v938_v2  ;;  %v7939_v58 = vld [vmem:[#allocation2 + $0x384] ss:$16 sps:$4 sm:$0xff]   ;;  %v7942_v24 = vld [vmem:[#allocation2 + $0x38c] ss:$16 sps:$4 sm:$0xff]   ;;  %v9071_v54 = vadd.f32 %v8969_v52, %v8840_v22 }
 0x16c   : > { %2160 = vmatprep.subr.bf16.mxu1 %v7927_v43  ;;  %2499 = vmatprep.subr.bf16.mxu0 %v7930_v38  ;;  %v612_v31 = vadd.f32 %v611_v16, %v8838_v21  ;;  %v613_v55 = vpop.f32.mrb[26].mxu1  ;;  %v9057_v10 = vpop.f32.mrb[26].mxu0  ;;  %v7937_v56 = vld [vmem:[#allocation2 + $0x380] ss:$16 sps:$4 sm:$0xff]   ;;  %v929_v46 = vsel %vm769_vm11, %v703_v18, %v849_v34  ;;  %vm774_vm14 = vcmp.ge.f32.partialorder %v706_v20, 0.0  ;;  %vm779_vm15 = vcmp.ge.f32.partialorder %v9041_v7, 0.0 }
 0x16d   : > { %vm787_vm9 = vcmp.ge.f32.partialorder %v610_v8, 0.0  ;;  %v867_v28 = vmul.f32 0.1, %v610_v8  ;;  %v614_v30 = vadd.f32 %v613_v55, %v8834_v15  ;;  %v615_v33 = vpop.f32.mrb[27].mxu1  ;;  %v9063_v32 = vpop.f32.mrb[27].mxu0  ;;  %v9079_v1 = vadd.f32 %v9007_v29, %v8840_v22 }
 0x16e   : > { %2110 = vmatmul.mubr.bf16.gmra.mrb[68].mxu1 %v8957_v5  ;;  %2449 = vmatmul.mubr.bf16.gmra.mrb[52].mxu0 %v8957_v5  ;;  %vm788_vm10 = vcmp.ge.f32.partialorder %v612_v31, 0.0  ;;  %v868_v35 = vmul.f32 0.1, %v612_v31  ;;  %v616_v37 = vadd.f32 %v615_v33, %v8838_v21  ;;  %v854_v57 = vmul.f32 0.1, %v706_v20 }
 0x16f   : > { %2161 = vmatpush1.bf16.msra.mxu1 %v7925_v14  ;;  %2500 = vmatpush1.bf16.msra.mxu0 %v7928_v47  ;;  %vm792_vm12 = vcmp.ge.f32.partialorder %v614_v30, 0.0  ;;  %v872_v36 = vmul.f32 0.1, %v614_v30  ;;  %v947_v48 = vsel %vm787_vm9, %v610_v8, %v867_v28  ;;  %v7940_v59 = vld [vmem:[#allocation2 + $0x388] ss:$16 sps:$4 sm:$0xff]   ;;  %vm784_vm0 = vcmp.ge.f32.partialorder %v9071_v54, 0.0 }
 0x170   : > { %2119 = vmatprep.mubr.bf16.mxu1 %v8982_v50  ;;  %2458 = vmatprep.mubr.bf16.mxu0 %v8982_v50  ;;  %vm793_vm13 = vcmp.ge.f32.partialorder %v616_v37, 0.0  ;;  %v873_v5 = vmul.f32 0.1, %v616_v37  ;;  %v948_v53 = vsel %vm788_vm10, %v612_v31, %v868_v35  ;;  %v7945_v2 = vld [vmem:[#allocation2 + $0x3a4] ss:$16 sps:$4 sm:$0xff]   ;;  %v934_v47 = vsel %vm774_vm14, %v706_v20, %v854_v57 }
 0x171   : > { %2162 = vmatprep.subr.bf16.mxu1 %v7933_v39  ;;  %2501 = vmatprep.subr.bf16.mxu0 %v7936_v26  ;;  %v952_v43 = vsel %vm792_vm12, %v614_v30, %v872_v36  ;;  %v7948_v4 = vld [vmem:[#allocation2 + $0x3ac] ss:$16 sps:$4 sm:$0xff]   ;;  %v859_v14 = vmul.f32 0.1, %v9041_v7  ;;  %v864_v12 = vmul.f32 0.1, %v9071_v54  ;;  %v9093_v39 = vpack.c.bf16 %v934_v47, %v929_v46 }
 0x172   : > { %v619_v38 = vpop.f32.mrb[28].mxu1  ;;  %v953_v50 = vsel %vm793_vm13, %v616_v37, %v873_v5  ;;  %v9074_v62 = vpack.c.bf16 %v952_v43, %v947_v48  ;;  %v9081_v52 = vpop.f32.mrb[28].mxu0  ;;  %v7943_v31 = vld [vmem:[#allocation2 + $0x3a0] ss:$16 sps:$4 sm:$0xff]   ;;  %v7946_v55 = vld [vmem:[#allocation2 + $0x3a8] ss:$16 sps:$4 sm:$0xff]   ;;  %v9100_v28 = vadd.f32 %v9001_v19, %v8840_v22  ;;  %v9107_v35 = vadd.f32 %v9014_v40, %v8840_v22 }
 0x173   : > { %2163 = vmatpush1.bf16.msra.mxu1 %v7931_v25  ;;  %2502 = vmatpush1.bf16.msra.mxu0 %v7934_v27  ;;  %v620_v44 = vadd.f32 %v619_v38, %v8834_v15  ;;  %v621_v6 = vpop.f32.mrb[29].mxu1  ;;  %v9084_v18 = vpack.c.bf16 %v953_v50, %v948_v53  ;;  %v9088_v8 = vpop.f32.mrb[29].mxu0  ;;  %v7951_v30 = vld [vmem:[#allocation2 + $0x3c4] ss:$16 sps:$4 sm:$0xff]   ;;  %v869_v36 = vmul.f32 0.1, %v9079_v1  ;;  %v939_v53 = vsel %vm779_vm15, %v9041_v7, %v859_v14 }
 0x174   : > { %2164 = vmatprep.subr.bf16.mxu1 %v7939_v58  ;;  %2503 = vmatprep.subr.bf16.mxu0 %v7942_v24  ;;  %v622_v29 = vadd.f32 %v621_v6, %v8838_v21  ;;  %v623_v16 = vpop.f32.mrb[30].mxu1  ;;  %v9095_v26 = vpop.f32.mrb[30].mxu0  ;;  %v722_v24 = vadd.f32 %v9021_v49, %v8840_v22  ;;  %vm789_vm5 = vcmp.ge.f32.partialorder %v9079_v1, 0.0  ;;  %v7949_v49 = vld [vmem:[#allocation2 + $0x3c0] ss:$16 sps:$4 sm:$0xff]   ;;  %vm799_vm7 = vcmp.ge.f32.partialorder %v9100_v28, 0.0 }
 0x175   : > { %vm797_vm1 = vcmp.ge.f32.partialorder %v620_v44, 0.0  ;;  %v877_v25 = vmul.f32 0.1, %v620_v44  ;;  %v624_v20 = vadd.f32 %v623_v16, %v8834_v15  ;;  %v625_v27 = vpop.f32.mrb[31].mxu1  ;;  %v9109_v37 = vpop.f32.mrb[31].mxu0  ;;  %v949_v14 = vsel %vm789_vm5, %v9079_v1, %v869_v36 }
 0x176   : > { %2120 = vmatmul.mubr.bf16.gmra.mrb[72].mxu1 %v8996_v17  ;;  %2459 = vmatmul.mubr.bf16.gmra.mrb[56].mxu0 %v8996_v17  ;;  %vm798_vm2 = vcmp.ge.f32.partialorder %v622_v29, 0.0  ;;  %v878_v33 = vmul.f32 0.1, %v622_v29  ;;  %v626_v34 = vadd.f32 %v625_v27, %v8838_v21  ;;  %v7954_v17 = vld [vmem:[#allocation2 + $0x3cc] ss:$16 sps:$4 sm:$0xff]   ;;  %vm794_vm6 = vcmp.ge.f32.partialorder %v722_v24, 0.0 }
 0x177   : > { %2165 = vmatpush1.bf16.msra.mxu1 %v7937_v56  ;;  %2504 = vmatpush1.bf16.msra.mxu0 %v7940_v59  ;;  %vm802_vm3 = vcmp.ge.f32.partialorder %v624_v20, 0.0  ;;  %v882_v19 = vmul.f32 0.1, %v624_v20  ;;  %v957_v58 = vsel %vm797_vm1, %v620_v44, %v877_v25  ;;  %v874_v57 = vmul.f32 0.1, %v722_v24 }
 0x178   : > { %2129 = vmatprep.mubr.bf16.mxu1 %v9004_v23  ;;  %2468 = vmatprep.mubr.bf16.mxu0 %v9004_v23  ;;  %vm803_vm4 = vcmp.ge.f32.partialorder %v626_v34, 0.0  ;;  %v883_v48 = vmul.f32 0.1, %v626_v34  ;;  %v958_v40 = vsel %vm798_vm2, %v622_v29, %v878_v33  ;;  %v944_v23 = vsel %vm784_vm0, %v9071_v54, %v864_v12  ;;  %v7952_v59 = vld [vmem:[#allocation2 + $0x3c8] ss:$16 sps:$4 sm:$0xff]  }
 0x179   : > { %2166 = vmatprep.subr.bf16.mxu1 %v7945_v2  ;;  %2505 = vmatprep.subr.bf16.mxu0 %v7948_v4  ;;  %v962_v5 = vsel %vm802_vm3, %v624_v20, %v882_v19  ;;  %v9130_v7 = vpack.c.bf16 %v944_v23, %v939_v53  ;;  %v7957_v54 = vld [vmem:[#allocation2 + $0x3e4] ss:$16 sps:$4 sm:$0xff]   ;;  %v879_v6 = vmul.f32 0.1, %v9100_v28  ;;  %v7955_v47 = vld [vmem:[#allocation2 + $0x3e0] ss:$16 sps:$4 sm:$0xff]   ;;  %v9145_v1 = vadd.f32 %v9045_v9, %v8840_v22 }
 0x17a   : > { %v629_v56 = vpop.f32.mrb[32].mxu1  ;;  %v963_v43 = vsel %vm803_vm4, %v626_v34, %v883_v48  ;;  %v9125_v46 = vpack.c.bf16 %v962_v5, %v957_v58  ;;  %v7960_v29 = vld [vmem:[#allocation2 + $0x3ec] ss:$16 sps:$4 sm:$0xff]   ;;  %v7958_v25 = vld [vmem:[#allocation2 + $0x3e8] ss:$16 sps:$4 sm:$0xff]   ;;  %vm804_vm11 = vcmp.ge.f32.partialorder %v9107_v35, 0.0  ;;  %v735_v48 = vadd.f32 %v9050_v13, %v8840_v22 }
 0x17b   : > { %2167 = vmatpush1.bf16.msra.mxu1 %v7943_v31  ;;  %2506 = vmatpush1.bf16.msra.mxu0 %v7946_v55  ;;  %v630_v38 = vadd.f32 %v629_v56, %v8834_v15  ;;  %v631_v50 = vpop.f32.mrb[33].mxu1  ;;  %v9128_v2 = vpack.c.bf16 %v963_v43, %v958_v40  ;;  %v954_v55 = vsel %vm794_vm6, %v722_v24, %v874_v57  ;;  %v7978_v58 = vld [vmem:[#allocation2 + $0x40c] ss:$16 sps:$4 sm:$0xff]   ;;  %v7961_v24 = vld [vmem:[#allocation2 + $0x400] ss:$16 sps:$4 sm:$0xff]   ;;  %vm819_vm13 = vcmp.ge.f32.partialorder %v9145_v1, 0.0 }
 0x17c   : > { %2168 = vmatprep.subr.bf16.mxu1 %v7951_v30  ;;  %2507 = vmatprep.subr.bf16.mxu0 %v7954_v17  ;;  %v632_v4 = vadd.f32 %v631_v50, %v8838_v21  ;;  %v633_v44 = vpop.f32.mrb[34].mxu1  ;;  %v7963_v30 = vld [vmem:[#allocation2 + $0x404] ss:$16 sps:$4 sm:$0xff]   ;;  %v9151_v36 = vpack.c.bf16 %v954_v55, %v949_v14  ;;  %v884_v17 = vmul.f32 0.1, %v9107_v35  ;;  %v9158_v40 = vadd.f32 %v9057_v10, %v8840_v22 }
 0x17d   : > { %vm807_vm8 = vcmp.ge.f32.partialorder %v630_v38, 0.0  ;;  %v887_v16 = vmul.f32 0.1, %v630_v38  ;;  %v634_v12 = vadd.f32 %v633_v44, %v8834_v15  ;;  %v635_v31 = vpop.f32.mrb[35].mxu1  ;;  %v9164_v23 = vmul.f32 0.1, %v9145_v1 }
 0x17e   : > { %2130 = vmatmul.mubr.bf16.gmra.mrb[76].mxu1 %v9025_v51  ;;  %2469 = vmatmul.mubr.bf16.gmra.mrb[60].mxu0 %v9025_v51  ;;  %vm808_vm9 = vcmp.ge.f32.partialorder %v632_v4, 0.0  ;;  %v888_v20 = vmul.f32 0.1, %v632_v4  ;;  %v636_v27 = vadd.f32 %v635_v31, %v8838_v21  ;;  %v738_v56 = vadd.f32 %v9063_v32, %v8840_v22  ;;  %v7966_v13 = vld [vmem:[#allocation2 + $0x424] ss:$16 sps:$4 sm:$0xff]  }
 0x17f   : > { %2169 = vmatpush1.bf16.msra.mxu1 %v7949_v49  ;;  %2508 = vmatpush1.bf16.msra.mxu0 %v7952_v59  ;;  %vm812_vm10 = vcmp.ge.f32.partialorder %v634_v12, 0.0  ;;  %v892_v33 = vmul.f32 0.1, %v634_v12  ;;  %v967_v34 = vsel %vm807_vm8, %v630_v38, %v887_v16  ;;  %v7976_v49 = vld [vmem:[#allocation2 + $0x408] ss:$16 sps:$4 sm:$0xff]   ;;  %vm809_vm14 = vcmp.ge.f32.partialorder %v735_v48, 0.0 }
 0x180   : > { %2172 = vmatprep.mubr.bf16.mxu1 %v9035_v63  ;;  %2511 = vmatprep.mubr.bf16.mxu0 %v9035_v63  ;;  %vm813_vm12 = vcmp.ge.f32.partialorder %v636_v27, 0.0  ;;  %v893_v51 = vmul.f32 0.1, %v636_v27  ;;  %v968_v19 = vsel %vm808_vm9, %v632_v4, %v888_v20  ;;  %v959_v59 = vsel %vm799_vm7, %v9100_v28, %v879_v6 }
 0x181   : > { %2170 = vmatprep.subr.bf16.mxu1 %v7957_v54  ;;  %2509 = vmatprep.subr.bf16.mxu0 %v7960_v29  ;;  %v972_v9 = vsel %vm812_vm10, %v634_v12, %v892_v33  ;;  %v889_v32 = vmul.f32 0.1, %v735_v48  ;;  %v9176_v54 = vmul.f32 0.1, %v9158_v40  ;;  %vm814_vm15 = vcmp.ge.f32.partialorder %v738_v56, 0.0 }
 0x182   : > { %v639_v63 = vpop.f32.mrb[36].mxu1  ;;  %v973_v5 = vsel %vm813_vm12, %v636_v27, %v893_v51  ;;  %v9160_v53 = vpack.c.bf16 %v972_v9, %v967_v34  ;;  %v7981_v29 = vld [vmem:[#allocation2 + $0x42c] ss:$16 sps:$4 sm:$0xff]   ;;  %vm824_vm2 = vcmp.ge.f32.partialorder %v9158_v40, 0.0  ;;  %v964_v16 = vsel %vm804_vm11, %v9107_v35, %v884_v17  ;;  %v7964_v12 = vld [vmem:[#allocation2 + $0x420] ss:$16 sps:$4 sm:$0xff]  }
 0x183   : > { %2171 = vmatpush1.bf16.msra.mxu1 %v7955_v47  ;;  %2510 = vmatpush1.bf16.msra.mxu0 %v7958_v25  ;;  %v640_v43 = vadd.f32 %v639_v63, %v8834_v15  ;;  %v641_v10 = vpop.f32.mrb[37].mxu1  ;;  %v9169_v57 = vpack.c.bf16 %v973_v5, %v968_v19  ;;  %v894_v47 = vmul.f32 0.1, %v738_v56  ;;  %v7969_v25 = vld [vmem:[#allocation2 + $0x444] ss:$16 sps:$4 sm:$0xff]   ;;  %v9194_v35 = vadd.f32 %v9081_v52, %v8840_v22 }
 0x184   : > { %2253 = vmatprep.subr.bf16.mxu1 %v7963_v30  ;;  %v642_v38 = vadd.f32 %v641_v10, %v8838_v21  ;;  %v643_v50 = vpop.f32.mrb[38].mxu1  ;;  %2592 = vmatprep.subr.bf16.mxu0 %v7978_v58  ;;  %v7979_v30 = vld [vmem:[#allocation2 + $0x428] ss:$16 sps:$4 sm:$0xff]   ;;  %v969_v34 = vsel %vm809_vm14, %v735_v48, %v889_v32  ;;  %v7967_v17 = vld [vmem:[#allocation2 + $0x440] ss:$16 sps:$4 sm:$0xff]  }
 0x185   : > { %vm817_vm0 = vcmp.ge.f32.partialorder %v640_v43, 0.0  ;;  %v897_v4 = vmul.f32 0.1, %v640_v43  ;;  %v644_v44 = vadd.f32 %v643_v50, %v8834_v15  ;;  %v645_v14 = vpop.f32.mrb[39].mxu1  ;;  %v974_v51 = vsel %vm814_vm15, %v738_v56, %v894_v47 }
 0x186   : > { %2173 = vmatmul.mubr.bf16.vlgmr.msra.gmra.mrb[48].mxu1 %v9016_v45  ;;  %2512 = vmatmul.mubr.bf16.vlgmr.msra.gmra.mrb[32].mxu0 %v9016_v45  ;;  %vm818_vm1 = vcmp.ge.f32.partialorder %v642_v38, 0.0  ;;  %v898_v28 = vmul.f32 0.1, %v642_v38  ;;  %v646_v6 = vadd.f32 %v645_v14, %v8838_v21  ;;  %v9188_v45 = vpack.c.bf16 %v964_v16, %v959_v59 }
 0x187   : > { %2254 = vmatpush1.bf16.msra.mxu1 %v7961_v24  ;;  %2182 = vmatprep.mubr.bf16.mxu1 %v9053_v11  ;;  %vm822_vm3 = vcmp.ge.f32.partialorder %v644_v44, 0.0  ;;  %v902_v31 = vmul.f32 0.1, %v644_v44  ;;  %v977_v55 = vsel %vm817_vm0, %v640_v43, %v897_v4  ;;  %vm839_vm5 = vcmp.ge.f32.partialorder %v9194_v35, 0.0  ;;  %v7972_v24 = vld [vmem:[#allocation2 + $0x464] ss:$16 sps:$4 sm:$0xff]  }
 0x188   : > { %2521 = vmatprep.mubr.bf16.mxu0 %v9053_v11  ;;  %2255 = vmatprep.subr.bf16.mxu1 %v7966_v13  ;;  %vm823_vm4 = vcmp.ge.f32.partialorder %v646_v6, 0.0  ;;  %v903_v20 = vmul.f32 0.1, %v646_v6  ;;  %v978_v27 = vsel %vm818_vm1, %v642_v38, %v898_v28  ;;  %v751_v11 = vadd.f32 %v9088_v8, %v8840_v22  ;;  %v7987_v43 = vld [vmem:[#allocation2 + $0x44c] ss:$16 sps:$4 sm:$0xff]  }
 0x189   : > { %2593 = vmatpush1.bf16.msra.mxu0 %v7976_v49  ;;  %v982_v33 = vsel %vm822_vm3, %v644_v44, %v902_v31  ;;  %v919_v52 = vmul.f32 0.1, %v9194_v35  ;;  %v9207_v56 = vpack.c.bf16 %v974_v51, %v969_v34  ;;  %v762_v49 = vadd.f32 %v9095_v26, %v8840_v22  ;;  %v7985_v4 = vld [vmem:[#allocation2 + $0x448] ss:$16 sps:$4 sm:$0xff]  }
 0x18a   : > { %v649_v19 = vpop.f32.mrb[40].mxu1  ;;  %v983_v58 = vsel %vm823_vm4, %v646_v6, %v903_v20  ;;  %2594 = vmatprep.subr.bf16.mxu0 %v7981_v29  ;;  %v9200_v9 = vpack.c.bf16 %v982_v33, %v977_v55  ;;  %vm829_vm6 = vcmp.ge.f32.partialorder %v751_v11, 0.0  ;;  %v909_v10 = vmul.f32 0.1, %v751_v11  ;;  %v7975_v6 = vld [vmem:[#allocation2 + $0x484] ss:$16 sps:$4 sm:$0xff]  }
 0x18b   : > { %2256 = vmatpush1.bf16.msra.mxu1 %v7964_v12  ;;  %v650_v63 = vadd.f32 %v649_v19, %v8834_v15  ;;  %v651_v48 = vpop.f32.mrb[41].mxu1  ;;  %v9205_v5 = vpack.c.bf16 %v983_v58, %v978_v27  ;;  %v754_v59 = vadd.f32 %v9109_v37, %v8840_v22  ;;  %v979_v44 = vsel %vm819_vm13, %v9145_v1, %v9164_v23  ;;  %v7990_v37 = vld [vmem:[#allocation2 + $0x46c] ss:$16 sps:$4 sm:$0xff]   ;;  %v7970_v1 = vld [vmem:[#allocation2 + $0x460] ss:$16 sps:$4 sm:$0xff]  }
 0x18c   : > { %2257 = vmatprep.subr.bf16.mxu1 %v7969_v25  ;;  %v652_v8 = vadd.f32 %v651_v48, %v8838_v21  ;;  %v653_v13 = vpop.f32.mrb[42].mxu1  ;;  %vm844_vm9 = vcmp.ge.f32.partialorder %v762_v49, 0.0  ;;  %v924_v28 = vmul.f32 0.1, %v762_v49  ;;  %v7988_v29 = vld [vmem:[#allocation2 + $0x468] ss:$16 sps:$4 sm:$0xff]   ;;  %v989_v31 = vsel %vm829_vm6, %v751_v11, %v909_v10 }
 0x18d   : > { %vm827_vm7 = vcmp.ge.f32.partialorder %v650_v63, 0.0  ;;  %v907_v38 = vmul.f32 0.1, %v650_v63  ;;  %v654_v50 = vadd.f32 %v653_v13, %v8834_v15  ;;  %v655_v32 = vpop.f32.mrb[43].mxu1  ;;  %2595 = vmatpush1.bf16.msra.mxu0 %v7979_v30  ;;  %vm834_vm12 = vcmp.ge.f32.partialorder %v754_v59, 0.0 }
 0x18e   : > { %2183 = vmatmul.mubr.bf16.gmra.mrb[52].mxu1 %v9048_v3  ;;  %2522 = vmatmul.mubr.bf16.gmra.mrb[36].mxu0 %v9048_v3  ;;  %vm828_vm8 = vcmp.ge.f32.partialorder %v652_v8, 0.0  ;;  %v908_v26 = vmul.f32 0.1, %v652_v8  ;;  %v656_v22 = vadd.f32 %v655_v32, %v8838_v21  ;;  %v914_v12 = vmul.f32 0.1, %v754_v59 }
 0x18f   : > { %2192 = vmatprep.mubr.bf16.mxu1 %v9084_v18  ;;  %2531 = vmatprep.mubr.bf16.mxu0 %v9084_v18  ;;  %vm832_vm10 = vcmp.ge.f32.partialorder %v654_v50, 0.0  ;;  %v912_v14 = vmul.f32 0.1, %v654_v50  ;;  %v987_v47 = vsel %vm827_vm7, %v650_v63, %v907_v38  ;;  %v984_v18 = vsel %vm824_vm2, %v9158_v40, %v9176_v54  ;;  %v7973_v33 = vld [vmem:[#allocation2 + $0x480] ss:$16 sps:$4 sm:$0xff]  }
 0x190   : > { %2258 = vmatpush1.bf16.msra.mxu1 %v7967_v17  ;;  %vm833_vm11 = vcmp.ge.f32.partialorder %v656_v22, 0.0  ;;  %v913_v23 = vmul.f32 0.1, %v656_v22  ;;  %2596 = vmatprep.subr.bf16.mxu0 %v7987_v43  ;;  %v988_v3 = vsel %vm828_vm8, %v652_v8, %v908_v26  ;;  %v9233_v27 = vpack.c.bf16 %v984_v18, %v979_v44  ;;  %v7984_v11 = vld [vmem:[#allocation2 + $0x4a4] ss:$16 sps:$4 sm:$0xff]  }
 0x191   : > { %2259 = vmatprep.subr.bf16.mxu1 %v7972_v24  ;;  %2597 = vmatpush1.bf16.msra.mxu0 %v7985_v4  ;;  %v992_v16 = vsel %vm832_vm10, %v654_v50, %v912_v14  ;;  %v999_v30 = vsel %vm839_vm5, %v9194_v35, %v919_v52  ;;  %v994_v40 = vsel %vm834_vm12, %v754_v59, %v914_v12  ;;  %v7996_v24 = vld [vmem:[#allocation2 + $0x48c] ss:$16 sps:$4 sm:$0xff]   ;;  %v7994_v13 = vld [vmem:[#allocation2 + $0x488] ss:$16 sps:$4 sm:$0xff]   ;;  %v7982_v38 = vld [vmem:[#allocation2 + $0x4a0] ss:$16 sps:$4 sm:$0xff]  }
 0x192   : > { %v659_v55 = vpop.f32.mrb[44].mxu1  ;;  %v993_v25 = vsel %vm833_vm11, %v656_v22, %v913_v23  ;;  %2598 = vmatprep.subr.bf16.mxu0 %v7990_v37  ;;  %v9231_v20 = vpack.c.bf16 %v992_v16, %v987_v47  ;;  %v1004_v54 = vsel %vm844_vm9, %v762_v49, %v924_v28  ;;  %v9244_v63 = vpack.c.bf16 %v994_v40, %v989_v31  ;;  %v7999_v49 = vld [vmem:[#allocation2 + $0x4ac] ss:$16 sps:$4 sm:$0xff]   ;;  %v7997_v4 = vld [vmem:[#allocation2 + $0x4a8] ss:$16 sps:$4 sm:$0xff]  }
 0x193   : > { %v660_v34 = vadd.f32 %v659_v55, %v8834_v15  ;;  %v661_v51 = vpop.f32.mrb[45].mxu1  ;;  %v9239_v19 = vpack.c.bf16 %v993_v25, %v988_v3  ;;  %v9246_v48 = vpack.c.bf16 %v1004_v54, %v999_v30  ;;  %v8005_v37 = vld [vmem:[#allocation2 + $0x4cc] ss:$16 sps:$4 sm:$0xff]   ;;  %v8002_v14 = vld [vmem:[#allocation2 + $0x4e4] ss:$16 sps:$4 sm:$0xff]  }
 0x194   : > { %2260 = vmatpush1.bf16.msra.mxu1 %v7970_v1  ;;  %v662_v58 = vadd.f32 %v661_v51, %v8838_v21  ;;  %v663_v17 = vpop.f32.mrb[46].mxu1  ;;  %v8003_v47 = vld [vmem:[#allocation2 + $0x4c8] ss:$16 sps:$4 sm:$0xff]   ;;  %v8008_v28 = vld [vmem:[#allocation2 + $0x4ec] ss:$16 sps:$4 sm:$0xff]  }
 0x195   : > { %2261 = vmatprep.subr.bf16.mxu1 %v7975_v6  ;;  %vm837_vm13 = vcmp.ge.f32.partialorder %v660_v34, 0.0  ;;  %v917_v35 = vmul.f32 0.1, %v660_v34  ;;  %v664_v52 = vadd.f32 %v663_v17, %v8834_v15  ;;  %v665_v8 = vpop.f32.mrb[47].mxu1  ;;  %2599 = vmatpush1.bf16.msra.mxu0 %v7988_v29  ;;  %v8000_v1 = vld [vmem:[#allocation2 + $0x4e0] ss:$16 sps:$4 sm:$0xff]  }
 0x196   : > { %2193 = vmatmul.mubr.bf16.gmra.mrb[56].mxu1 %v9074_v62  ;;  %2532 = vmatmul.mubr.bf16.gmra.mrb[40].mxu0 %v9074_v62  ;;  %vm838_vm14 = vcmp.ge.f32.partialorder %v662_v58, 0.0  ;;  %v918_v43 = vmul.f32 0.1, %v662_v58  ;;  %v666_v10 = vadd.f32 %v665_v8, %v8838_v21  ;;  %v7993_v62 = vld [vmem:[#allocation2 + $0x4c4] ss:$16 sps:$4 sm:$0xff]  }
 0x197   : > { %2202 = vmatprep.mubr.bf16.mxu1 %v9128_v2  ;;  %2541 = vmatprep.mubr.bf16.mxu0 %v9128_v2  ;;  %vm842_vm15 = vcmp.ge.f32.partialorder %v664_v52, 0.0  ;;  %v922_v59 = vmul.f32 0.1, %v664_v52  ;;  %v997_v15 = vsel %vm837_vm13, %v660_v34, %v917_v35  ;;  %v7991_v2 = vld [vmem:[#allocation2 + $0x4c0] ss:$16 sps:$4 sm:$0xff]  }
 0x198   : > { %2262 = vmatpush1.bf16.msra.mxu1 %v7973_v33  ;;  %vm843_vm0 = vcmp.ge.f32.partialorder %v666_v10, 0.0  ;;  %v923_v50 = vmul.f32 0.1, %v666_v10  ;;  %2600 = vmatprep.subr.bf16.mxu0 %v7996_v24  ;;  %v998_v32 = vsel %vm838_vm14, %v662_v58, %v918_v43  ;;  %v8006_v23 = vld [vmem:[#allocation2 + $0x4e8] ss:$16 sps:$4 sm:$0xff]  }
 0x199   : > { %2263 = vmatprep.subr.bf16.mxu1 %v7984_v11  ;;  %2601 = vmatpush1.bf16.msra.mxu0 %v7994_v13  ;;  %v1002_v21 = vsel %vm842_vm15, %v664_v52, %v922_v59  ;;  %v8011_v3 = vld [vmem:[#allocation4 + $0x4] ss:$8 sps:$4 sm:$0xff]   ;;  %v8020_v6 = vld [vmem:[#allocation4 + $0x34] ss:$8 sps:$4 sm:$0xff]   ;;  %v8021_v16 = vld [vmem:[#allocation4 + $0x40] ss:$8 sps:$4 sm:$0xff]  }
 0x19a   : > { %v1003_v44 = vsel %vm843_vm0, %v666_v10, %v923_v50  ;;  %2602 = vmatprep.subr.bf16.mxu0 %v7999_v49  ;;  %v1202_v26 = vpack.c.bf16 %v1002_v21, %v997_v15  ;;  %v8023_v29 = vld [vmem:[#allocation4 + $0x44] ss:$8 sps:$4 sm:$0xff]   ;;  %v8026_v12 = vld [vmem:[#allocation4 + $0x54] ss:$8 sps:$4 sm:$0xff]   ;;  %v8027_v31 = vld [vmem:[#allocation4 + $0x60] ss:$8 sps:$4 sm:$0xff]  }
 0x19b   : > { %v1203_v22 = vpack.c.bf16 %v1003_v44, %v998_v32  ;;  %v8029_v18 = vld [vmem:[#allocation4 + $0x64] ss:$8 sps:$4 sm:$0xff]   ;;  %v8032_v55 = vld [vmem:[#allocation4 + $0x74] ss:$8 sps:$4 sm:$0xff]   ;;  %v8039_v34 = vld [vmem:[#allocation4 + $0xa0] ss:$8 sps:$4 sm:$0xff]  }
 0x19c   : > { %2264 = vmatpush1.bf16.msra.mxu1 %v7982_v38  ;;  %v8035_v25 = vld [vmem:[#allocation4 + $0x84] ss:$8 sps:$4 sm:$0xff]   ;;  %v8038_v30 = vld [vmem:[#allocation4 + $0x94] ss:$8 sps:$4 sm:$0xff]   ;;  %v8045_v40 = vld [vmem:[#allocation4 + $0xc0] ss:$8 sps:$4 sm:$0xff]  }
 0x19d   : > { %2265 = vmatprep.subr.bf16.mxu1 %v7993_v62  ;;  %2603 = vmatpush1.bf16.msra.mxu0 %v7997_v4  ;;  %v8041_v33 = vld [vmem:[#allocation4 + $0xa4] ss:$8 sps:$4 sm:$0xff]   ;;  %v8044_v51 = vld [vmem:[#allocation4 + $0xb4] ss:$8 sps:$4 sm:$0xff]   ;;  %v8051_v58 = vld [vmem:[#allocation4 + $0xe0] ss:$8 sps:$4 sm:$0xff]  }
 0x19e   : > { %2203 = vmatmul.mubr.bf16.gmra.mrb[60].mxu1 %v9125_v46  ;;  %2542 = vmatmul.mubr.bf16.gmra.mrb[44].mxu0 %v9125_v46  ;;  %v8009_v46 = vld [vmem:[#allocation4] ss:$8 sps:$4 sm:$0xff]   ;;  %v8050_v54 = vld [vmem:[#allocation4 + $0xd4] ss:$8 sps:$4 sm:$0xff]   ;;  %v8053_v11 = vld [vmem:[#allocation4 + $0xe4] ss:$8 sps:$4 sm:$0xff]  }
 0x19f   : > { %2212 = vmatprep.mubr.bf16.mxu1 %v9169_v57  ;;  %2551 = vmatprep.mubr.bf16.mxu0 %v9169_v57  ;;  %v8012_v57 = vld [vmem:[#allocation4 + $0x10] ss:$8 sps:$4 sm:$0xff]   ;;  %v8056_v17 = vld [vmem:[#allocation4 + $0xf4] ss:$8 sps:$4 sm:$0xff]  }
 0x1a0   : > { %2266 = vmatpush1.bf16.msra.mxu1 %v7991_v2  ;;  %2604 = vmatprep.subr.bf16.mxu0 %v8005_v37  ;;  %v8054_v24 = vld [vmem:[#allocation4 + $0xf0] ss:$8 sps:$4 sm:$0xff]  }
 0x1a1   : > { %2267 = vmatprep.subr.bf16.mxu1 %v8002_v14  ;;  %2605 = vmatpush1.bf16.msra.mxu0 %v8003_v47 }
 0x1a2   : > { %2606 = vmatprep.subr.bf16.mxu0 %v8008_v28 }
 0x1a4   : > { %2268 = vmatpush1.bf16.msra.mxu1 %v8000_v1 }
 0x1a5   : > { %2607 = vmatpush1.bf16.msra.mxu0 %v8006_v23  ;;  %3325 = vmatprep.subr.bf16.mxu1 %v8011_v3 }
 0x1a6   : > { %2213 = vmatmul.mubr.bf16.gmra.mrb[64].mxu1 %v9160_v53  ;;  %2552 = vmatmul.mubr.bf16.gmra.mrb[48].mxu0 %v9160_v53  ;;  %v8014_v53 = vld [vmem:[#allocation4 + $0x14] ss:$8 sps:$4 sm:$0xff]  }
 0x1a7   : > { %2222 = vmatprep.mubr.bf16.mxu1 %v9205_v5  ;;  %2561 = vmatprep.mubr.bf16.mxu0 %v9205_v5  ;;  %v8015_v5 = vld [vmem:[#allocation4 + $0x20] ss:$8 sps:$4 sm:$0xff]  }
 0x1ae   : > { %2223 = vmatmul.mubr.bf16.gmra.mrb[68].mxu1 %v9200_v9  ;;  %2562 = vmatmul.mubr.bf16.gmra.mrb[52].mxu0 %v9200_v9  ;;  %v8017_v9 = vld [vmem:[#allocation4 + $0x24] ss:$8 sps:$4 sm:$0xff]  }
 0x1af   : > { %2232 = vmatprep.mubr.bf16.mxu1 %v9239_v19  ;;  %2571 = vmatprep.mubr.bf16.mxu0 %v9239_v19  ;;  %v8047_v19 = vld [vmem:[#allocation4 + $0xc4] ss:$8 sps:$4 sm:$0xff]  }
 0x1b6   : > { %2233 = vmatmul.mubr.bf16.gmra.mrb[72].mxu1 %v9231_v20  ;;  %2572 = vmatmul.mubr.bf16.gmra.mrb[56].mxu0 %v9231_v20  ;;  %v8033_v20 = vld [vmem:[#allocation4 + $0x80] ss:$8 sps:$4 sm:$0xff]  }
 0x1b7   : > { %2242 = vmatprep.mubr.bf16.mxu1 %v1203_v22  ;;  %2581 = vmatprep.mubr.bf16.mxu0 %v1203_v22 }
 0x1be   : > { %2243 = vmatmul.mubr.bf16.gmra.mrb[76].mxu1 %v1202_v26  ;;  %2582 = vmatmul.mubr.bf16.gmra.mrb[60].mxu0 %v1202_v26 }
 0x1bf   : > { %2285 = vmatprep.mubr.bf16.mxu1 %v8534_v0  ;;  %2624 = vmatprep.mubr.bf16.mxu0 %v8534_v0 }
 0x1c6   : > { %2286 = vmatmul.mubr.bf16.vlgmr.msra.gmra.mrb[48].mxu1 %v9093_v39  ;;  %2625 = vmatmul.mubr.bf16.vlgmr.msra.gmra.mrb[32].mxu0 %v9093_v39  ;;  %v8018_v39 = vld [vmem:[#allocation4 + $0x30] ss:$8 sps:$4 sm:$0xff]  }
 0x1c7   : > { %2295 = vmatprep.mubr.bf16.mxu1 %v8534_v0  ;;  %2634 = vmatprep.mubr.bf16.mxu0 %v8534_v0 }
 0x1c8   : > { %3326 = vmatpush1.bf16.msra.mxu1 %v8009_v46 }
 0x1c9   : > { %3327 = vmatprep.subr.bf16.mxu1 %v8014_v53 }
 0x1cc   : > { %3328 = vmatpush1.bf16.msra.mxu1 %v8012_v57 }
 0x1cd   : > { %3329 = vmatprep.subr.bf16.mxu1 %v8017_v9 }
 0x1ce   : > { %2296 = vmatmul.mubr.bf16.gmra.mrb[52].mxu1 %v9130_v7  ;;  %2635 = vmatmul.mubr.bf16.gmra.mrb[36].mxu0 %v9130_v7  ;;  %v8024_v7 = vld [vmem:[#allocation4 + $0x50] ss:$8 sps:$4 sm:$0xff]  }
 0x1cf   : > { %2305 = vmatprep.mubr.bf16.mxu1 %v8534_v0  ;;  %2644 = vmatprep.mubr.bf16.mxu0 %v8534_v0 }
 0x1d0   : > { %3330 = vmatpush1.bf16.msra.mxu1 %v8015_v5 }
 0x1d1   : > { %3331 = vmatprep.subr.bf16.mxu1 %v8020_v6 }
 0x1d4   : > { %3332 = vmatpush1.bf16.msra.mxu1 %v8018_v39 }
 0x1d5   : > { %3333 = vmatprep.subr.bf16.mxu1 %v8023_v29 }
 0x1d6   : > { %2306 = vmatmul.mubr.bf16.gmra.mrb[56].mxu1 %v9151_v36  ;;  %2645 = vmatmul.mubr.bf16.gmra.mrb[40].mxu0 %v9151_v36  ;;  %v8030_v36 = vld [vmem:[#allocation4 + $0x70] ss:$8 sps:$4 sm:$0xff]  }
 0x1d7   : > { %2315 = vmatprep.mubr.bf16.mxu1 %v8534_v0  ;;  %2654 = vmatprep.mubr.bf16.mxu0 %v8534_v0 }
 0x1d8   : > { %3334 = vmatpush1.bf16.msra.mxu1 %v8021_v16 }
 0x1d9   : > { %3335 = vmatprep.subr.bf16.mxu1 %v8026_v12 }
 0x1dc   : > { %3336 = vmatpush1.bf16.msra.mxu1 %v8024_v7 }
 0x1dd   : > { %3337 = vmatprep.subr.bf16.mxu1 %v8029_v18 }
 0x1de   : > { %2316 = vmatmul.mubr.bf16.gmra.mrb[60].mxu1 %v9188_v45  ;;  %2655 = vmatmul.mubr.bf16.gmra.mrb[44].mxu0 %v9188_v45  ;;  %v8036_v45 = vld [vmem:[#allocation4 + $0x90] ss:$8 sps:$4 sm:$0xff]  }
 0x1df   : > { %2325 = vmatprep.mubr.bf16.mxu1 %v8534_v0  ;;  %2664 = vmatprep.mubr.bf16.mxu0 %v8534_v0 }
 0x1e0   : > { %3338 = vmatpush1.bf16.msra.mxu1 %v8027_v31 }
 0x1e1   : > { %3339 = vmatprep.subr.bf16.mxu1 %v8032_v55  ;;  %v8105_v55 = vld [vmem:[#allocation6] ss:$56 sps:$4 sm:$0xff]  }
 0x1e4   : > { %3340 = vmatpush1.bf16.msra.mxu1 %v8030_v36  ;;  %v8107_v36 = vld [vmem:[#allocation6 + $0x4] ss:$56 sps:$4 sm:$0xff]  }
 0x1e5   : > { %3341 = vmatprep.subr.bf16.mxu1 %v8035_v25  ;;  %3771 = vmatprep.subr.bf16.mxu0 %v8107_v36 }
 0x1e6   : > { %2326 = vmatmul.mubr.bf16.gmra.mrb[64].mxu1 %v9207_v56  ;;  %2665 = vmatmul.mubr.bf16.gmra.mrb[48].mxu0 %v9207_v56  ;;  %v8042_v56 = vld [vmem:[#allocation4 + $0xb0] ss:$8 sps:$4 sm:$0xff]  }
 0x1e7   : > { %2335 = vmatprep.mubr.bf16.mxu1 %v8534_v0  ;;  %2674 = vmatprep.mubr.bf16.mxu0 %v8534_v0 }
 0x1e8   : > { %3342 = vmatpush1.bf16.msra.mxu1 %v8033_v20  ;;  %3772 = vmatpush1.bf16.msra.mxu0 %v8105_v55  ;;  %v8063_v55 = vld [vmem:[#allocation4 + $0x120] ss:$8 sps:$4 sm:$0xff]  }
 0x1e9   : > { %3343 = vmatprep.subr.bf16.mxu1 %v8038_v30 }
 0x1ec   : > { %3344 = vmatpush1.bf16.msra.mxu1 %v8036_v45 }
 0x1ed   : > { %3345 = vmatprep.subr.bf16.mxu1 %v8041_v33  ;;  %v8110_v33 = vld [vmem:[#allocation6 + $0x74] ss:$56 sps:$4 sm:$0xff]  }
 0x1ee   : > { %2336 = vmatmul.mubr.bf16.gmra.mrb[68].mxu1 %v9233_v27  ;;  %2675 = vmatmul.mubr.bf16.gmra.mrb[52].mxu0 %v9233_v27  ;;  %v8048_v27 = vld [vmem:[#allocation4 + $0xd0] ss:$8 sps:$4 sm:$0xff]  }
 0x1ef   : > { %2345 = vmatprep.mubr.bf16.mxu1 %v8534_v0  ;;  %2684 = vmatprep.mubr.bf16.mxu0 %v8534_v0 }
 0x1f0   : > { %3346 = vmatpush1.bf16.msra.mxu1 %v8039_v34  ;;  %3773 = vmatprep.subr.bf16.mxu0 %v8110_v33 }
 0x1f1   : > { %3347 = vmatprep.subr.bf16.mxu1 %v8044_v51 }
 0x1f4   : > { %3348 = vmatpush1.bf16.msra.mxu1 %v8042_v56  ;;  %v8057_v56 = vld [vmem:[#allocation4 + $0x100] ss:$8 sps:$4 sm:$0xff]  }
 0x1f5   : > { %3349 = vmatprep.subr.bf16.mxu1 %v8047_v19 }
 0x1f6   : > { %2346 = vmatmul.mubr.bf16.gmra.mrb[72].mxu1 %v9244_v63  ;;  %2685 = vmatmul.mubr.bf16.gmra.mrb[56].mxu0 %v9244_v63  ;;  %v8059_v63 = vld [vmem:[#allocation4 + $0x104] ss:$8 sps:$4 sm:$0xff]  }
 0x1f7   : > { %2355 = vmatprep.mubr.bf16.mxu1 %v8534_v0  ;;  %2694 = vmatprep.mubr.bf16.mxu0 %v8534_v0  ;;  %v1205_v0 = vld [vmem:[%s10598_s5 + $0x5] sm:$0xf] }
 0x1f8   : > { %3350 = vmatpush1.bf16.msra.mxu1 %v8045_v40  ;;  %v9305_v35 = vrot.slane %v1205_v0, %v8804_v41  ;;  %v9308_v52 = vrot.slane %v1205_v0, %v8822_v60  ;;  %v9314_v8 = vrot.slane %v1205_v0, %v8824_v61  ;;  %v8108_v40 = vld [vmem:[#allocation6 + $0x70] ss:$56 sps:$4 sm:$0xff]   ;;  %v8143_v41 = vld [vmem:[#allocation6 + $0x544] ss:$56 sps:$4 sm:$0xff]  }
 0x1f9   : > { %3351 = vmatprep.subr.bf16.mxu1 %v8050_v54  ;;  %3774 = vmatpush1.bf16.msra.mxu0 %v8108_v40 }
 0x1fc   : > { %3352 = vmatpush1.bf16.msra.mxu1 %v8048_v27 }
 0x1fd   : > { %3353 = vmatprep.subr.bf16.mxu1 %v8053_v11 }
 0x1fe   : > { %2356 = vmatmul.mubr.bf16.gmra.mrb[76].mxu1 %v9246_v48  ;;  %2695 = vmatmul.mubr.bf16.gmra.mrb[60].mxu0 %v9246_v48  ;;  %v9311_v48 = vrot.slane %v1205_v0, %v8809_v42  ;;  %v8138_v42 = vld [vmem:[#allocation6 + $0x4d0] ss:$56 sps:$4 sm:$0xff]  }
 0x200   : > { %3354 = vmatpush1.bf16.msra.mxu1 %v8051_v58 }
 0x201   : > { %3355 = vmatprep.subr.bf16.mxu1 %v8056_v17 }
 0x204   : > { %3356 = vmatpush1.bf16.msra.mxu1 %v8054_v24 }
 0x205   : > { %3438 = vmatprep.subr.bf16.mxu1 %v8059_v63 }
 0x299   : > { %v2287_v13 = vpop.f32.mrb[48].mxu1  ;;  %v2626_v43 = vpop.f32.mrb[32].mxu0 }
 0x29a   : > { %v7453_v10 = vadd.f32 %v2287_v13, %v9305_v35  ;;  %v7485_v49 = vadd.f32 %v2626_v43, %v9308_v52  ;;  %v2289_v59 = vpop.f32.mrb[49].mxu1  ;;  %v2628_v15 = vpop.f32.mrb[33].mxu0  ;;  %v8062_v13 = vld [vmem:[#allocation4 + $0x114] ss:$8 sps:$4 sm:$0xff]  }
 0x29b   : > { %v7454_v38 = vadd.f32 %v2289_v59, %v9311_v48  ;;  %v7486_v50 = vadd.f32 %v2628_v15, %v9314_v8  ;;  %v2291_v32 = vpop.f32.mrb[50].mxu1  ;;  %v2630_v62 = vpop.f32.mrb[34].mxu0  ;;  %v8111_v15 = vld [vmem:[#allocation6 + $0xe0] ss:$56 sps:$4 sm:$0xff]  }
 0x29c   : > { %vm2705_vm1 = vcmp.ge.f32.partialorder %v7453_v10, 0.0  ;;  %v2769_v4 = vmul.f32 0.1, %v7453_v10  ;;  %vm2707_vm2 = vcmp.ge.f32.partialorder %v7485_v49, 0.0  ;;  %v2771_v21 = vmul.f32 0.1, %v7485_v49 }
 0x29d   : > { %vm2706_vm3 = vcmp.ge.f32.partialorder %v7454_v38, 0.0  ;;  %v2770_v44 = vmul.f32 0.1, %v7454_v38  ;;  %v7455_v26 = vadd.f32 %v2291_v32, %v9305_v35  ;;  %v7487_v22 = vadd.f32 %v2630_v62, %v9308_v52  ;;  %v2293_v2 = vpop.f32.mrb[51].mxu1  ;;  %v2632_v37 = vpop.f32.mrb[35].mxu0 }
 0x29e   : > { %vm2708_vm4 = vcmp.ge.f32.partialorder %v7486_v50, 0.0  ;;  %v2772_v14 = vmul.f32 0.1, %v7486_v50  ;;  %v7456_v47 = vadd.f32 %v2293_v2, %v9311_v48  ;;  %v7488_v28 = vadd.f32 %v2632_v37, %v9314_v8  ;;  %v8060_v62 = vld [vmem:[#allocation4 + $0x110] ss:$8 sps:$4 sm:$0xff]  }
 0x29f   : > { %vm2709_vm5 = vcmp.ge.f32.partialorder %v7455_v26, 0.0  ;;  %v2773_v1 = vmul.f32 0.1, %v7455_v26  ;;  %vm2711_vm6 = vcmp.ge.f32.partialorder %v7487_v22, 0.0  ;;  %v2775_v23 = vmul.f32 0.1, %v7487_v22 }
 0x2a0   : > { %v2833_v3 = vsel %vm2705_vm1, %v7453_v10, %v2769_v4  ;;  %vm2710_vm7 = vcmp.ge.f32.partialorder %v7456_v47, 0.0  ;;  %v2774_v46 = vmul.f32 0.1, %v7456_v47  ;;  %v2776_v53 = vmul.f32 0.1, %v7488_v28 }
 0x2a1   : > { %v9326_v57 = vsel %vm2707_vm2, %v7485_v49, %v2771_v21  ;;  %v2837_v9 = vsel %vm2709_vm5, %v7455_v26, %v2773_v1  ;;  %v9328_v5 = vsel %vm2711_vm6, %v7487_v22, %v2775_v23  ;;  %vm2712_vm8 = vcmp.ge.f32.partialorder %v7488_v28, 0.0  ;;  %v2297_v6 = vpop.f32.mrb[52].mxu1  ;;  %v2636_v39 = vpop.f32.mrb[36].mxu0 }
 0x2a2   : > { %v2961_v29 = vpack.c.bf16 %v2837_v9, %v2833_v3  ;;  %v7457_v12 = vadd.f32 %v2297_v6, %v9305_v35  ;;  %v9334_v7 = vadd.f32 %v2636_v39, %v9308_v52  ;;  %v2299_v18 = vpop.f32.mrb[53].mxu1  ;;  %v2638_v31 = vpop.f32.mrb[37].mxu0  ;;  %v2838_v45 = vsel %vm2710_vm7, %v7456_v47, %v2774_v46  ;;  %v8065_v3 = vld [vmem:[#allocation4 + $0x124] ss:$8 sps:$4 sm:$0xff]  }
 0x2a3   : > { %v7458_v25 = vadd.f32 %v2299_v18, %v9311_v48  ;;  %v2301_v20 = vpop.f32.mrb[54].mxu1  ;;  %v2640_v30 = vpop.f32.mrb[38].mxu0  ;;  %v9339_v34 = vadd.f32 %v2638_v31, %v9314_v8  ;;  %v2834_v51 = vsel %vm2706_vm3, %v7454_v38, %v2770_v44  ;;  %v9343_v19 = vsel %vm2712_vm8, %v7488_v28, %v2776_v53  ;;  %v8113_v38 = vld [vmem:[#allocation6 + $0xe4] ss:$56 sps:$4 sm:$0xff]   ;;  %v8114_v18 = vld [vmem:[#allocation6 + $0x150] ss:$56 sps:$4 sm:$0xff]  }
 0x2a4   : > { %vm2713_vm9 = vcmp.ge.f32.partialorder %v7457_v12, 0.0  ;;  %v2777_v54 = vmul.f32 0.1, %v7457_v12  ;;  %v9346_v27 = vmul.f32 0.1, %v9334_v7  ;;  %v9349_v11 = vsel %vm2708_vm4, %v7486_v50, %v2772_v14  ;;  %v2303_v24 = vpop.f32.mrb[55].mxu1  ;;  %3775 = vmatprep.subr.bf16.mxu0 %v8113_v38 }
 0x2a5   : > { %vm2714_vm10 = vcmp.ge.f32.partialorder %v7458_v25, 0.0  ;;  %v7459_v58 = vadd.f32 %v2301_v20, %v9305_v35  ;;  %v7491_v17 = vadd.f32 %v2640_v30, %v9308_v52  ;;  %v2642_v63 = vpop.f32.mrb[39].mxu0  ;;  %v2962_v0 = vpack.c.bf16 %v2838_v45, %v2834_v51  ;;  %3776 = vmatpush1.bf16.msra.mxu0 %v8111_v15  ;;  %v8068_v51 = vld [vmem:[#allocation4 + $0x134] ss:$8 sps:$4 sm:$0xff]  }
 0x2a6   : > { %v2778_v43 = vmul.f32 0.1, %v7458_v25  ;;  %v7460_v10 = vadd.f32 %v2303_v24, %v9311_v48  ;;  %v7492_v49 = vadd.f32 %v2642_v63, %v9314_v8  ;;  %vm2716_vm11 = vcmp.ge.f32.partialorder %v9339_v34, 0.0 }
 0x2a7   : > { %vm2717_vm12 = vcmp.ge.f32.partialorder %v7459_v58, 0.0  ;;  %v2781_v50 = vmul.f32 0.1, %v7459_v58  ;;  %v2783_v32 = vmul.f32 0.1, %v7491_v17  ;;  %3357 = vmatprep.mubr.bf16.mxu1 %v2962_v0  ;;  %vm2719_vm15 = vcmp.ge.f32.partialorder %v7491_v17, 0.0 }
 0x2a8   : > { %vm2718_vm13 = vcmp.ge.f32.partialorder %v7460_v10, 0.0  ;;  %v2782_v4 = vmul.f32 0.1, %v7460_v10  ;;  %vm2720_vm14 = vcmp.ge.f32.partialorder %v7492_v49, 0.0  ;;  %v2784_v21 = vmul.f32 0.1, %v7492_v49  ;;  %3358 = vmatmul.mubr.bf16.vlgmr.msra.gmra.mrb[80].mxu1 %v2961_v29 }
 0x2a9   : > { %v2780_v44 = vmul.f32 0.1, %v9339_v34  ;;  %3439 = vmatpush1.bf16.msra.mxu1 %v8057_v56  ;;  %v2307_v26 = vpop.f32.mrb[56].mxu1  ;;  %v9359_v22 = vpop.f32.mrb[40].mxu0  ;;  %v2841_v2 = vsel %vm2713_vm9, %v7457_v12, %v2777_v54  ;;  %v2845_v37 = vsel %vm2717_vm12, %v7459_v58, %v2781_v50  ;;  %v2842_v1 = vsel %vm2714_vm10, %v7458_v25, %v2778_v43  ;;  %v8116_v29 = vld [vmem:[#allocation6 + $0x154] ss:$56 sps:$4 sm:$0xff]  }
 0x2aa   : > { %3440 = vmatprep.subr.bf16.mxu1 %v8062_v13  ;;  %v7461_v14 = vadd.f32 %v2307_v26, %v9305_v35  ;;  %v2309_v47 = vpop.f32.mrb[57].mxu1  ;;  %v2648_v28 = vpop.f32.mrb[41].mxu0  ;;  %v2846_v23 = vsel %vm2718_vm13, %v7460_v10, %v2782_v4  ;;  %v2965_v46 = vpack.c.bf16 %v2845_v37, %v2841_v2  ;;  %vm2715_vm0 = vcmp.ge.f32.partialorder %v9334_v7, 0.0  ;;  %v8119_v25 = vld [vmem:[#allocation6 + $0x1c4] ss:$56 sps:$4 sm:$0xff]   ;;  %3777 = vmatprep.subr.bf16.mxu0 %v8116_v29 }
 0x2ab   : > { %v2311_v53 = vpop.f32.mrb[58].mxu1  ;;  %v9367_v9 = vpop.f32.mrb[42].mxu0  ;;  %v2966_v6 = vpack.c.bf16 %v2846_v23, %v2842_v1  ;;  %v9370_v39 = vsel %vm2720_vm14, %v7492_v49, %v2784_v21  ;;  %v9373_v12 = vsel %vm2719_vm15, %v7491_v17, %v2783_v32  ;;  %v7462_v31 = vadd.f32 %v2309_v47, %v9311_v48  ;;  %v8066_v58 = vld [vmem:[#allocation4 + $0x130] ss:$8 sps:$4 sm:$0xff]   ;;  %3778 = vmatpush1.bf16.msra.mxu0 %v8114_v18  ;;  %v8071_v50 = vld [vmem:[#allocation4 + $0x144] ss:$8 sps:$4 sm:$0xff]  }
 0x2ac   : > { %10628 = vst [vmem:[#allocation13_spill] sm:$0xff] %v9373_v12  ;;  %v9379_v36 = vsel %vm2716_vm11, %v9339_v34, %v2780_v44  ;;  %v2785_v20 = vmul.f32 0.1, %v7461_v14  ;;  %v7463_v30 = vadd.f32 %v2311_v53, %v9305_v35  ;;  %v2313_v45 = vpop.f32.mrb[59].mxu1  ;;  %v2652_v33 = vpop.f32.mrb[43].mxu0  ;;  %v9388_v40 = vsel %vm2715_vm0, %v9334_v7, %v9346_v27  ;;  %3779 = vmatprep.subr.bf16.mxu0 %v8119_v25 }
 0x2ad   : > { %3441 = vmatpush1.bf16.msra.mxu1 %v8060_v62  ;;  %3367 = vmatprep.mubr.bf16.mxu1 %v2966_v6  ;;  %10629 = vst [vmem:[#allocation14_spill] sm:$0xff] %v9379_v36  ;;  %10630 = vst [vmem:[#allocation15_spill] sm:$0xff] %v9388_v40  ;;  %vm2721_vm1 = vcmp.ge.f32.partialorder %v7461_v14, 0.0  ;;  %v7464_v34 = vadd.f32 %v2313_v45, %v9311_v48  ;;  %v7496_v54 = vadd.f32 %v2652_v33, %v9314_v8  ;;  %v8117_v0 = vld [vmem:[#allocation6 + $0x1c0] ss:$56 sps:$4 sm:$0xff]  }
 0x2ae   : > { %3442 = vmatprep.subr.bf16.mxu1 %v8065_v3  ;;  %v7494_v13 = vadd.f32 %v2648_v28, %v9314_v8  ;;  %vm2725_vm2 = vcmp.ge.f32.partialorder %v7463_v30, 0.0  ;;  %v2789_v43 = vmul.f32 0.1, %v7463_v30  ;;  %v8122_v7 = vld [vmem:[#allocation6 + $0x234] ss:$56 sps:$4 sm:$0xff]   ;;  %vm2722_vm4 = vcmp.ge.f32.partialorder %v7462_v31, 0.0 }
 0x2af   : > { %v2786_v27 = vmul.f32 0.1, %v7462_v31  ;;  %vm2726_vm3 = vcmp.ge.f32.partialorder %v7464_v34, 0.0  ;;  %v2790_v10 = vmul.f32 0.1, %v7464_v34  ;;  %v2849_v32 = vsel %vm2721_vm1, %v7461_v14, %v2785_v20  ;;  %3780 = vmatpush1.bf16.msra.mxu0 %v8117_v0 }
 0x2b0   : > { %3368 = vmatmul.mubr.bf16.gmra.mrb[84].mxu1 %v2965_v46  ;;  %v2853_v62 = vsel %vm2725_vm2, %v7463_v30, %v2789_v43  ;;  %v2792_v4 = vmul.f32 0.1, %v7496_v54  ;;  %v2788_v37 = vmul.f32 0.1, %v7494_v13  ;;  %vm2728_vm5 = vcmp.ge.f32.partialorder %v7496_v54, 0.0  ;;  %3781 = vmatprep.subr.bf16.mxu0 %v8122_v7 }
 0x2b1   : > { %v2317_v17 = vpop.f32.mrb[60].mxu1  ;;  %v2656_v24 = vpop.f32.mrb[44].mxu0  ;;  %3443 = vmatpush1.bf16.msra.mxu1 %v8063_v55  ;;  %v2854_v26 = vsel %vm2726_vm3, %v7464_v34, %v2790_v10  ;;  %v2969_v2 = vpack.c.bf16 %v2853_v62, %v2849_v32  ;;  %v8120_v47 = vld [vmem:[#allocation6 + $0x230] ss:$56 sps:$4 sm:$0xff]   ;;  %v9400_v28 = vadd.f32 %v9359_v22, %v9308_v52  ;;  %vm2724_vm6 = vcmp.ge.f32.partialorder %v7494_v13, 0.0 }
 0x2b2   : > { %3444 = vmatprep.subr.bf16.mxu1 %v8068_v51  ;;  %v7465_v49 = vadd.f32 %v2317_v17, %v9305_v35  ;;  %v2319_v15 = vpop.f32.mrb[61].mxu1  ;;  %v2658_v38 = vpop.f32.mrb[45].mxu0  ;;  %v2850_v14 = vsel %vm2722_vm4, %v7462_v31, %v2786_v27  ;;  %v8069_v23 = vld [vmem:[#allocation4 + $0x140] ss:$8 sps:$4 sm:$0xff]   ;;  %v8125_v3 = vld [vmem:[#allocation6 + $0x2a4] ss:$56 sps:$4 sm:$0xff]   ;;  %v9406_v46 = vadd.f32 %v9367_v9, %v9308_v52  ;;  %v9410_v25 = vadd.f32 %v2656_v24, %v9308_v52 }
 0x2b3   : > { %v2321_v21 = vpop.f32.mrb[62].mxu1  ;;  %v2660_v44 = vpop.f32.mrb[46].mxu0  ;;  %v7466_v1 = vadd.f32 %v2319_v15, %v9311_v48  ;;  %v2970_v22 = vpack.c.bf16 %v2854_v26, %v2850_v14  ;;  %v8074_v55 = vld [vmem:[#allocation4 + $0x154] ss:$8 sps:$4 sm:$0xff]   ;;  %v9414_v45 = vsel %vm2728_vm5, %v7496_v54, %v2792_v4  ;;  %v8123_v9 = vld [vmem:[#allocation6 + $0x2a0] ss:$56 sps:$4 sm:$0xff]   ;;  %v9417_v33 = vadd.f32 %v2658_v38, %v9314_v8  ;;  %3782 = vmatpush1.bf16.msra.mxu0 %v8120_v47 }
 0x2b4   : > { %v2793_v53 = vmul.f32 0.1, %v7465_v49  ;;  %v7467_v6 = vadd.f32 %v2321_v21, %v9305_v35  ;;  %v2323_v29 = vpop.f32.mrb[63].mxu1  ;;  %v2662_v18 = vpop.f32.mrb[47].mxu0  ;;  %vm2729_vm7 = vcmp.ge.f32.partialorder %v7465_v49, 0.0  ;;  %10631 = vst [vmem:[#allocation16_spill] sm:$0xff] %v9414_v45  ;;  %v9420_v34 = vsel %vm2724_vm6, %v7494_v13, %v2788_v37  ;;  %3783 = vmatprep.subr.bf16.mxu0 %v8125_v3 }
 0x2b5   : > { %3445 = vmatpush1.bf16.msra.mxu1 %v8066_v58  ;;  %v7468_v31 = vadd.f32 %v2323_v29, %v9311_v48  ;;  %3377 = vmatprep.mubr.bf16.mxu1 %v2970_v22  ;;  %10632 = vst [vmem:[#allocation17_spill] sm:$0xff] %v9420_v34  ;;  %v8128_v58 = vld [vmem:[#allocation6 + $0x314] ss:$56 sps:$4 sm:$0xff]   ;;  %vm2730_vm9 = vcmp.ge.f32.partialorder %v7466_v1, 0.0  ;;  %v2794_v17 = vmul.f32 0.1, %v7466_v1  ;;  %v9430_v15 = vadd.f32 %v2660_v44, %v9308_v52 }
 0x2b6   : > { %3446 = vmatprep.subr.bf16.mxu1 %v8071_v50  ;;  %vm2733_vm8 = vcmp.ge.f32.partialorder %v7467_v6, 0.0  ;;  %v2797_v51 = vmul.f32 0.1, %v7467_v6  ;;  %v8072_v54 = vld [vmem:[#allocation4 + $0x150] ss:$8 sps:$4 sm:$0xff]   ;;  %v2857_v27 = vsel %vm2729_vm7, %v7465_v49, %v2793_v53  ;;  %vm2723_vm11 = vcmp.ge.f32.partialorder %v9400_v28, 0.0 }
 0x2b7   : > { %vm2734_vm10 = vcmp.ge.f32.partialorder %v7468_v31, 0.0  ;;  %v2798_v24 = vmul.f32 0.1, %v7468_v31  ;;  %v8077_v62 = vld [vmem:[#allocation4 + $0x164] ss:$8 sps:$4 sm:$0xff]   ;;  %vm2727_vm12 = vcmp.ge.f32.partialorder %v9406_v46, 0.0  ;;  %3784 = vmatpush1.bf16.msra.mxu0 %v8123_v9  ;;  %v9450_v53 = vadd.f32 %v2662_v18, %v9314_v8 }
 0x2b8   : > { %3378 = vmatmul.mubr.bf16.gmra.mrb[88].mxu1 %v2969_v2  ;;  %v2861_v13 = vsel %vm2733_vm8, %v7467_v6, %v2797_v51  ;;  %v8126_v21 = vld [vmem:[#allocation6 + $0x310] ss:$56 sps:$4 sm:$0xff]   ;;  %v9435_v49 = vmul.f32 0.1, %v9400_v28  ;;  %v8131_v2 = vld [vmem:[#allocation6 + $0x384] ss:$56 sps:$4 sm:$0xff]   ;;  %3785 = vmatprep.subr.bf16.mxu0 %v8128_v58 }
 0x2b9   : > { %v2327_v20 = vpop.f32.mrb[64].mxu1  ;;  %v2666_v30 = vpop.f32.mrb[48].mxu0  ;;  %3447 = vmatpush1.bf16.msra.mxu1 %v8069_v23  ;;  %v2862_v32 = vsel %vm2734_vm10, %v7468_v31, %v2798_v24  ;;  %v2973_v4 = vpack.c.bf16 %v2861_v13, %v2857_v27  ;;  %v8075_v44 = vld [vmem:[#allocation4 + $0x160] ss:$8 sps:$4 sm:$0xff]   ;;  %v2791_v37 = vmul.f32 0.1, %v9406_v46  ;;  %v2858_v23 = vsel %vm2730_vm9, %v7466_v1, %v2794_v17 }
 0x2ba   : > { %v9423_v0 = vadd.f32 %v2327_v20, %v9305_v35  ;;  %v2329_v43 = vpop.f32.mrb[65].mxu1  ;;  %v2668_v7 = vpop.f32.mrb[49].mxu0  ;;  %3448 = vmatprep.subr.bf16.mxu1 %v8074_v55  ;;  %v9443_v47 = vmul.f32 0.1, %v9410_v25  ;;  %v9446_v14 = vmul.f32 0.1, %v9417_v33  ;;  %v2974_v31 = vpack.c.bf16 %v2862_v32, %v2858_v23 }
 0x2bb   : > { %v2331_v38 = vpop.f32.mrb[66].mxu1  ;;  %v2670_v50 = vpop.f32.mrb[50].mxu0  ;;  %v9439_v26 = vadd.f32 %v2329_v43, %v9311_v48  ;;  %v8080_v3 = vld [vmem:[#allocation4 + $0x174] ss:$8 sps:$4 sm:$0xff]   ;;  %v8129_v20 = vld [vmem:[#allocation6 + $0x380] ss:$56 sps:$4 sm:$0xff]   ;;  %v9459_v1 = vadd.f32 %v2666_v30, %v9308_v52  ;;  %v9464_v24 = vadd.f32 %v2668_v7, %v9314_v8  ;;  %3786 = vmatpush1.bf16.msra.mxu0 %v8126_v21 }
 0x2bc   : > { %v2801_v6 = vmul.f32 0.1, %v9423_v0  ;;  %v7471_v29 = vadd.f32 %v2331_v38, %v9305_v35  ;;  %v2333_v22 = vpop.f32.mrb[67].mxu1  ;;  %v2672_v55 = vpop.f32.mrb[51].mxu0  ;;  %v9455_v9 = vmul.f32 0.1, %v9430_v15  ;;  %3387 = vmatprep.mubr.bf16.mxu1 %v2974_v31  ;;  %v9467_v43 = vadd.f32 %v2670_v50, %v9308_v52  ;;  %3787 = vmatprep.subr.bf16.mxu0 %v8131_v2 }
 0x2bd   : > { %3449 = vmatpush1.bf16.msra.mxu1 %v8072_v54  ;;  %vm2737_vm13 = vcmp.ge.f32.partialorder %v9423_v0, 0.0  ;;  %v7472_v18 = vadd.f32 %v2333_v22, %v9311_v48  ;;  %v2802_v17 = vmul.f32 0.1, %v9439_v26  ;;  %v9470_v27 = vadd.f32 %v2672_v55, %v9314_v8  ;;  %v8134_v13 = vld [vmem:[#allocation6 + $0x3f4] ss:$56 sps:$4 sm:$0xff]  }
 0x2be   : > { %3450 = vmatprep.subr.bf16.mxu1 %v8077_v62  ;;  %vm2741_vm14 = vcmp.ge.f32.partialorder %v7471_v29, 0.0  ;;  %v2805_v54 = vmul.f32 0.1, %v7471_v29  ;;  %vm2732_vm0 = vcmp.ge.f32.partialorder %v9417_v33, 0.0  ;;  %vm2738_vm1 = vcmp.ge.f32.partialorder %v9439_v26, 0.0 }
 0x2bf   : > { %vm2742_vm15 = vcmp.ge.f32.partialorder %v7472_v18, 0.0  ;;  %v2806_v30 = vmul.f32 0.1, %v7472_v18  ;;  %v8078_v7 = vld [vmem:[#allocation4 + $0x170] ss:$8 sps:$4 sm:$0xff]   ;;  %v2865_v62 = vsel %vm2737_vm13, %v9423_v0, %v2801_v6  ;;  %vm2736_vm2 = vcmp.ge.f32.partialorder %v9450_v53, 0.0  ;;  %3788 = vmatpush1.bf16.msra.mxu0 %v8129_v20 }
 0x2c0   : > { %3388 = vmatmul.mubr.bf16.gmra.mrb[92].mxu1 %v2973_v4  ;;  %v2869_v21 = vsel %vm2741_vm14, %v7471_v29, %v2805_v54  ;;  %v9482_v4 = vmul.f32 0.1, %v9450_v53  ;;  %v8083_v55 = vld [vmem:[#allocation4 + $0x184] ss:$8 sps:$4 sm:$0xff]   ;;  %v9493_v0 = vmul.f32 0.1, %v9464_v24  ;;  %v9499_v29 = vsel %vm2727_vm12, %v9406_v46, %v2791_v37  ;;  %3789 = vmatprep.subr.bf16.mxu0 %v8134_v13 }
 0x2c1   : > { %v2337_v51 = vpop.f32.mrb[68].mxu1  ;;  %v2676_v58 = vpop.f32.mrb[52].mxu0  ;;  %3451 = vmatpush1.bf16.msra.mxu1 %v8075_v44  ;;  %v2870_v22 = vsel %vm2742_vm15, %v7472_v18, %v2806_v30  ;;  %v2977_v31 = vpack.c.bf16 %v2869_v21, %v2865_v62  ;;  %10633 = vst [vmem:[#allocation18_spill] sm:$0xff] %v9499_v29  ;;  %v8132_v18 = vld [vmem:[#allocation6 + $0x3f0] ss:$56 sps:$4 sm:$0xff]   ;;  %v2866_v30 = vsel %vm2738_vm1, %v9439_v26, %v2802_v17  ;;  %vm2731_vm7 = vcmp.ge.f32.partialorder %v9410_v25, 0.0 }
 0x2c2   : > { %v9475_v38 = vadd.f32 %v2337_v51, %v9305_v35  ;;  %v2339_v32 = vpop.f32.mrb[69].mxu1  ;;  %v2678_v50 = vpop.f32.mrb[53].mxu0  ;;  %3452 = vmatprep.subr.bf16.mxu1 %v8080_v3  ;;  %v9485_v2 = vadd.f32 %v2676_v58, %v9308_v52  ;;  %v9490_v51 = vmul.f32 0.1, %v9459_v1  ;;  %v8081_v3 = vld [vmem:[#allocation4 + $0x180] ss:$8 sps:$4 sm:$0xff]   ;;  %v2978_v26 = vpack.c.bf16 %v2870_v22, %v2866_v30 }
 0x2c3   : > { %v2341_v44 = vpop.f32.mrb[70].mxu1  ;;  %v2680_v23 = vpop.f32.mrb[54].mxu0  ;;  %v7474_v6 = vadd.f32 %v2339_v32, %v9311_v48  ;;  %v9502_v58 = vmul.f32 0.1, %v9467_v43  ;;  %v9505_v54 = vmul.f32 0.1, %v9470_v27  ;;  %v9514_v32 = vsel %vm2723_vm11, %v9400_v28, %v9435_v49  ;;  %3790 = vmatpush1.bf16.msra.mxu0 %v8132_v18 }
 0x2c4   : > { %v8086_v62 = vld [vmem:[#allocation4 + $0x194] ss:$8 sps:$4 sm:$0xff]   ;;  %10634 = vst [vmem:[#allocation19_spill] sm:$0xff] %v9514_v32  ;;  %v2809_v37 = vmul.f32 0.1, %v9475_v38  ;;  %v9518_v20 = vadd.f32 %v2678_v50, %v9314_v8  ;;  %v7475_v21 = vadd.f32 %v2341_v44, %v9305_v35  ;;  %v2343_v10 = vpop.f32.mrb[71].mxu1  ;;  %v9529_v16 = vadd.f32 %v2680_v23, %v9308_v52  ;;  %3397 = vmatprep.mubr.bf16.mxu1 %v2978_v26 }
 0x2c5   : > { %v8137_v46 = vld [vmem:[#allocation6 + $0x464] ss:$56 sps:$4 sm:$0xff]   ;;  %3453 = vmatpush1.bf16.msra.mxu1 %v8078_v7  ;;  %v2682_v63 = vpop.f32.mrb[55].mxu0  ;;  %v8135_v17 = vld [vmem:[#allocation6 + $0x460] ss:$56 sps:$4 sm:$0xff]   ;;  %vm2745_vm3 = vcmp.ge.f32.partialorder %v9475_v38, 0.0  ;;  %v7476_v28 = vadd.f32 %v2343_v10, %v9311_v48 }
 0x2c6   : > { %v9523_v56 = vmul.f32 0.1, %v9485_v2  ;;  %3454 = vmatprep.subr.bf16.mxu1 %v8083_v55  ;;  %v2810_v50 = vmul.f32 0.1, %v7474_v6  ;;  %vm2749_vm4 = vcmp.ge.f32.partialorder %v7475_v21, 0.0  ;;  %vm2746_vm5 = vcmp.ge.f32.partialorder %v7474_v6, 0.0  ;;  %3791 = vmatprep.subr.bf16.mxu0 %v8137_v46 }
 0x2c7   : > { %v2813_v44 = vmul.f32 0.1, %v7475_v21  ;;  %vm2750_vm6 = vcmp.ge.f32.partialorder %v7476_v28, 0.0  ;;  %v2814_v22 = vmul.f32 0.1, %v7476_v28  ;;  %v9532_v30 = vadd.f32 %v2682_v63, %v9314_v8  ;;  %3792 = vmatpush1.bf16.msra.mxu0 %v8135_v17 }
 0x2c8   : > { %3398 = vmatmul.mubr.bf16.gmra.mrb[96].mxu1 %v2977_v31  ;;  %v8140_v10 = vld [vmem:[#allocation6 + $0x4d4] ss:$56 sps:$4 sm:$0xff]   ;;  %v8084_v55 = vld [vmem:[#allocation4 + $0x190] ss:$8 sps:$4 sm:$0xff]   ;;  %v2873_v18 = vsel %vm2745_vm3, %v9475_v38, %v2809_v37  ;;  %v9548_v32 = vmul.f32 0.1, %v9518_v20 }
 0x2c9   : > { %v2347_v49 = vpop.f32.mrb[72].mxu1  ;;  %v2686_v13 = vpop.f32.mrb[56].mxu0  ;;  %3455 = vmatpush1.bf16.msra.mxu1 %v8081_v3  ;;  %v8089_v26 = vld [vmem:[#allocation4 + $0x1a4] ss:$8 sps:$4 sm:$0xff]   ;;  %v2877_v63 = vsel %vm2749_vm4, %v7475_v21, %v2813_v44  ;;  %v9551_v38 = vmul.f32 0.1, %v9529_v16  ;;  %3793 = vmatprep.subr.bf16.mxu0 %v8140_v10 }
 0x2ca   : > { %v7477_v7 = vadd.f32 %v2347_v49, %v9305_v35  ;;  %v9536_v59 = vadd.f32 %v2686_v13, %v9308_v52  ;;  %v2349_v23 = vpop.f32.mrb[73].mxu1  ;;  %v2688_v61 = vpop.f32.mrb[57].mxu0  ;;  %3456 = vmatprep.subr.bf16.mxu1 %v8086_v62  ;;  %v2878_v13 = vsel %vm2750_vm6, %v7476_v28, %v2814_v22  ;;  %v2981_v60 = vpack.c.bf16 %v2877_v63, %v2873_v18  ;;  %v8087_v21 = vld [vmem:[#allocation4 + $0x1a0] ss:$8 sps:$4 sm:$0xff]   ;;  %v8092_v44 = vld [vmem:[#allocation4 + $0x1b4] ss:$8 sps:$4 sm:$0xff]  }
 0x2cb   : > { %v7478_v31 = vadd.f32 %v2349_v23, %v9311_v48  ;;  %v9544_v3 = vadd.f32 %v2688_v61, %v9314_v8  ;;  %v2351_v46 = vpop.f32.mrb[74].mxu1  ;;  %v2690_v49 = vpop.f32.mrb[58].mxu0  ;;  %v2874_v62 = vsel %vm2746_vm5, %v7474_v6, %v2810_v50  ;;  %v9556_v61 = vmul.f32 0.1, %v9532_v30  ;;  %v8141_v63 = vld [vmem:[#allocation6 + $0x540] ss:$56 sps:$4 sm:$0xff]   ;;  %3794 = vmatpush1.bf16.msra.mxu0 %v8138_v42 }
 0x2cc   : > { %v2817_v37 = vmul.f32 0.1, %v7477_v7  ;;  %vm2753_vm8 = vcmp.ge.f32.partialorder %v7477_v7, 0.0  ;;  %v9562_v22 = vsel %vm2732_vm0, %v9417_v33, %v9446_v14  ;;  %v7479_v6 = vadd.f32 %v2351_v46, %v9305_v35  ;;  %v2353_v50 = vpop.f32.mrb[75].mxu1  ;;  %v2692_v23 = vpop.f32.mrb[59].mxu0  ;;  %3795 = vmatprep.subr.bf16.mxu0 %v8143_v41 }
 0x2cd   : > { %v2818_v28 = vmul.f32 0.1, %v7478_v31  ;;  %10635 = vst [vmem:[#allocation20_spill] sm:$0xff] %v9562_v22  ;;  %3457 = vmatpush1.bf16.msra.mxu1 %v8084_v55  ;;  %vm2754_vm9 = vcmp.ge.f32.partialorder %v7478_v31, 0.0  ;;  %v9566_v17 = vadd.f32 %v2690_v49, %v9308_v52  ;;  %v2982_v18 = vpack.c.bf16 %v2878_v13, %v2874_v62  ;;  %v8090_v42 = vld [vmem:[#allocation4 + $0x1b0] ss:$8 sps:$4 sm:$0xff]  }
 0x2ce   : > { %vm2735_vm10 = vcmp.ge.f32.partialorder %v9430_v15, 0.0  ;;  %vm2740_vm11 = vcmp.ge.f32.partialorder %v9464_v24, 0.0  ;;  %vm2744_vm12 = vcmp.ge.f32.partialorder %v9470_v27, 0.0  ;;  %v9572_v33 = vmul.f32 0.1, %v9536_v59  ;;  %3458 = vmatprep.subr.bf16.mxu1 %v8089_v26 }
 0x2cf   : > { %v9575_v14 = vmul.f32 0.1, %v9544_v3  ;;  %v7480_v10 = vadd.f32 %v2353_v50, %v9311_v48  ;;  %v9582_v49 = vsel %vm2736_vm2, %v9450_v53, %v9482_v4  ;;  %vm2757_vm13 = vcmp.ge.f32.partialorder %v7479_v6, 0.0  ;;  %3407 = vmatprep.mubr.bf16.mxu1 %v2982_v18  ;;  %v8146_v50 = vld [vmem:[#allocation6 + $0x5b4] ss:$56 sps:$4 sm:$0xff]   ;;  %3796 = vmatpush1.bf16.msra.mxu0 %v8141_v63 }
 0x2d0   : > { %10636 = vst [vmem:[#allocation21_spill] sm:$0xff] %v9582_v49  ;;  %v2821_v13 = vmul.f32 0.1, %v7479_v6  ;;  %v9585_v62 = vadd.f32 %v2692_v23, %v9314_v8  ;;  %v9588_v29 = vsel %vm2753_vm8, %v7477_v7, %v2817_v37  ;;  %vm2739_vm14 = vcmp.ge.f32.partialorder %v9459_v1, 0.0  ;;  %3408 = vmatmul.mubr.bf16.gmra.mrb[100].mxu1 %v2981_v60  ;;  %v8095_v45 = vld [vmem:[#allocation4 + $0x1c4] ss:$8 sps:$4 sm:$0xff]   ;;  %3797 = vmatprep.subr.bf16.mxu0 %v8146_v50 }
 0x2d1   : > { %v2357_v55 = vpop.f32.mrb[76].mxu1  ;;  %v2696_v46 = vpop.f32.mrb[60].mxu0  ;;  %vm2743_vm15 = vcmp.ge.f32.partialorder %v9467_v43, 0.0  ;;  %vm2748_vm0 = vcmp.ge.f32.partialorder %v9518_v20, 0.0  ;;  %v9594_v53 = vmul.f32 0.1, %v9566_v17  ;;  %v2882_v26 = vsel %vm2754_vm9, %v7478_v31, %v2818_v28  ;;  %3459 = vmatpush1.bf16.msra.mxu1 %v8087_v21 }
 0x2d2   : > { %vm2758_vm1 = vcmp.ge.f32.partialorder %v7480_v10, 0.0  ;;  %v2822_v4 = vmul.f32 0.1, %v7480_v10  ;;  %vm2747_vm2 = vcmp.ge.f32.partialorder %v9485_v2, 0.0  ;;  %vm2752_vm4 = vcmp.ge.f32.partialorder %v9532_v30, 0.0  ;;  %v2359_v23 = vpop.f32.mrb[77].mxu1  ;;  %3460 = vmatprep.subr.bf16.mxu1 %v8092_v44 }
 0x2d3   : > { %v7481_v7 = vadd.f32 %v2357_v55, %v9305_v35  ;;  %v9602_v37 = vadd.f32 %v2696_v46, %v9308_v52  ;;  %v2698_v18 = vpop.f32.mrb[61].mxu0  ;;  %v2885_v60 = vsel %vm2757_vm13, %v7479_v6, %v2821_v13  ;;  %v7482_v31 = vadd.f32 %v2359_v23, %v9311_v48  ;;  %v2361_v21 = vpop.f32.mrb[78].mxu1  ;;  %v8144_v40 = vld [vmem:[#allocation6 + $0x5b0] ss:$56 sps:$4 sm:$0xff]   ;;  %v8098_v12 = vld [vmem:[#allocation4 + $0x1d4] ss:$8 sps:$4 sm:$0xff]  }
 0x2d4   : > { %v9609_v28 = vadd.f32 %v2698_v18, %v9314_v8  ;;  %v2700_v34 = vpop.f32.mrb[62].mxu0  ;;  %v2886_v55 = vsel %vm2758_vm1, %v7480_v10, %v2822_v4  ;;  %v2985_v46 = vpack.c.bf16 %v2885_v60, %v9588_v29  ;;  %vm2756_vm6 = vcmp.ge.f32.partialorder %v9544_v3, 0.0  ;;  %v2363_v18 = vpop.f32.mrb[79].mxu1  ;;  %v8093_v63 = vld [vmem:[#allocation4 + $0x1c0] ss:$8 sps:$4 sm:$0xff]   ;;  %3798 = vmatpush1.bf16.msra.mxu0 %v8144_v40 }
 0x2d5   : > { %vm2760_vm9 = vcmp.ge.f32.partialorder %v9585_v62, 0.0  ;;  %v9618_v44 = vmul.f32 0.1, %v9585_v62  ;;  %vm2761_vm13 = vcmp.ge.f32.partialorder %v7481_v7, 0.0  ;;  %v2825_v6 = vmul.f32 0.1, %v7481_v7  ;;  %3461 = vmatpush1.bf16.msra.mxu1 %v8090_v42 }
 0x2d6   : > { %v9621_v10 = vmul.f32 0.1, %v9602_v37  ;;  %vm2762_vm1 = vcmp.ge.f32.partialorder %v7482_v31, 0.0  ;;  %v2826_v29 = vmul.f32 0.1, %v7482_v31  ;;  %v7483_v4 = vadd.f32 %v2361_v21, %v9305_v35  ;;  %v2702_v60 = vpop.f32.mrb[63].mxu0  ;;  %3462 = vmatprep.subr.bf16.mxu1 %v8095_v45 }
 0x2d7   : > { %v2828_v13 = vmul.f32 0.1, %v9609_v28  ;;  %v9627_v23 = vadd.f32 %v2700_v34, %v9308_v52  ;;  %v2986_v41 = vpack.c.bf16 %v2886_v55, %v2882_v26  ;;  %v7484_v22 = vadd.f32 %v2363_v18, %v9311_v48  ;;  %v8096_v45 = vld [vmem:[#allocation4 + $0x1d0] ss:$8 sps:$4 sm:$0xff]   ;;  %v8155_v18 = vld [vmem:[#allocation6 + $0xc] ss:$56 sps:$4 sm:$0xff]  }
 0x2d8   : > { %v7516_v49 = vadd.f32 %v2702_v60, %v9314_v8  ;;  %v2890_v50 = vsel %vm2762_vm1, %v7482_v31, %v2826_v29  ;;  %v2889_v42 = vsel %vm2761_vm13, %v7481_v7, %v2825_v6  ;;  %vm2765_vm3 = vcmp.ge.f32.partialorder %v7483_v4, 0.0  ;;  %v10652_v6 = vld [vmem:[#allocation19_spill] sm:$0xff]  ;;  %v10654_v29 = vld [vmem:[#allocation21_spill] sm:$0xff] }
 0x2d9   : > { %v2829_v36 = vmul.f32 0.1, %v7483_v4  ;;  %v2831_v35 = vmul.f32 0.1, %v9627_v23  ;;  %3417 = vmatprep.mubr.bf16.mxu1 %v2986_v41  ;;  %v2859_v52 = vsel %vm2731_vm7, %v9410_v25, %v9443_v47  ;;  %vm2766_vm8 = vcmp.ge.f32.partialorder %v7484_v22, 0.0  ;;  %3463 = vmatpush1.bf16.msra.mxu1 %v8093_v63 }
 0x2da   : > { %v2830_v48 = vmul.f32 0.1, %v7484_v22  ;;  %vm2768_vm5 = vcmp.ge.f32.partialorder %v7516_v49, 0.0  ;;  %v2832_v8 = vmul.f32 0.1, %v7516_v49  ;;  %3418 = vmatmul.mubr.bf16.gmra.mrb[104].mxu1 %v2985_v46  ;;  %v2863_v26 = vsel %vm2735_vm10, %v9430_v15, %v9455_v9  ;;  %3464 = vmatprep.subr.bf16.mxu1 %v8098_v12  ;;  %v10648_v46 = vld [vmem:[#allocation16_spill] sm:$0xff] }
 0x2db   : > { %v2893_v34 = vsel %vm2765_vm3, %v7483_v4, %v2829_v36  ;;  %v2868_v7 = vsel %vm2740_vm11, %v9464_v24, %v9493_v0  ;;  %v2872_v40 = vsel %vm2744_vm12, %v9470_v27, %v9505_v54  ;;  %v8101_v47 = vld [vmem:[#allocation4 + $0x1e4] ss:$8 sps:$4 sm:$0xff]   ;;  %v2975_v36 = vpack.c.bf16 %v2863_v26, %v2859_v52  ;;  %v8104_v54 = vld [vmem:[#allocation4 + $0x1f4] ss:$8 sps:$4 sm:$0xff]   ;;  %v8150_v4 = vld [vmem:[#allocation6 + $0x690] ss:$56 sps:$4 sm:$0xff]  }
 0x2dc   : > { %v2894_v25 = vsel %vm2766_vm8, %v7484_v22, %v2830_v48  ;;  %v2989_v41 = vpack.c.bf16 %v2893_v34, %v2889_v42  ;;  %v2980_v31 = vpack.c.bf16 %v2872_v40, %v2868_v7  ;;  %v2867_v15 = vsel %vm2739_vm14, %v9459_v1, %v9490_v51  ;;  %v8099_v51 = vld [vmem:[#allocation4 + $0x1e0] ss:$8 sps:$4 sm:$0xff]   ;;  %v8158_v63 = vld [vmem:[#allocation6 + $0x14] ss:$56 sps:$4 sm:$0xff]   ;;  %v8176_v48 = vld [vmem:[#allocation6 + $0x164] ss:$56 sps:$4 sm:$0xff]  }
 0x2dd   : > { %v2990_v21 = vpack.c.bf16 %v2894_v25, %v2890_v50  ;;  %v2871_v9 = vsel %vm2743_vm15, %v9467_v43, %v9502_v58  ;;  %v2876_v12 = vsel %vm2748_vm0, %v9518_v20, %v9548_v32  ;;  %v2880_v27 = vsel %vm2752_vm4, %v9532_v30, %v9556_v61  ;;  %3465 = vmatpush1.bf16.msra.mxu1 %v8096_v45  ;;  %v8156_v60 = vld [vmem:[#allocation6 + $0x10] ss:$56 sps:$4 sm:$0xff]   ;;  %v8164_v50 = vld [vmem:[#allocation6 + $0x84] ss:$56 sps:$4 sm:$0xff]   ;;  %v8162_v42 = vld [vmem:[#allocation6 + $0x80] ss:$56 sps:$4 sm:$0xff]  }
 0x2de   : > { %v2979_v24 = vpack.c.bf16 %v2871_v9, %v2867_v15  ;;  %v2875_v1 = vsel %vm2747_vm2, %v9485_v2, %v9523_v56  ;;  %vm10637_vm7 = vcmp.ge.f32.partialorder %v9529_v16, 0.0  ;;  %vm2763_vm10 = vcmp.ge.f32.partialorder %v9602_v37, 0.0  ;;  %3466 = vmatprep.subr.bf16.mxu1 %v8101_v47  ;;  %v8168_v52 = vld [vmem:[#allocation6 + $0xf0] ss:$56 sps:$4 sm:$0xff]   ;;  %v8182_v45 = vld [vmem:[#allocation6 + $0x1d4] ss:$56 sps:$4 sm:$0xff]  }
 0x2df   : > { %v2879_v43 = vsel %vm10637_vm7, %v9529_v16, %v9551_v38  ;;  %vm2767_vm11 = vcmp.ge.f32.partialorder %v9627_v23, 0.0  ;;  %3427 = vmatprep.mubr.bf16.mxu1 %v2990_v21  ;;  %v2984_v0 = vpack.c.bf16 %v2880_v27, %v2876_v12  ;;  %v2884_v56 = vsel %vm2756_vm6, %v9544_v3, %v9575_v14  ;;  %v8180_v34 = vld [vmem:[#allocation6 + $0x1d0] ss:$56 sps:$4 sm:$0xff]   ;;  %v8188_v26 = vld [vmem:[#allocation6 + $0x244] ss:$56 sps:$4 sm:$0xff]  }
 0x2e0   : > { %v2983_v58 = vpack.c.bf16 %v2879_v43, %v2875_v1  ;;  %v2888_v16 = vsel %vm2760_vm9, %v9585_v62, %v9618_v44  ;;  %vm10638_vm12 = vcmp.ge.f32.partialorder %v9536_v59, 0.0  ;;  %vm10639_vm14 = vcmp.ge.f32.partialorder %v9566_v17, 0.0  ;;  %v10643_v62 = vld [vmem:[#allocation14_spill] sm:$0xff]  ;;  %v10649_v44 = vld [vmem:[#allocation17_spill] sm:$0xff] }
 0x2e1   : > { %v2883_v2 = vsel %vm10638_vm12, %v9536_v59, %v9572_v33  ;;  %v2887_v32 = vsel %vm10639_vm14, %v9566_v17, %v9594_v53  ;;  %v2988_v20 = vpack.c.bf16 %v2888_v16, %v2884_v56  ;;  %vm10640_vm15 = vcmp.ge.f32.partialorder %v9609_v28, 0.0  ;;  %3467 = vmatpush1.bf16.msra.mxu1 %v8099_v51  ;;  %v8102_v33 = vld [vmem:[#allocation4 + $0x1f0] ss:$8 sps:$4 sm:$0xff]   ;;  %v8194_v40 = vld [vmem:[#allocation6 + $0x2b4] ss:$56 sps:$4 sm:$0xff]  }
 0x2e2   : > { %v2987_v30 = vpack.c.bf16 %v2887_v32, %v2883_v2  ;;  %v2892_v3 = vsel %vm10640_vm15, %v9609_v28, %v2828_v13  ;;  %v2896_v38 = vsel %vm2768_vm5, %v7516_v49, %v2832_v8  ;;  %3428 = vmatmul.mubr.bf16.gmra.mrb[108].mxu1 %v2989_v41  ;;  %v2891_v59 = vsel %vm2763_vm10, %v9602_v37, %v9621_v10  ;;  %v10645_v37 = vld [vmem:[#allocation13_spill] sm:$0xff]  ;;  %v10646_v28 = vld [vmem:[#allocation15_spill] sm:$0xff]  ;;  %v10655_v13 = vld [vmem:[#allocation20_spill] sm:$0xff] }
 0x2e3   : > { %v2992_v61 = vpack.c.bf16 %v2896_v38, %v2892_v3  ;;  %v2895_v22 = vsel %vm2767_vm11, %v9627_v23, %v2831_v35  ;;  %v10641_v17 = vpack.c.bf16 %v9343_v19, %v9349_v11  ;;  %3468 = vmatprep.subr.bf16.mxu1 %v8104_v54  ;;  %v10642_v49 = vpack.c.bf16 %v9328_v5, %v9326_v57  ;;  %v10651_v11 = vld [vmem:[#allocation18_spill] sm:$0xff]  ;;  %v8147_v5 = vld [vmem:[#allocation6 + $0x620] ss:$56 sps:$4 sm:$0xff]   ;;  %v8200_v47 = vld [vmem:[#allocation6 + $0x324] ss:$56 sps:$4 sm:$0xff]  }
 0x2e4   : > { %v2991_v14 = vpack.c.bf16 %v2895_v22, %v2891_v59  ;;  %v10644_v53 = vpack.c.bf16 %v9370_v39, %v10643_v62  ;;  %v10647_v55 = vpack.c.bf16 %v10645_v37, %v10646_v28  ;;  %v10650_v19 = vpack.c.bf16 %v10648_v46, %v10649_v44  ;;  %v8149_v39 = vld [vmem:[#allocation6 + $0x624] ss:$56 sps:$4 sm:$0xff]   ;;  %v8152_v23 = vld [vmem:[#allocation6 + $0x694] ss:$56 sps:$4 sm:$0xff]   ;;  %v8174_v8 = vld [vmem:[#allocation6 + $0x160] ss:$56 sps:$4 sm:$0xff]  }
 0x2e5   : > { %3470 = vmatprep.mubr.bf16.mxu1 %v10641_v17  ;;  %3469 = vmatpush1.bf16.msra.mxu1 %v8102_v33  ;;  %v10653_v10 = vpack.c.bf16 %v10651_v11, %v10652_v6  ;;  %v10656_v57 = vpack.c.bf16 %v10654_v29, %v10655_v13  ;;  %v8170_v35 = vld [vmem:[#allocation6 + $0xf4] ss:$56 sps:$4 sm:$0xff]   ;;  %v8186_v7 = vld [vmem:[#allocation6 + $0x240] ss:$56 sps:$4 sm:$0xff]   ;;  %v8192_v25 = vld [vmem:[#allocation6 + $0x2b0] ss:$56 sps:$4 sm:$0xff]  }
 0x2e6   : > { %3799 = vmatprep.subr.bf16.mxu0 %v8149_v39  ;;  %4579 = vmatprep.subr.bf16.mxu1 %v8158_v63  ;;  %v8198_v41 = vld [vmem:[#allocation6 + $0x320] ss:$56 sps:$4 sm:$0xff]   ;;  %v8212_v21 = vld [vmem:[#allocation6 + $0x404] ss:$56 sps:$4 sm:$0xff]   ;;  %v8218_v9 = vld [vmem:[#allocation6 + $0x474] ss:$56 sps:$4 sm:$0xff]  }
 0x2e7   : > { %3800 = vmatpush1.bf16.msra.mxu0 %v8147_v5  ;;  %v8210_v15 = vld [vmem:[#allocation6 + $0x400] ss:$56 sps:$4 sm:$0xff]   ;;  %v8216_v12 = vld [vmem:[#allocation6 + $0x470] ss:$56 sps:$4 sm:$0xff]   ;;  %v8230_v1 = vld [vmem:[#allocation6 + $0x554] ss:$56 sps:$4 sm:$0xff]  }
 0x2e8   : > { %3801 = vmatprep.subr.bf16.mxu0 %v8152_v23  ;;  %v8222_v27 = vld [vmem:[#allocation6 + $0x4e0] ss:$56 sps:$4 sm:$0xff]   ;;  %v8228_v43 = vld [vmem:[#allocation6 + $0x550] ss:$56 sps:$4 sm:$0xff]   ;;  %v8161_v33 = vld [vmem:[#allocation6 + $0x7c] ss:$56 sps:$4 sm:$0xff]  }
 0x2e9   : > { %v2993_v51 = vld [vmem:[%s10598_s5 + $0x9] sm:$0x3]  ;;  %v8167_v46 = vld [vmem:[#allocation6 + $0xec] ss:$56 sps:$4 sm:$0xff]   ;;  %v8173_v29 = vld [vmem:[#allocation6 + $0x15c] ss:$56 sps:$4 sm:$0xff]  }
 0x2ea   : > { %3471 = vmatmul.mubr.bf16.vlgmr.msra.gmra.mrb[80].mxu1 %v10642_v49  ;;  %v10658_v56 = vld [vmem:[#allocation10_spill] sm:$0xff]  ;;  %v8171_v39 = vld [vmem:[#allocation6 + $0x158] ss:$56 sps:$4 sm:$0xff]  }
 0x2eb   : > { %3480 = vmatprep.mubr.bf16.mxu1 %v10644_v53  ;;  %3802 = vmatpush1.bf16.msra.mxu0 %v8150_v4  ;;  %v9731_v16 = vrot.slane %v2993_v51, %v10658_v56  ;;  %v8153_v17 = vld [vmem:[#allocation6 + $0x8] ss:$56 sps:$4 sm:$0xff]   ;;  %v8159_v53 = vld [vmem:[#allocation6 + $0x78] ss:$56 sps:$4 sm:$0xff]  }
 0x2ec   : > { %4466 = vmatprep.subr.bf16.mxu0 %v8155_v18  ;;  %4580 = vmatpush1.bf16.msra.mxu1 %v8156_v60  ;;  %v8179_v60 = vld [vmem:[#allocation6 + $0x1cc] ss:$56 sps:$4 sm:$0xff]  }
 0x2ed   : > { %4581 = vmatprep.subr.bf16.mxu1 %v8164_v50 }
 0x2f0   : > { %4582 = vmatpush1.bf16.msra.mxu1 %v8162_v42 }
 0x2f1   : > { %4583 = vmatprep.subr.bf16.mxu1 %v8170_v35 }
 0x2f2   : > { %3481 = vmatmul.mubr.bf16.gmra.mrb[84].mxu1 %v10647_v55 }
 0x2f3   : > { %3490 = vmatprep.mubr.bf16.mxu1 %v10650_v19 }
 0x2f4   : > { %4584 = vmatpush1.bf16.msra.mxu1 %v8168_v52  ;;  %v8177_v52 = vld [vmem:[#allocation6 + $0x1c8] ss:$56 sps:$4 sm:$0xff]  }
 0x2f5   : > { %4585 = vmatprep.subr.bf16.mxu1 %v8176_v48  ;;  %v8185_v48 = vld [vmem:[#allocation6 + $0x23c] ss:$56 sps:$4 sm:$0xff]  }
 0x2f8   : > { %4586 = vmatpush1.bf16.msra.mxu1 %v8174_v8 }
 0x2f9   : > { %4587 = vmatprep.subr.bf16.mxu1 %v8182_v45 }
 0x2fa   : > { %3491 = vmatmul.mubr.bf16.gmra.mrb[88].mxu1 %v10653_v10  ;;  %v8165_v10 = vld [vmem:[#allocation6 + $0xe8] ss:$56 sps:$4 sm:$0xff]  }
 0x2fb   : > { %3500 = vmatprep.mubr.bf16.mxu1 %v10656_v57 }
 0x2fc   : > { %4588 = vmatpush1.bf16.msra.mxu1 %v8180_v34 }
 0x2fd   : > { %4589 = vmatprep.subr.bf16.mxu1 %v8188_v26  ;;  %v8183_v26 = vld [vmem:[#allocation6 + $0x238] ss:$56 sps:$4 sm:$0xff]  }
 0x300   : > { %4590 = vmatpush1.bf16.msra.mxu1 %v8186_v7 }
 0x301   : > { %4591 = vmatprep.subr.bf16.mxu1 %v8194_v40 }
 0x302   : > { %3501 = vmatmul.mubr.bf16.gmra.mrb[92].mxu1 %v2975_v36  ;;  %v8206_v36 = vld [vmem:[#allocation6 + $0x394] ss:$56 sps:$4 sm:$0xff]  }
 0x303   : > { %3510 = vmatprep.mubr.bf16.mxu1 %v2980_v31  ;;  %v8204_v31 = vld [vmem:[#allocation6 + $0x390] ss:$56 sps:$4 sm:$0xff]  }
 0x304   : > { %4592 = vmatpush1.bf16.msra.mxu1 %v8192_v25 }
 0x305   : > { %4593 = vmatprep.subr.bf16.mxu1 %v8200_v47  ;;  %v8191_v47 = vld [vmem:[#allocation6 + $0x2ac] ss:$56 sps:$4 sm:$0xff]  }
 0x308   : > { %4594 = vmatpush1.bf16.msra.mxu1 %v8198_v41 }
 0x309   : > { %4595 = vmatprep.subr.bf16.mxu1 %v8206_v36 }
 0x30a   : > { %3511 = vmatmul.mubr.bf16.gmra.mrb[96].mxu1 %v2979_v24  ;;  %v8224_v24 = vld [vmem:[#allocation6 + $0x4e4] ss:$56 sps:$4 sm:$0xff]  }
 0x30b   : > { %3520 = vmatprep.mubr.bf16.mxu1 %v2984_v0  ;;  %v10657_v0 = vld [vmem:[#allocation9_spill] sm:$0xff] }
 0x30c   : > { %4596 = vmatpush1.bf16.msra.mxu1 %v8204_v31 }
 0x30d   : > { %4597 = vmatprep.subr.bf16.mxu1 %v8212_v21 }
 0x310   : > { %4598 = vmatpush1.bf16.msra.mxu1 %v8210_v15  ;;  %v8189_v15 = vld [vmem:[#allocation6 + $0x2a8] ss:$56 sps:$4 sm:$0xff]  }
 0x311   : > { %4599 = vmatprep.subr.bf16.mxu1 %v8218_v9  ;;  %v8197_v9 = vld [vmem:[#allocation6 + $0x31c] ss:$56 sps:$4 sm:$0xff]  }
 0x312   : > { %3521 = vmatmul.mubr.bf16.gmra.mrb[100].mxu1 %v2983_v58  ;;  %v9728_v58 = vrot.slane %v2993_v51, %v10657_v0 }
 0x313   : > { %3530 = vmatprep.mubr.bf16.mxu1 %v2988_v20 }
 0x314   : > { %4600 = vmatpush1.bf16.msra.mxu1 %v8216_v12 }
 0x315   : > { %4601 = vmatprep.subr.bf16.mxu1 %v8224_v24 }
 0x318   : > { %4602 = vmatpush1.bf16.msra.mxu1 %v8222_v27 }
 0x319   : > { %4603 = vmatprep.subr.bf16.mxu1 %v8230_v1  ;;  %v8195_v1 = vld [vmem:[#allocation6 + $0x318] ss:$56 sps:$4 sm:$0xff]  }
 0x31a   : > { %3531 = vmatmul.mubr.bf16.gmra.mrb[104].mxu1 %v2987_v30 }
 0x31b   : > { %3540 = vmatprep.mubr.bf16.mxu1 %v2992_v61 }
 0x31c   : > { %4604 = vmatpush1.bf16.msra.mxu1 %v8228_v43 }
 0x322   : > { %3541 = vmatmul.mubr.bf16.gmra.mrb[108].mxu1 %v2991_v14 }
 0x3bd   : > { %v3472_v54 = vpop.f32.mrb[80].mxu1 }
 0x3be   : > { %v3474_v2 = vpop.f32.mrb[81].mxu1  ;;  %v9734_v20 = vadd.f32 %v3472_v54, %v9728_v58 }
 0x3bf   : > { %v3476_v32 = vpop.f32.mrb[82].mxu1  ;;  %v9740_v38 = vadd.f32 %v3474_v2, %v9731_v16  ;;  %v8203_v2 = vld [vmem:[#allocation6 + $0x38c] ss:$56 sps:$4 sm:$0xff]  }
 0x3c0   : > { %v9737_v30 = vadd.f32 %v3476_v32, %v9728_v58  ;;  %v3478_v3 = vpop.f32.mrb[83].mxu1 }
 0x3c1   : > { %v9743_v61 = vadd.f32 %v3478_v3, %v9731_v16 }
 0x3c2   : > { %v3583_v59 = vpack.c.bf16 %v9737_v30, %v9734_v20 }
 0x3c3   : > { %v3584_v22 = vpack.c.bf16 %v9743_v61, %v9740_v38 }
 0x3c5   : > { %v3482_v14 = vpop.f32.mrb[84].mxu1  ;;  %3803 = vmatprep.mubr.bf16.mxu0 %v3584_v22 }
 0x3c6   : > { %v3484_v49 = vpop.f32.mrb[85].mxu1  ;;  %3804 = vmatmul.mubr.bf16.vlgmr.msra.gmra.mrb[64].mxu0 %v3583_v59  ;;  %v9750_v37 = vadd.f32 %v3482_v14, %v9728_v58 }
 0x3c7   : > { %v3486_v62 = vpop.f32.mrb[86].mxu1  ;;  %4467 = vmatpush1.bf16.msra.mxu0 %v8153_v17  ;;  %v9756_v44 = vadd.f32 %v3484_v49, %v9731_v16  ;;  %v8201_v17 = vld [vmem:[#allocation6 + $0x388] ss:$56 sps:$4 sm:$0xff]  }
 0x3c8   : > { %v9753_v28 = vadd.f32 %v3486_v62, %v9728_v58  ;;  %v3488_v55 = vpop.f32.mrb[87].mxu1  ;;  %4468 = vmatprep.subr.bf16.mxu0 %v8161_v33  ;;  %v8209_v33 = vld [vmem:[#allocation6 + $0x3fc] ss:$56 sps:$4 sm:$0xff]  }
 0x3c9   : > { %v9759_v19 = vadd.f32 %v3488_v55, %v9731_v16 }
 0x3ca   : > { %v3585_v11 = vpack.c.bf16 %v9753_v28, %v9750_v37 }
 0x3cb   : > { %v3586_v6 = vpack.c.bf16 %v9759_v19, %v9756_v44  ;;  %4469 = vmatpush1.bf16.msra.mxu0 %v8159_v53  ;;  %v8207_v53 = vld [vmem:[#allocation6 + $0x3f8] ss:$56 sps:$4 sm:$0xff]  }
 0x3cc   : > { %4470 = vmatprep.subr.bf16.mxu0 %v8167_v46 }
 0x3cd   : > { %v3492_v13 = vpop.f32.mrb[88].mxu1  ;;  %3813 = vmatprep.mubr.bf16.mxu0 %v3586_v6  ;;  %v8215_v6 = vld [vmem:[#allocation6 + $0x46c] ss:$56 sps:$4 sm:$0xff]  }
 0x3ce   : > { %v3494_v57 = vpop.f32.mrb[89].mxu1  ;;  %3814 = vmatmul.mubr.bf16.gmra.mrb[68].mxu0 %v3585_v11  ;;  %v9766_v4 = vadd.f32 %v3492_v13, %v9728_v58 }
 0x3cf   : > { %v3496_v5 = vpop.f32.mrb[90].mxu1  ;;  %4471 = vmatpush1.bf16.msra.mxu0 %v8165_v10  ;;  %v9772_v63 = vadd.f32 %v3494_v57, %v9731_v16 }
 0x3d0   : > { %v9769_v23 = vadd.f32 %v3496_v5, %v9728_v58  ;;  %v3498_v18 = vpop.f32.mrb[91].mxu1  ;;  %4472 = vmatprep.subr.bf16.mxu0 %v8173_v29  ;;  %v8213_v5 = vld [vmem:[#allocation6 + $0x468] ss:$56 sps:$4 sm:$0xff]  }
 0x3d1   : > { %v9775_v50 = vadd.f32 %v3498_v18, %v9731_v16 }
 0x3d2   : > { %v3587_v42 = vpack.c.bf16 %v9769_v23, %v9766_v4 }
 0x3d3   : > { %v3588_v35 = vpack.c.bf16 %v9775_v50, %v9772_v63  ;;  %4473 = vmatpush1.bf16.msra.mxu0 %v8171_v39  ;;  %v8221_v39 = vld [vmem:[#allocation6 + $0x4dc] ss:$56 sps:$4 sm:$0xff]  }
 0x3d4   : > { %4474 = vmatprep.subr.bf16.mxu0 %v8179_v60 }
 0x3d5   : > { %v3502_v8 = vpop.f32.mrb[92].mxu1  ;;  %3823 = vmatprep.mubr.bf16.mxu0 %v3588_v35  ;;  %v8219_v35 = vld [vmem:[#allocation6 + $0x4d8] ss:$56 sps:$4 sm:$0xff]  }
 0x3d6   : > { %v3504_v45 = vpop.f32.mrb[93].mxu1  ;;  %3824 = vmatmul.mubr.bf16.gmra.mrb[72].mxu0 %v3587_v42  ;;  %v9782_v7 = vadd.f32 %v3502_v8, %v9728_v58 }
 0x3d7   : > { %v3506_v34 = vpop.f32.mrb[94].mxu1  ;;  %4475 = vmatpush1.bf16.msra.mxu0 %v8177_v52  ;;  %v9788_v41 = vadd.f32 %v3504_v45, %v9731_v16  ;;  %v8227_v45 = vld [vmem:[#allocation6 + $0x54c] ss:$56 sps:$4 sm:$0xff]  }
 0x3d8   : > { %v9785_v40 = vadd.f32 %v3506_v34, %v9728_v58  ;;  %v3508_v25 = vpop.f32.mrb[95].mxu1  ;;  %4476 = vmatprep.subr.bf16.mxu0 %v8185_v48 }
 0x3d9   : > { %v9791_v36 = vadd.f32 %v3508_v25, %v9731_v16 }
 0x3da   : > { %v3589_v31 = vpack.c.bf16 %v9785_v40, %v9782_v7 }
 0x3db   : > { %v3590_v21 = vpack.c.bf16 %v9791_v36, %v9788_v41  ;;  %4477 = vmatpush1.bf16.msra.mxu0 %v8183_v26 }
 0x3dc   : > { %4478 = vmatprep.subr.bf16.mxu0 %v8191_v47 }
 0x3dd   : > { %v3512_v12 = vpop.f32.mrb[96].mxu1  ;;  %3833 = vmatprep.mubr.bf16.mxu0 %v3590_v21 }
 0x3de   : > { %v3514_v24 = vpop.f32.mrb[97].mxu1  ;;  %3834 = vmatmul.mubr.bf16.gmra.mrb[76].mxu0 %v3589_v31  ;;  %v9798_v43 = vadd.f32 %v3512_v12, %v9728_v58  ;;  %v8225_v31 = vld [vmem:[#allocation6 + $0x548] ss:$56 sps:$4 sm:$0xff]  }
 0x3df   : > { %v3516_v27 = vpop.f32.mrb[98].mxu1  ;;  %4479 = vmatpush1.bf16.msra.mxu0 %v8189_v15  ;;  %v9804_v32 = vadd.f32 %v3514_v24, %v9731_v16 }
 0x3e0   : > { %v9801_v51 = vadd.f32 %v3516_v27, %v9728_v58  ;;  %v3518_v54 = vpop.f32.mrb[99].mxu1  ;;  %4480 = vmatprep.subr.bf16.mxu0 %v8197_v9 }
 0x3e1   : > { %v9807_v3 = vadd.f32 %v3518_v54, %v9731_v16 }
 0x3e2   : > { %v3591_v59 = vpack.c.bf16 %v9801_v51, %v9798_v43 }
 0x3e3   : > { %v3592_v22 = vpack.c.bf16 %v9807_v3, %v9804_v32  ;;  %4481 = vmatpush1.bf16.msra.mxu0 %v8195_v1 }
 0x3e4   : > { %4482 = vmatprep.subr.bf16.mxu0 %v8203_v2 }
 0x3e5   : > { %v3522_v14 = vpop.f32.mrb[100].mxu1  ;;  %3843 = vmatprep.mubr.bf16.mxu0 %v3592_v22  ;;  %v8231_v22 = vld [vmem:[#allocation6 + $0x5b8] ss:$56 sps:$4 sm:$0xff]  }
 0x3e6   : > { %v3524_v49 = vpop.f32.mrb[101].mxu1  ;;  %3844 = vmatmul.mubr.bf16.gmra.mrb[80].mxu0 %v3591_v59  ;;  %v9814_v55 = vadd.f32 %v3522_v14, %v9728_v58  ;;  %v8237_v14 = vld [vmem:[#allocation6 + $0x628] ss:$56 sps:$4 sm:$0xff]  }
 0x3e7   : > { %v3526_v62 = vpop.f32.mrb[102].mxu1  ;;  %4483 = vmatpush1.bf16.msra.mxu0 %v8201_v17  ;;  %v9820_v10 = vadd.f32 %v3524_v49, %v9731_v16  ;;  %v8233_v17 = vld [vmem:[#allocation6 + $0x5bc] ss:$56 sps:$4 sm:$0xff]   ;;  %v8239_v49 = vld [vmem:[#allocation6 + $0x62c] ss:$56 sps:$4 sm:$0xff]  }
 0x3e8   : > { %v9817_v46 = vadd.f32 %v3526_v62, %v9728_v58  ;;  %v3528_v11 = vpop.f32.mrb[103].mxu1  ;;  %4484 = vmatprep.subr.bf16.mxu0 %v8209_v33  ;;  %v8236_v33 = vld [vmem:[#allocation6 + $0x5c4] ss:$56 sps:$4 sm:$0xff]   ;;  %v8242_v62 = vld [vmem:[#allocation6 + $0x634] ss:$56 sps:$4 sm:$0xff]  }
 0x3e9   : > { %v9823_v29 = vadd.f32 %v3528_v11, %v9731_v16  ;;  %4605 = vmatprep.subr.bf16.mxu1 %v8236_v33  ;;  %v8245_v11 = vld [vmem:[#allocation6 + $0x69c] ss:$56 sps:$4 sm:$0xff]  }
 0x3ea   : > { %v3593_v13 = vpack.c.bf16 %v9817_v46, %v9814_v55 }
 0x3eb   : > { %v3594_v57 = vpack.c.bf16 %v9823_v29, %v9820_v10  ;;  %4485 = vmatpush1.bf16.msra.mxu0 %v8207_v53  ;;  %v8243_v53 = vld [vmem:[#allocation6 + $0x698] ss:$56 sps:$4 sm:$0xff]  }
 0x3ec   : > { %4486 = vmatprep.subr.bf16.mxu0 %v8215_v6  ;;  %v8248_v6 = vld [vmem:[#allocation6 + $0x6a4] ss:$56 sps:$4 sm:$0xff]  }
 0x3ed   : > { %v3532_v18 = vpop.f32.mrb[104].mxu1  ;;  %3853 = vmatprep.mubr.bf16.mxu0 %v3594_v57  ;;  %v8251_v57 = vld [vmem:[#allocation6 + $0x1c] ss:$56 sps:$4 sm:$0xff]  }
 0x3ee   : > { %v3534_v60 = vpop.f32.mrb[105].mxu1  ;;  %3854 = vmatmul.mubr.bf16.gmra.mrb[84].mxu0 %v3593_v13  ;;  %v9830_v52 = vadd.f32 %v3532_v18, %v9728_v58  ;;  %v8246_v13 = vld [vmem:[#allocation6 + $0x6a0] ss:$56 sps:$4 sm:$0xff]  }
 0x3ef   : > { %v3536_v42 = vpop.f32.mrb[106].mxu1  ;;  %4487 = vmatpush1.bf16.msra.mxu0 %v8213_v5  ;;  %v9836_v34 = vadd.f32 %v3534_v60, %v9731_v16  ;;  %v8254_v5 = vld [vmem:[#allocation6 + $0x30] ss:$56 sps:$4 sm:$0xff]  }
 0x3f0   : > { %v9833_v48 = vadd.f32 %v3536_v42, %v9728_v58  ;;  %v3538_v8 = vpop.f32.mrb[107].mxu1  ;;  %4488 = vmatprep.subr.bf16.mxu0 %v8221_v39  ;;  %v3599_v39 = vld [vmem:[%s10598_s5 + $0xb] sm:$0x3] }
 0x3f1   : > { %v9839_v26 = vadd.f32 %v3538_v8, %v9731_v16  ;;  %v9865_v18 = vrot.slane %v3599_v39, %v10657_v0  ;;  %v9868_v60 = vrot.slane %v3599_v39, %v10658_v56 }
 0x3f2   : > { %v3595_v25 = vpack.c.bf16 %v9833_v48, %v9830_v52 }
 0x3f3   : > { %v3596_v47 = vpack.c.bf16 %v9839_v26, %v9836_v34  ;;  %4489 = vmatpush1.bf16.msra.mxu0 %v8219_v35 }
 0x3f4   : > { %4490 = vmatprep.subr.bf16.mxu0 %v8227_v45 }
 0x3f5   : > { %v3542_v21 = vpop.f32.mrb[108].mxu1  ;;  %3863 = vmatprep.mubr.bf16.mxu0 %v3596_v47  ;;  %v3980_v47 = vmul.f32 0.70710677, %v9734_v20 }
 0x3f6   : > { %v3544_v15 = vpop.f32.mrb[109].mxu1  ;;  %3864 = vmatmul.mubr.bf16.gmra.mrb[88].mxu0 %v3595_v25  ;;  %v9846_v12 = vadd.f32 %v3542_v21, %v9728_v58 }
 0x3f7   : > { %v3546_v9 = vpop.f32.mrb[110].mxu1  ;;  %4491 = vmatpush1.bf16.msra.mxu0 %v8225_v31  ;;  %v9852_v1 = vadd.f32 %v3544_v15, %v9731_v16 }
 0x3f8   : > { %v9849_v24 = vadd.f32 %v3546_v9, %v9728_v58  ;;  %v3548_v27 = vpop.f32.mrb[111].mxu1  ;;  %4492 = vmatprep.subr.bf16.mxu0 %v8233_v17  ;;  %v8234_v58 = vld [vmem:[#allocation6 + $0x5c0] ss:$56 sps:$4 sm:$0xff]   ;;  %v3981_v9 = vmul.f32 0.70710677, %v9740_v38 }
 0x3f9   : > { %v9855_v54 = vadd.f32 %v3548_v27, %v9731_v16  ;;  %4606 = vmatpush1.bf16.msra.mxu1 %v8234_v58  ;;  %v8240_v16 = vld [vmem:[#allocation6 + $0x630] ss:$56 sps:$4 sm:$0xff]  }
 0x3fa   : > { %v3597_v2 = vpack.c.bf16 %v9849_v24, %v9846_v12  ;;  %4607 = vmatprep.subr.bf16.mxu1 %v8242_v62 }
 0x3fb   : > { %v3598_v59 = vpack.c.bf16 %v9855_v54, %v9852_v1  ;;  %4493 = vmatpush1.bf16.msra.mxu0 %v8231_v22 }
 0x3fc   : > { %4494 = vmatprep.subr.bf16.mxu0 %v8239_v49 }
 0x3fd   : > { %3873 = vmatprep.mubr.bf16.mxu0 %v3598_v59  ;;  %4608 = vmatpush1.bf16.msra.mxu1 %v8240_v16  ;;  %v3982_v59 = vmul.f32 0.70710677, %v9737_v30 }
 0x3fe   : > { %3874 = vmatmul.mubr.bf16.gmra.mrb[92].mxu0 %v3597_v2  ;;  %4609 = vmatprep.subr.bf16.mxu1 %v8248_v6  ;;  %v3985_v6 = vmul.f32 0.70710677, %v9756_v44 }
 0x3ff   : > { %4495 = vmatpush1.bf16.msra.mxu0 %v8237_v14  ;;  %v3983_v14 = vmul.f32 0.70710677, %v9743_v61 }
 0x400   : > { %4496 = vmatprep.subr.bf16.mxu0 %v8245_v11  ;;  %v3984_v11 = vmul.f32 0.70710677, %v9750_v37 }
 0x401   : > { %4610 = vmatpush1.bf16.msra.mxu1 %v8246_v13 }
 0x402   : > { %5533 = vmatprep.subr.bf16.mxu1 %v8254_v5 }
 0x403   : > { %4497 = vmatpush1.bf16.msra.mxu0 %v8243_v53 }
 0x404   : > { %5104 = vmatprep.subr.bf16.mxu0 %v8251_v57 }
 0x499   : > { %v3805_v42 = vpop.f32.mrb[64].mxu0 }
 0x49a   : > { %v3806_v35 = vadd.f32 %v3805_v42, %v9865_v18  ;;  %v3807_v8 = vpop.f32.mrb[65].mxu0 }
 0x49b   : > { %v3808_v45 = vadd.f32 %v3807_v8, %v9868_v60  ;;  %v3809_v25 = vpop.f32.mrb[66].mxu0  ;;  %v8252_v8 = vld [vmem:[#allocation6 + $0x2c] ss:$56 sps:$4 sm:$0xff]  }
 0x49c   : > { %vm3884_vm0 = vcmp.ge.f32.partialorder %v3806_v35, 0.0  ;;  %v3916_v31 = vmul.f32 0.01, %v3806_v35  ;;  %v3810_v21 = vadd.f32 %v3809_v25, %v9865_v18  ;;  %v3811_v15 = vpop.f32.mrb[67].mxu0 }
 0x49d   : > { %vm3885_vm2 = vcmp.ge.f32.partialorder %v3808_v45, 0.0  ;;  %v3917_v27 = vmul.f32 0.01, %v3808_v45  ;;  %v3812_v2 = vadd.f32 %v3811_v15, %v9868_v60  ;;  %v3986_v15 = vmul.f32 0.70710677, %v9753_v28 }
 0x49e   : > { %v3948_v22 = vsel %vm3884_vm0, %v3806_v35, %v3916_v31  ;;  %vm3886_vm3 = vcmp.ge.f32.partialorder %v3810_v21, 0.0  ;;  %v3918_v17 = vmul.f32 0.01, %v3810_v21  ;;  %v8249_v35 = vld [vmem:[#allocation6 + $0x18] ss:$56 sps:$4 sm:$0xff]  }
 0x49f   : > { %v4012_v58 = vadd.f32 %v3980_v47, %v3948_v22  ;;  %v3949_v33 = vsel %vm3885_vm2, %v3808_v45, %v3917_v27  ;;  %vm3887_vm4 = vcmp.ge.f32.partialorder %v3812_v2, 0.0  ;;  %v3919_v20 = vmul.f32 0.01, %v3812_v2  ;;  %v8257_v31 = vld [vmem:[#allocation6 + $0x8c] ss:$56 sps:$4 sm:$0xff]  }
 0x4a0   : > { %v3950_v49 = vsel %vm3886_vm3, %v3810_v21, %v3918_v17  ;;  %v4013_v62 = vadd.f32 %v3981_v9, %v3949_v33  ;;  %v8260_v21 = vld [vmem:[#allocation6 + $0xa0] ss:$56 sps:$4 sm:$0xff]   ;;  %v3987_v17 = vmul.f32 0.70710677, %v9759_v19 }
 0x4a1   : > { %v4014_v16 = vadd.f32 %v3982_v59, %v3950_v49  ;;  %v3951_v53 = vsel %vm3887_vm4, %v3812_v2, %v3919_v20  ;;  %v3815_v38 = vpop.f32.mrb[68].mxu0  ;;  %v8255_v20 = vld [vmem:[#allocation6 + $0x88] ss:$56 sps:$4 sm:$0xff]  }
 0x4a2   : > { %v3816_v30 = vadd.f32 %v3815_v38, %v9865_v18  ;;  %v3817_v13 = vpop.f32.mrb[69].mxu0  ;;  %v4015_v57 = vadd.f32 %v3983_v14, %v3951_v53  ;;  %v8258_v14 = vld [vmem:[#allocation6 + $0x9c] ss:$56 sps:$4 sm:$0xff]   ;;  %v8266_v53 = vld [vmem:[#allocation6 + $0x110] ss:$56 sps:$4 sm:$0xff]  }
 0x4a3   : > { %v4108_v5 = vpack.c.bf16 %v4014_v16, %v4012_v58  ;;  %v3818_v39 = vadd.f32 %v3817_v13, %v9868_v60  ;;  %v3819_v42 = vpop.f32.mrb[70].mxu0  ;;  %v8263_v16 = vld [vmem:[#allocation6 + $0xfc] ss:$56 sps:$4 sm:$0xff]   ;;  %v3988_v38 = vmul.f32 0.70710677, %v9766_v4 }
 0x4a4   : > { %vm3888_vm5 = vcmp.ge.f32.partialorder %v3816_v30, 0.0  ;;  %v3920_v61 = vmul.f32 0.01, %v3816_v30  ;;  %v3820_v45 = vadd.f32 %v3819_v42, %v9865_v18  ;;  %v3821_v25 = vpop.f32.mrb[71].mxu0  ;;  %v4109_v47 = vpack.c.bf16 %v4015_v57, %v4013_v62  ;;  %v8264_v42 = vld [vmem:[#allocation6 + $0x10c] ss:$56 sps:$4 sm:$0xff]  }
 0x4a5   : > { %vm3889_vm6 = vcmp.ge.f32.partialorder %v3818_v39, 0.0  ;;  %v3921_v37 = vmul.f32 0.01, %v3818_v39  ;;  %v3822_v44 = vadd.f32 %v3821_v25, %v9868_v60  ;;  %v8269_v4 = vld [vmem:[#allocation6 + $0x16c] ss:$56 sps:$4 sm:$0xff]  }
 0x4a6   : > { %v3952_v9 = vsel %vm3888_vm5, %v3816_v30, %v3920_v61  ;;  %vm3890_vm8 = vcmp.ge.f32.partialorder %v3820_v45, 0.0  ;;  %v3922_v27 = vmul.f32 0.01, %v3820_v45  ;;  %4498 = vmatprep.mubr.bf16.mxu0 %v4109_v47  ;;  %4611 = vmatprep.mubr.bf16.mxu1 %v4109_v47  ;;  %v3989_v30 = vmul.f32 0.70710677, %v9772_v63 }
 0x4a7   : > { %v3953_v2 = vsel %vm3889_vm6, %v3818_v39, %v3921_v37  ;;  %vm3891_vm9 = vcmp.ge.f32.partialorder %v3822_v44, 0.0  ;;  %v3923_v59 = vmul.f32 0.01, %v3822_v44  ;;  %4499 = vmatmul.mubr.bf16.vlgmr.msra.gmra.mrb[96].mxu0 %v4108_v5  ;;  %4612 = vmatmul.mubr.bf16.vlgmr.msra.gmra.mrb[112].mxu1 %v4108_v5  ;;  %v4016_v22 = vadd.f32 %v3984_v11, %v3952_v9  ;;  %v8261_v39 = vld [vmem:[#allocation6 + $0xf8] ss:$56 sps:$4 sm:$0xff]  }
 0x4a8   : > { %v3954_v58 = vsel %vm3890_vm8, %v3820_v45, %v3922_v27  ;;  %v4017_v33 = vadd.f32 %v3985_v6, %v3953_v2  ;;  %5105 = vmatpush1.bf16.msra.mxu0 %v8249_v35  ;;  %5534 = vmatpush1.bf16.msra.mxu1 %v8252_v8  ;;  %v8272_v47 = vld [vmem:[#allocation6 + $0x180] ss:$56 sps:$4 sm:$0xff]   ;;  %v3991_v27 = vmul.f32 0.70710677, %v9775_v50 }
 0x4a9   : > { %v3955_v28 = vsel %vm3891_vm9, %v3822_v44, %v3923_v59  ;;  %v3825_v49 = vpop.f32.mrb[72].mxu0  ;;  %v4018_v62 = vadd.f32 %v3986_v15, %v3954_v58  ;;  %5106 = vmatprep.subr.bf16.mxu0 %v8257_v31  ;;  %5535 = vmatprep.subr.bf16.mxu1 %v8260_v21  ;;  %v3990_v31 = vmul.f32 0.70710677, %v9769_v23 }
 0x4aa   : > { %v3826_v11 = vadd.f32 %v3825_v49, %v9865_v18  ;;  %v3827_v19 = vpop.f32.mrb[73].mxu0  ;;  %v4019_v13 = vadd.f32 %v3987_v17, %v3955_v28  ;;  %v8270_v17 = vld [vmem:[#allocation6 + $0x17c] ss:$56 sps:$4 sm:$0xff]   ;;  %v3992_v28 = vmul.f32 0.70710677, %v9782_v7 }
 0x4ab   : > { %v3828_v6 = vadd.f32 %v3827_v19, %v9868_v60  ;;  %v3829_v57 = vpop.f32.mrb[74].mxu0  ;;  %v4110_v5 = vpack.c.bf16 %v4018_v62, %v4016_v22  ;;  %v8267_v22 = vld [vmem:[#allocation6 + $0x168] ss:$56 sps:$4 sm:$0xff]   ;;  %v3993_v49 = vmul.f32 0.70710677, %v9788_v41 }
 0x4ac   : > { %vm3892_vm13 = vcmp.ge.f32.partialorder %v3826_v11, 0.0  ;;  %v3924_v35 = vmul.f32 0.01, %v3826_v11  ;;  %v3830_v8 = vadd.f32 %v3829_v57, %v9865_v18  ;;  %v3831_v61 = vpop.f32.mrb[75].mxu0  ;;  %v4111_v45 = vpack.c.bf16 %v4019_v13, %v4017_v33  ;;  %5107 = vmatpush1.bf16.msra.mxu0 %v8255_v20  ;;  %5536 = vmatpush1.bf16.msra.mxu1 %v8258_v14  ;;  %v8275_v20 = vld [vmem:[#allocation6 + $0x1dc] ss:$56 sps:$4 sm:$0xff]  }
 0x4ad   : > { %vm3893_vm1 = vcmp.ge.f32.partialorder %v3828_v6, 0.0  ;;  %v3925_v63 = vmul.f32 0.01, %v3828_v6  ;;  %v3832_v25 = vadd.f32 %v3831_v61, %v9868_v60  ;;  %5108 = vmatprep.subr.bf16.mxu0 %v8263_v16  ;;  %5537 = vmatprep.subr.bf16.mxu1 %v8266_v53  ;;  %v8278_v14 = vld [vmem:[#allocation6 + $0x1f0] ss:$56 sps:$4 sm:$0xff]  }
 0x4ae   : > { %v3956_v37 = vsel %vm3892_vm13, %v3826_v11, %v3924_v35  ;;  %vm3894_vm7 = vcmp.ge.f32.partialorder %v3830_v8, 0.0  ;;  %v3926_v44 = vmul.f32 0.01, %v3830_v8  ;;  %4508 = vmatprep.mubr.bf16.mxu0 %v4111_v45  ;;  %4621 = vmatprep.mubr.bf16.mxu1 %v4111_v45  ;;  %v8273_v11 = vld [vmem:[#allocation6 + $0x1d8] ss:$56 sps:$4 sm:$0xff]  }
 0x4af   : > { %v3957_v21 = vsel %vm3893_vm1, %v3828_v6, %v3925_v63  ;;  %vm3895_vm10 = vcmp.ge.f32.partialorder %v3832_v25, 0.0  ;;  %v3927_v15 = vmul.f32 0.01, %v3832_v25  ;;  %4509 = vmatmul.mubr.bf16.gmra.mrb[100].mxu0 %v4110_v5  ;;  %4622 = vmatmul.mubr.bf16.gmra.mrb[116].mxu1 %v4110_v5  ;;  %v4020_v9 = vadd.f32 %v3988_v38, %v3956_v37  ;;  %v8276_v19 = vld [vmem:[#allocation6 + $0x1ec] ss:$56 sps:$4 sm:$0xff]  }
 0x4b0   : > { %v3958_v2 = vsel %vm3894_vm7, %v3830_v8, %v3926_v44  ;;  %v4021_v59 = vadd.f32 %v3989_v30, %v3957_v21  ;;  %5109 = vmatpush1.bf16.msra.mxu0 %v8261_v39  ;;  %5538 = vmatpush1.bf16.msra.mxu1 %v8264_v42  ;;  %v8281_v7 = vld [vmem:[#allocation6 + $0x24c] ss:$56 sps:$4 sm:$0xff]   ;;  %v8284_v42 = vld [vmem:[#allocation6 + $0x260] ss:$56 sps:$4 sm:$0xff]   ;;  %v3994_v35 = vmul.f32 0.70710677, %v9785_v40 }
 0x4b1   : > { %v3959_v23 = vsel %vm3895_vm10, %v3832_v25, %v3927_v15  ;;  %v3835_v58 = vpop.f32.mrb[76].mxu0  ;;  %v4022_v33 = vadd.f32 %v3990_v31, %v3958_v2  ;;  %5110 = vmatprep.subr.bf16.mxu0 %v8269_v4  ;;  %5539 = vmatprep.subr.bf16.mxu1 %v8272_v47  ;;  %v3995_v25 = vmul.f32 0.70710677, %v9791_v36  ;;  %v8279_v37 = vld [vmem:[#allocation6 + $0x248] ss:$56 sps:$4 sm:$0xff]  }
 0x4b2   : > { %v3836_v62 = vadd.f32 %v3835_v58, %v9865_v18  ;;  %v3837_v50 = vpop.f32.mrb[77].mxu0  ;;  %v4023_v16 = vadd.f32 %v3991_v27, %v3959_v23  ;;  %v8282_v44 = vld [vmem:[#allocation6 + $0x25c] ss:$56 sps:$4 sm:$0xff]   ;;  %v8290_v27 = vld [vmem:[#allocation6 + $0x2d0] ss:$56 sps:$4 sm:$0xff]  }
 0x4b3   : > { %v3838_v53 = vadd.f32 %v3837_v50, %v9868_v60  ;;  %v3839_v38 = vpop.f32.mrb[78].mxu0  ;;  %v4112_v30 = vpack.c.bf16 %v4022_v33, %v4020_v9  ;;  %v8287_v9 = vld [vmem:[#allocation6 + $0x2bc] ss:$56 sps:$4 sm:$0xff]   ;;  %v3996_v2 = vmul.f32 0.70710677, %v9798_v43 }
 0x4b4   : > { %vm3896_vm11 = vcmp.ge.f32.partialorder %v3836_v62, 0.0  ;;  %v3928_v13 = vmul.f32 0.01, %v3836_v62  ;;  %v3840_v6 = vadd.f32 %v3839_v38, %v9865_v18  ;;  %v3841_v57 = vpop.f32.mrb[79].mxu0  ;;  %v4113_v5 = vpack.c.bf16 %v4023_v16, %v4021_v59  ;;  %5111 = vmatpush1.bf16.msra.mxu0 %v8267_v22  ;;  %5540 = vmatpush1.bf16.msra.mxu1 %v8270_v17  ;;  %v8293_v43 = vld [vmem:[#allocation6 + $0x32c] ss:$56 sps:$4 sm:$0xff]  }
 0x4b5   : > { %vm3897_vm12 = vcmp.ge.f32.partialorder %v3838_v53, 0.0  ;;  %v3929_v41 = vmul.f32 0.01, %v3838_v53  ;;  %v3842_v39 = vadd.f32 %v3841_v57, %v9868_v60  ;;  %5112 = vmatprep.subr.bf16.mxu0 %v8275_v20  ;;  %5541 = vmatprep.subr.bf16.mxu1 %v8278_v14  ;;  %v3997_v59 = vmul.f32 0.70710677, %v9804_v32 }
 0x4b6   : > { %v3960_v8 = vsel %vm3896_vm11, %v3836_v62, %v3928_v13  ;;  %vm3898_vm14 = vcmp.ge.f32.partialorder %v3840_v6, 0.0  ;;  %v3930_v61 = vmul.f32 0.01, %v3840_v6  ;;  %4518 = vmatprep.mubr.bf16.mxu0 %v4113_v5  ;;  %4631 = vmatprep.mubr.bf16.mxu1 %v4113_v5  ;;  %v8285_v20 = vld [vmem:[#allocation6 + $0x2b8] ss:$56 sps:$4 sm:$0xff]  }
 0x4b7   : > { %v3961_v45 = vsel %vm3897_vm12, %v3838_v53, %v3929_v41  ;;  %vm3899_vm15 = vcmp.ge.f32.partialorder %v3842_v39, 0.0  ;;  %v3931_v4 = vmul.f32 0.01, %v3842_v39  ;;  %4519 = vmatmul.mubr.bf16.gmra.mrb[104].mxu0 %v4112_v30  ;;  %4632 = vmatmul.mubr.bf16.gmra.mrb[120].mxu1 %v4112_v30  ;;  %v4024_v63 = vadd.f32 %v3992_v28, %v3960_v8  ;;  %v8288_v14 = vld [vmem:[#allocation6 + $0x2cc] ss:$56 sps:$4 sm:$0xff]  }
 0x4b8   : > { %v3962_v47 = vsel %vm3898_vm14, %v3840_v6, %v3930_v61  ;;  %v4025_v31 = vadd.f32 %v3993_v49, %v3961_v45  ;;  %5113 = vmatpush1.bf16.msra.mxu0 %v8273_v11  ;;  %5542 = vmatpush1.bf16.msra.mxu1 %v8276_v19  ;;  %v8296_v53 = vld [vmem:[#allocation6 + $0x340] ss:$56 sps:$4 sm:$0xff]   ;;  %v3998_v38 = vmul.f32 0.70710677, %v9801_v51  ;;  %v3999_v57 = vmul.f32 0.70710677, %v9807_v3 }
 0x4b9   : > { %v3963_v40 = vsel %vm3899_vm15, %v3842_v39, %v3931_v4  ;;  %v3845_v21 = vpop.f32.mrb[80].mxu0  ;;  %v4026_v15 = vadd.f32 %v3994_v35, %v3962_v47  ;;  %5114 = vmatprep.subr.bf16.mxu0 %v8281_v7  ;;  %5543 = vmatprep.subr.bf16.mxu1 %v8284_v42  ;;  %v8291_v41 = vld [vmem:[#allocation6 + $0x328] ss:$56 sps:$4 sm:$0xff]   ;;  %v8294_v39 = vld [vmem:[#allocation6 + $0x33c] ss:$56 sps:$4 sm:$0xff]  }
 0x4ba   : > { %v3846_v22 = vadd.f32 %v3845_v21, %v9865_v18  ;;  %v3847_v36 = vpop.f32.mrb[81].mxu0  ;;  %v4027_v17 = vadd.f32 %v3995_v25, %v3963_v40  ;;  %v8299_v8 = vld [vmem:[#allocation6 + $0x39c] ss:$56 sps:$4 sm:$0xff]   ;;  %v8302_v61 = vld [vmem:[#allocation6 + $0x3b0] ss:$56 sps:$4 sm:$0xff]  }
 0x4bb   : > { %v3848_v23 = vadd.f32 %v3847_v36, %v9868_v60  ;;  %v3849_v58 = vpop.f32.mrb[82].mxu0  ;;  %v4114_v33 = vpack.c.bf16 %v4026_v15, %v4024_v63  ;;  %v4000_v45 = vmul.f32 0.70710677, %v9814_v55  ;;  %v4001_v4 = vmul.f32 0.70710677, %v9820_v10 }
 0x4bc   : > { %vm3900_vm0 = vcmp.ge.f32.partialorder %v3846_v22, 0.0  ;;  %v3932_v28 = vmul.f32 0.01, %v3846_v22  ;;  %v3850_v49 = vadd.f32 %v3849_v58, %v9865_v18  ;;  %v3851_v62 = vpop.f32.mrb[83].mxu0  ;;  %v4115_v50 = vpack.c.bf16 %v4027_v17, %v4025_v31  ;;  %5115 = vmatpush1.bf16.msra.mxu0 %v8279_v37  ;;  %5544 = vmatpush1.bf16.msra.mxu1 %v8282_v44  ;;  %v8297_v44 = vld [vmem:[#allocation6 + $0x398] ss:$56 sps:$4 sm:$0xff]  }
 0x4bd   : > { %vm3901_vm2 = vcmp.ge.f32.partialorder %v3848_v23, 0.0  ;;  %v3933_v32 = vmul.f32 0.01, %v3848_v23  ;;  %v3852_v16 = vadd.f32 %v3851_v62, %v9868_v60  ;;  %5116 = vmatprep.subr.bf16.mxu0 %v8287_v9  ;;  %5545 = vmatprep.subr.bf16.mxu1 %v8290_v27  ;;  %v8300_v40 = vld [vmem:[#allocation6 + $0x3ac] ss:$56 sps:$4 sm:$0xff]  }
 0x4be   : > { %v3964_v30 = vsel %vm3900_vm0, %v3846_v22, %v3932_v28  ;;  %vm3902_vm3 = vcmp.ge.f32.partialorder %v3850_v49, 0.0  ;;  %v3934_v11 = vmul.f32 0.01, %v3850_v49  ;;  %4528 = vmatprep.mubr.bf16.mxu0 %v4115_v50  ;;  %4641 = vmatprep.mubr.bf16.mxu1 %v4115_v50  ;;  %v8305_v55 = vld [vmem:[#allocation6 + $0x40c] ss:$56 sps:$4 sm:$0xff]  }
 0x4bf   : > { %v3965_v19 = vsel %vm3901_vm2, %v3848_v23, %v3933_v32  ;;  %vm3903_vm4 = vcmp.ge.f32.partialorder %v3852_v16, 0.0  ;;  %v3935_v13 = vmul.f32 0.01, %v3852_v16  ;;  %4529 = vmatmul.mubr.bf16.gmra.mrb[108].mxu0 %v4114_v33  ;;  %4642 = vmatmul.mubr.bf16.gmra.mrb[124].mxu1 %v4114_v33  ;;  %v4028_v6 = vadd.f32 %v3996_v2, %v3964_v30  ;;  %v8306_v62 = vld [vmem:[#allocation6 + $0x41c] ss:$56 sps:$4 sm:$0xff]  }
 0x4c0   : > { %v3966_v5 = vsel %vm3902_vm3, %v3850_v49, %v3934_v11  ;;  %v4029_v7 = vadd.f32 %v3997_v59, %v3965_v19  ;;  %5117 = vmatpush1.bf16.msra.mxu0 %v8285_v20  ;;  %5546 = vmatpush1.bf16.msra.mxu1 %v8288_v14  ;;  %v8308_v59 = vld [vmem:[#allocation6 + $0x420] ss:$56 sps:$4 sm:$0xff]   ;;  %v4002_v22 = vmul.f32 0.70710677, %v9817_v46  ;;  %v4003_v20 = vmul.f32 0.70710677, %v9823_v29 }
 0x4c1   : > { %v3967_v51 = vsel %vm3903_vm4, %v3852_v16, %v3935_v13  ;;  %v3855_v42 = vpop.f32.mrb[84].mxu0  ;;  %v4030_v35 = vadd.f32 %v3998_v38, %v3966_v5  ;;  %5118 = vmatprep.subr.bf16.mxu0 %v8293_v43  ;;  %5547 = vmatprep.subr.bf16.mxu1 %v8296_v53  ;;  %v8303_v49 = vld [vmem:[#allocation6 + $0x408] ss:$56 sps:$4 sm:$0xff]   ;;  %v8311_v32 = vld [vmem:[#allocation6 + $0x47c] ss:$56 sps:$4 sm:$0xff]  }
 0x4c2   : > { %v3856_v63 = vadd.f32 %v3855_v42, %v9865_v18  ;;  %v3857_v3 = vpop.f32.mrb[85].mxu0  ;;  %v4031_v25 = vadd.f32 %v3999_v57, %v3967_v51  ;;  %v8314_v16 = vld [vmem:[#allocation6 + $0x490] ss:$56 sps:$4 sm:$0xff]   ;;  %v4004_v53 = vmul.f32 0.70710677, %v9830_v52 }
 0x4c3   : > { %v3858_v47 = vadd.f32 %v3857_v3, %v9868_v60  ;;  %v3859_v31 = vpop.f32.mrb[86].mxu0  ;;  %v4116_v37 = vpack.c.bf16 %v4030_v35, %v4028_v6  ;;  %v4005_v38 = vmul.f32 0.70710677, %v9836_v34  ;;  %v8309_v57 = vld [vmem:[#allocation6 + $0x478] ss:$56 sps:$4 sm:$0xff]  }
 0x4c4   : > { %vm3904_vm5 = vcmp.ge.f32.partialorder %v3856_v63, 0.0  ;;  %v3936_v21 = vmul.f32 0.01, %v3856_v63  ;;  %v3860_v15 = vadd.f32 %v3859_v31, %v9865_v18  ;;  %v3861_v9 = vpop.f32.mrb[87].mxu0  ;;  %v4117_v27 = vpack.c.bf16 %v4031_v25, %v4029_v7  ;;  %5119 = vmatpush1.bf16.msra.mxu0 %v8291_v41  ;;  %5548 = vmatpush1.bf16.msra.mxu1 %v8294_v39  ;;  %v8312_v5 = vld [vmem:[#allocation6 + $0x48c] ss:$56 sps:$4 sm:$0xff]  }
 0x4c5   : > { %vm3905_vm6 = vcmp.ge.f32.partialorder %v3858_v47, 0.0  ;;  %v3937_v10 = vmul.f32 0.01, %v3858_v47  ;;  %v3862_v2 = vadd.f32 %v3861_v9, %v9868_v60  ;;  %5120 = vmatprep.subr.bf16.mxu0 %v8299_v8  ;;  %5549 = vmatprep.subr.bf16.mxu1 %v8302_v61  ;;  %v8317_v52 = vld [vmem:[#allocation6 + $0x4ec] ss:$56 sps:$4 sm:$0xff]  }
 0x4c6   : > { %v3968_v36 = vsel %vm3904_vm5, %v3856_v63, %v3936_v21  ;;  %vm3906_vm8 = vcmp.ge.f32.partialorder %v3860_v15, 0.0  ;;  %v3938_v17 = vmul.f32 0.01, %v3860_v15  ;;  %4538 = vmatprep.mubr.bf16.mxu0 %v4117_v27  ;;  %4651 = vmatprep.mubr.bf16.mxu1 %v4117_v27  ;;  %v8320_v35 = vld [vmem:[#allocation6 + $0x500] ss:$56 sps:$4 sm:$0xff]  }
 0x4c7   : > { %v3969_v23 = vsel %vm3905_vm6, %v3858_v47, %v3937_v10  ;;  %vm3907_vm9 = vcmp.ge.f32.partialorder %v3862_v2, 0.0  ;;  %v3939_v58 = vmul.f32 0.01, %v3862_v2  ;;  %4539 = vmatmul.mubr.bf16.gmra.mrb[112].mxu0 %v4116_v37  ;;  %4652 = vmatmul.mubr.bf16.gmra.mrb[128].mxu1 %v4116_v37  ;;  %v4032_v33 = vadd.f32 %v4000_v45, %v3968_v36  ;;  %v8315_v37 = vld [vmem:[#allocation6 + $0x4e8] ss:$56 sps:$4 sm:$0xff]  }
 0x4c8   : > { %v3970_v14 = vsel %vm3906_vm8, %v3860_v15, %v3938_v17  ;;  %v4033_v28 = vadd.f32 %v4001_v4, %v3969_v23  ;;  %5121 = vmatpush1.bf16.msra.mxu0 %v8297_v44  ;;  %5550 = vmatpush1.bf16.msra.mxu1 %v8300_v40  ;;  %v4006_v8 = vmul.f32 0.70710677, %v9833_v48  ;;  %v4007_v25 = vmul.f32 0.70710677, %v9839_v26  ;;  %v8318_v44 = vld [vmem:[#allocation6 + $0x4fc] ss:$56 sps:$4 sm:$0xff]  }
 0x4c9   : > { %v3971_v46 = vsel %vm3907_vm9, %v3862_v2, %v3939_v58  ;;  %v3865_v50 = vpop.f32.mrb[88].mxu0  ;;  %v4034_v43 = vadd.f32 %v4002_v22, %v3970_v14  ;;  %5122 = vmatprep.subr.bf16.mxu0 %v8305_v55  ;;  %5551 = vmatprep.subr.bf16.mxu1 %v8308_v59  ;;  %v8323_v15 = vld [vmem:[#allocation6 + $0x55c] ss:$56 sps:$4 sm:$0xff]   ;;  %v8326_v9 = vld [vmem:[#allocation6 + $0x570] ss:$56 sps:$4 sm:$0xff]  }
 0x4ca   : > { %v3866_v30 = vadd.f32 %v3865_v50, %v9865_v18  ;;  %v3867_v29 = vpop.f32.mrb[89].mxu0  ;;  %v4035_v11 = vadd.f32 %v4003_v20, %v3971_v46  ;;  %v4008_v27 = vmul.f32 0.70710677, %v9846_v12  ;;  %v4009_v26 = vmul.f32 0.70710677, %v9852_v1 }
 0x4cb   : > { %v3868_v19 = vadd.f32 %v3867_v29, %v9868_v60  ;;  %v3869_v13 = vpop.f32.mrb[90].mxu0  ;;  %v4118_v6 = vpack.c.bf16 %v4034_v43, %v4032_v33  ;;  %v8321_v17 = vld [vmem:[#allocation6 + $0x558] ss:$56 sps:$4 sm:$0xff]   ;;  %v8324_v12 = vld [vmem:[#allocation6 + $0x56c] ss:$56 sps:$4 sm:$0xff]  }
 0x4cc   : > { %vm3908_vm13 = vcmp.ge.f32.partialorder %v3866_v30, 0.0  ;;  %v3940_v7 = vmul.f32 0.01, %v3866_v30  ;;  %v3870_v41 = vadd.f32 %v3869_v13, %v9865_v18  ;;  %v3871_v39 = vpop.f32.mrb[91].mxu0  ;;  %v4119_v51 = vpack.c.bf16 %v4035_v11, %v4033_v28  ;;  %5123 = vmatpush1.bf16.msra.mxu0 %v8303_v49  ;;  %5552 = vmatpush1.bf16.msra.mxu1 %v8306_v62  ;;  %v8329_v1 = vld [vmem:[#allocation6 + $0x5cc] ss:$56 sps:$4 sm:$0xff]  }
 0x4cd   : > { %vm3909_vm1 = vcmp.ge.f32.partialorder %v3868_v19, 0.0  ;;  %v3941_v34 = vmul.f32 0.01, %v3868_v19  ;;  %v3872_v42 = vadd.f32 %v3871_v39, %v9868_v60  ;;  %5124 = vmatprep.subr.bf16.mxu0 %v8311_v32  ;;  %5553 = vmatprep.subr.bf16.mxu1 %v8314_v16  ;;  %v4010_v49 = vmul.f32 0.70710677, %v9849_v24 }
 0x4ce   : > { %v3972_v61 = vsel %vm3908_vm13, %v3866_v30, %v3940_v7  ;;  %vm3910_vm7 = vcmp.ge.f32.partialorder %v3870_v41, 0.0  ;;  %v3942_v45 = vmul.f32 0.01, %v3870_v41  ;;  %4548 = vmatprep.mubr.bf16.mxu0 %v4119_v51  ;;  %4661 = vmatprep.mubr.bf16.mxu1 %v4119_v51  ;;  %v4011_v32 = vmul.f32 0.70710677, %v9855_v54 }
 0x4cf   : > { %v3973_v4 = vsel %vm3909_vm1, %v3868_v19, %v3941_v34  ;;  %vm3911_vm10 = vcmp.ge.f32.partialorder %v3872_v42, 0.0  ;;  %v3943_v63 = vmul.f32 0.01, %v3872_v42  ;;  %4549 = vmatmul.mubr.bf16.gmra.mrb[116].mxu0 %v4118_v6  ;;  %4662 = vmatmul.mubr.bf16.gmra.mrb[132].mxu1 %v4118_v6  ;;  %v4036_v3 = vadd.f32 %v4004_v53, %v3972_v61  ;;  %v8327_v53 = vld [vmem:[#allocation6 + $0x5c8] ss:$56 sps:$4 sm:$0xff]  }
 0x4d0   : > { %v3974_v47 = vsel %vm3910_vm7, %v3870_v41, %v3942_v45  ;;  %v4037_v31 = vadd.f32 %v4005_v38, %v3973_v4  ;;  %5125 = vmatpush1.bf16.msra.mxu0 %v8309_v57  ;;  %5554 = vmatpush1.bf16.msra.mxu1 %v8312_v5  ;;  %v8330_v19 = vld [vmem:[#allocation6 + $0x5dc] ss:$56 sps:$4 sm:$0xff]   ;;  %v8332_v13 = vld [vmem:[#allocation6 + $0x5e0] ss:$56 sps:$4 sm:$0xff]   ;;  %v8336_v57 = vld [vmem:[#allocation6 + $0x64c] ss:$56 sps:$4 sm:$0xff]  }
 0x4d1   : > { %v3975_v48 = vsel %vm3911_vm10, %v3872_v42, %v3943_v63  ;;  %v3875_v40 = vpop.f32.mrb[92].mxu0  ;;  %v4038_v21 = vadd.f32 %v4006_v8, %v3974_v47  ;;  %5126 = vmatprep.subr.bf16.mxu0 %v8317_v52  ;;  %5555 = vmatprep.subr.bf16.mxu1 %v8320_v35  ;;  %v8333_v54 = vld [vmem:[#allocation6 + $0x638] ss:$56 sps:$4 sm:$0xff]   ;;  %v8335_v6 = vld [vmem:[#allocation6 + $0x63c] ss:$56 sps:$4 sm:$0xff]  }
 0x4d2   : > { %v3876_v55 = vadd.f32 %v3875_v40, %v9865_v18  ;;  %v3877_v10 = vpop.f32.mrb[93].mxu0  ;;  %v4039_v2 = vadd.f32 %v4007_v25, %v3975_v48  ;;  %v8338_v5 = vld [vmem:[#allocation6 + $0x650] ss:$56 sps:$4 sm:$0xff]   ;;  %v8341_v7 = vld [vmem:[#allocation6 + $0x6ac] ss:$56 sps:$4 sm:$0xff]  }
 0x4d3   : > { %v3878_v59 = vadd.f32 %v3877_v10, %v9868_v60  ;;  %v3879_v22 = vpop.f32.mrb[94].mxu0  ;;  %v4120_v36 = vpack.c.bf16 %v4038_v21, %v4036_v3  ;;  %v8344_v41 = vld [vmem:[#allocation6 + $0x6c0] ss:$56 sps:$4 sm:$0xff]   ;;  %v8342_v51 = vld [vmem:[#allocation6 + $0x6bc] ss:$56 sps:$4 sm:$0xff]  }
 0x4d4   : > { %vm3912_vm11 = vcmp.ge.f32.partialorder %v3876_v55, 0.0  ;;  %v3944_v23 = vmul.f32 0.01, %v3876_v55  ;;  %v3880_v58 = vadd.f32 %v3879_v22, %v9865_v18  ;;  %v3881_v33 = vpop.f32.mrb[95].mxu0  ;;  %v4121_v20 = vpack.c.bf16 %v4039_v2, %v4037_v31  ;;  %5127 = vmatpush1.bf16.msra.mxu0 %v8315_v37  ;;  %5556 = vmatpush1.bf16.msra.mxu1 %v8318_v44  ;;  %v8339_v39 = vld [vmem:[#allocation6 + $0x6a8] ss:$56 sps:$4 sm:$0xff]  }
 0x4d5   : > { %vm3913_vm12 = vcmp.ge.f32.partialorder %v3878_v59, 0.0  ;;  %v3945_v14 = vmul.f32 0.01, %v3878_v59  ;;  %v3882_v28 = vadd.f32 %v3881_v33, %v9868_v60  ;;  %5128 = vmatprep.subr.bf16.mxu0 %v8323_v15  ;;  %5557 = vmatprep.subr.bf16.mxu1 %v8326_v9  ;;  %v8347_v52 = vld [vmem:[#allocation6 + $0x24] ss:$56 sps:$4 sm:$0xff]   ;;  %v10659_v8 = vld [vmem:[#allocation11_spill] sm:$0xff] }
 0x4d6   : > { %v3976_v62 = vsel %vm3912_vm11, %v3876_v55, %v3944_v23  ;;  %vm3914_vm14 = vcmp.ge.f32.partialorder %v3880_v58, 0.0  ;;  %v3946_v46 = vmul.f32 0.01, %v3880_v58  ;;  %4558 = vmatprep.mubr.bf16.mxu0 %v4121_v20  ;;  %4671 = vmatprep.mubr.bf16.mxu1 %v4121_v20  ;;  %v8372_v34 = vld [vmem:[#allocation6 + $0x3b4] ss:$56 sps:$4 sm:$0xff]   ;;  %v10660_v21 = vld [vmem:[#allocation12_spill] sm:$0xff] }
 0x4d7   : > { %v3977_v18 = vsel %vm3913_vm12, %v3878_v59, %v3945_v14  ;;  %vm3915_vm15 = vcmp.ge.f32.partialorder %v3882_v28, 0.0  ;;  %v3947_v50 = vmul.f32 0.01, %v3882_v28  ;;  %4559 = vmatmul.mubr.bf16.gmra.mrb[120].mxu0 %v4120_v36  ;;  %4672 = vmatmul.mubr.bf16.gmra.mrb[136].mxu1 %v4120_v36  ;;  %v4040_v43 = vadd.f32 %v4008_v27, %v3976_v62  ;;  %v4124_v42 = vld [vmem:[%s10598_s5 + $0xd] sm:$0xf] }
 0x4d8   : > { %v3978_v16 = vsel %vm3914_vm14, %v3880_v58, %v3946_v46  ;;  %v4041_v60 = vadd.f32 %v4009_v26, %v3977_v18  ;;  %5129 = vmatpush1.bf16.msra.mxu0 %v8321_v17  ;;  %5558 = vmatpush1.bf16.msra.mxu1 %v8324_v12  ;;  %v9938_v35 = vrot.slane %v4124_v42, %v10657_v0 }
 0x4d9   : > { %v3979_v38 = vsel %vm3915_vm15, %v3882_v28, %v3947_v50  ;;  %v4042_v24 = vadd.f32 %v4010_v49, %v3978_v16  ;;  %5130 = vmatprep.subr.bf16.mxu0 %v8329_v1  ;;  %5559 = vmatprep.subr.bf16.mxu1 %v8332_v13  ;;  %v9941_v61 = vrot.slane %v4124_v42, %v10659_v8 }
 0x4da   : > { %v4043_v30 = vadd.f32 %v4011_v32, %v3979_v38  ;;  %v9944_v63 = vrot.slane %v4124_v42, %v10658_v56  ;;  %v9950_v15 = vrot.slane %v4124_v42, %v10660_v21 }
 0x4db   : > { %v4122_v29 = vpack.c.bf16 %v4042_v24, %v4040_v43 }
 0x4dc   : > { %v4123_v11 = vpack.c.bf16 %v4043_v30, %v4041_v60  ;;  %5131 = vmatpush1.bf16.msra.mxu0 %v8327_v53  ;;  %5560 = vmatpush1.bf16.msra.mxu1 %v8330_v19 }
 0x4dd   : > { %5132 = vmatprep.subr.bf16.mxu0 %v8335_v6  ;;  %5561 = vmatprep.subr.bf16.mxu1 %v8338_v5 }
 0x4de   : > { %4568 = vmatprep.mubr.bf16.mxu0 %v4123_v11  ;;  %4681 = vmatprep.mubr.bf16.mxu1 %v4123_v11 }
 0x4df   : > { %4569 = vmatmul.mubr.bf16.gmra.mrb[124].mxu0 %v4122_v29  ;;  %4682 = vmatmul.mubr.bf16.gmra.mrb[140].mxu1 %v4122_v29 }
 0x4e0   : > { %5133 = vmatpush1.bf16.msra.mxu0 %v8333_v54  ;;  %5562 = vmatpush1.bf16.msra.mxu1 %v8336_v57 }
 0x4e1   : > { %5134 = vmatprep.subr.bf16.mxu0 %v8341_v7  ;;  %5563 = vmatprep.subr.bf16.mxu1 %v8344_v41  ;;  %v8345_v41 = vld [vmem:[#allocation6 + $0x20] ss:$56 sps:$4 sm:$0xff]  }
 0x4e4   : > { %5135 = vmatpush1.bf16.msra.mxu0 %v8339_v39  ;;  %5564 = vmatpush1.bf16.msra.mxu1 %v8342_v51  ;;  %v8350_v39 = vld [vmem:[#allocation6 + $0x94] ss:$56 sps:$4 sm:$0xff]  }
 0x4e5   : > { %5962 = vmatprep.subr.bf16.mxu0 %v8347_v52  ;;  %7301 = vmatprep.subr.bf16.mxu1 %v8372_v34  ;;  %v8373_v51 = vld [vmem:[#allocation6 + $0x34] ss:$56 sps:$4 sm:$0xff]  }
 0x57a   : > { %v4500_v45 = vpop.f32.mrb[96].mxu0  ;;  %v4613_v4 = vpop.f32.mrb[112].mxu1 }
 0x57b   : > { %v4501_v3 = vadd.f32 %v4500_v45, %v9938_v35  ;;  %v4614_v25 = vadd.f32 %v4613_v4, %v9941_v61  ;;  %v4502_v47 = vpop.f32.mrb[97].mxu0  ;;  %v4615_v31 = vpop.f32.mrb[113].mxu1  ;;  %v8377_v45 = vld [vmem:[#allocation6 + $0x424] ss:$56 sps:$4 sm:$0xff]  }
 0x57c   : > { %v4504_v37 = vpop.f32.mrb[98].mxu0  ;;  %v4617_v44 = vpop.f32.mrb[114].mxu1  ;;  %v4503_v40 = vadd.f32 %v4502_v47, %v9944_v63  ;;  %v4616_v23 = vadd.f32 %v4615_v31, %v9950_v15 }
 0x57d   : > { %v4506_v48 = vpop.f32.mrb[99].mxu0  ;;  %v4619_v9 = vpop.f32.mrb[115].mxu1  ;;  %v4724_v27 = vmul.f32 0.3, %v4501_v3  ;;  %v4820_v55 = vmul.f32 0.5, %v4614_v25  ;;  %v4505_v10 = vadd.f32 %v4504_v37, %v9938_v35  ;;  %v4618_v2 = vadd.f32 %v4617_v44, %v9941_v61 }
 0x57e   : > { %vm4692_vm0 = vcmp.ge.f32.partialorder %v4501_v3, 0.0  ;;  %vm4788_vm2 = vcmp.ge.f32.partialorder %v4614_v25, 0.0  ;;  %v4507_v26 = vadd.f32 %v4506_v48, %v9944_v63  ;;  %v4620_v59 = vadd.f32 %v4619_v9, %v9950_v15  ;;  %v8348_v37 = vld [vmem:[#allocation6 + $0x90] ss:$56 sps:$4 sm:$0xff]  }
 0x57f   : > { %vm4694_vm3 = vcmp.ge.f32.partialorder %v4505_v10, 0.0  ;;  %v4726_v22 = vmul.f32 0.3, %v4505_v10  ;;  %vm4790_vm4 = vcmp.ge.f32.partialorder %v4618_v2, 0.0  ;;  %v4822_v36 = vmul.f32 0.5, %v4618_v2 }
 0x580   : > { %v4725_v17 = vmul.f32 0.3, %v4503_v40  ;;  %v4756_v33 = vsel %vm4692_vm0, %v4501_v3, %v4724_v27  ;;  %v9957_v20 = vsel %vm4788_vm2, %v4614_v25, %v4820_v55  ;;  %vm4693_vm5 = vcmp.ge.f32.partialorder %v4503_v40, 0.0 }
 0x581   : > { %v4758_v12 = vsel %vm4694_vm3, %v4505_v10, %v4726_v22  ;;  %v9959_v14 = vsel %vm4790_vm4, %v4618_v2, %v4822_v36  ;;  %v4727_v46 = vmul.f32 0.3, %v4507_v26  ;;  %vm4695_vm6 = vcmp.ge.f32.partialorder %v4507_v26, 0.0 }
 0x582   : > { %v4510_v58 = vpop.f32.mrb[100].mxu0  ;;  %v4623_v28 = vpop.f32.mrb[116].mxu1  ;;  %v4916_v49 = vpack.c.bf16 %v4758_v12, %v4756_v33  ;;  %v5345_v62 = vpack.c.bf16 %v9959_v14, %v9957_v20  ;;  %v4823_v43 = vmul.f32 0.5, %v4620_v59  ;;  %v4821_v60 = vmul.f32 0.5, %v4616_v23 }
 0x583   : > { %v4512_v1 = vpop.f32.mrb[101].mxu0  ;;  %v4625_v18 = vpop.f32.mrb[117].mxu1  ;;  %vm4791_vm8 = vcmp.ge.f32.partialorder %v4620_v59, 0.0  ;;  %v9964_v53 = vadd.f32 %v4510_v58, %v9938_v35  ;;  %vm4789_vm9 = vcmp.ge.f32.partialorder %v4616_v23, 0.0  ;;  %v4757_v29 = vsel %vm4693_vm5, %v4503_v40, %v4725_v17  ;;  %v8378_v58 = vld [vmem:[#allocation6 + $0xa4] ss:$56 sps:$4 sm:$0xff]  }
 0x584   : > { %v4514_v50 = vpop.f32.mrb[102].mxu0  ;;  %v4627_v32 = vpop.f32.mrb[118].mxu1  ;;  %v4513_v24 = vadd.f32 %v4512_v1, %v9944_v63  ;;  %v4626_v30 = vadd.f32 %v4625_v18, %v9950_v15  ;;  %v9970_v11 = vadd.f32 %v4623_v28, %v9941_v61  ;;  %v4759_v54 = vsel %vm4695_vm6, %v4507_v26, %v4727_v46  ;;  %v8382_v28 = vld [vmem:[#allocation6 + $0x494] ss:$56 sps:$4 sm:$0xff]   ;;  %v8351_v18 = vld [vmem:[#allocation6 + $0x100] ss:$56 sps:$4 sm:$0xff]  }
 0x585   : > { %v4516_v16 = vpop.f32.mrb[103].mxu0  ;;  %v4629_v38 = vpop.f32.mrb[119].mxu1  ;;  %v4515_v19 = vadd.f32 %v4514_v50, %v9938_v35  ;;  %v4628_v6 = vadd.f32 %v4627_v32, %v9941_v61  ;;  %v4917_v5 = vpack.c.bf16 %v4759_v54, %v4757_v29  ;;  %v4855_v7 = vsel %vm4791_vm8, %v4620_v59, %v4823_v43  ;;  %v8353_v59 = vld [vmem:[#allocation6 + $0x104] ss:$56 sps:$4 sm:$0xff]  }
 0x586   : > { %v4517_v13 = vadd.f32 %v4516_v16, %v9944_v63  ;;  %v4630_v57 = vadd.f32 %v4629_v38, %v9950_v15  ;;  %v4728_v52 = vmul.f32 0.3, %v9964_v53  ;;  %v4853_v42 = vsel %vm4789_vm9, %v4616_v23, %v4821_v60  ;;  %v8356_v60 = vld [vmem:[#allocation6 + $0x174] ss:$56 sps:$4 sm:$0xff]   ;;  %v8387_v54 = vld [vmem:[#allocation6 + $0x504] ss:$56 sps:$4 sm:$0xff]  }
 0x587   : > { %v4729_v4 = vmul.f32 0.3, %v4513_v24  ;;  %v4825_v3 = vmul.f32 0.5, %v4626_v30  ;;  %5136 = vmatprep.mubr.bf16.mxu0 %v4917_v5  ;;  %v5346_v25 = vpack.c.bf16 %v4855_v7, %v4853_v42  ;;  %vm4696_vm1 = vcmp.ge.f32.partialorder %v9964_v53, 0.0 }
 0x588   : > { %vm4699_vm13 = vcmp.ge.f32.partialorder %v4517_v13, 0.0  ;;  %v4731_v34 = vmul.f32 0.3, %v4517_v13  ;;  %vm4792_vm7 = vcmp.ge.f32.partialorder %v9970_v11, 0.0  ;;  %vm4697_vm10 = vcmp.ge.f32.partialorder %v4513_v24, 0.0  ;;  %5137 = vmatmul.mubr.bf16.vlgmr.msra.gmra.mrb[128].mxu0 %v4916_v49 }
 0x589   : > { %vm4793_vm11 = vcmp.ge.f32.partialorder %v4626_v30, 0.0  ;;  %v4730_v40 = vmul.f32 0.3, %v4515_v19  ;;  %v4826_v21 = vmul.f32 0.5, %v4628_v6  ;;  %v4827_v9 = vmul.f32 0.5, %v4630_v57  ;;  %5565 = vmatprep.mubr.bf16.mxu1 %v5346_v25  ;;  %5963 = vmatpush1.bf16.msra.mxu0 %v8345_v41 }
 0x58a   : > { %v4520_v8 = vpop.f32.mrb[104].mxu0  ;;  %v4633_v47 = vpop.f32.mrb[120].mxu1  ;;  %v4763_v10 = vsel %vm4699_vm13, %v4517_v13, %v4731_v34  ;;  %vm4698_vm12 = vcmp.ge.f32.partialorder %v4515_v19, 0.0  ;;  %vm4794_vm14 = vcmp.ge.f32.partialorder %v4628_v6, 0.0  ;;  %vm4795_vm15 = vcmp.ge.f32.partialorder %v4630_v57, 0.0  ;;  %5566 = vmatmul.mubr.bf16.vlgmr.msra.gmra.mrb[144].mxu1 %v5345_v62  ;;  %5964 = vmatprep.subr.bf16.mxu0 %v8350_v39 }
 0x58b   : > { %v4522_v31 = vpop.f32.mrb[105].mxu0  ;;  %v4635_v44 = vpop.f32.mrb[121].mxu1  ;;  %v9982_v2 = vadd.f32 %v4520_v8, %v9938_v35  ;;  %v4824_v22 = vmul.f32 0.5, %v9970_v11  ;;  %v9986_v36 = vadd.f32 %v4633_v47, %v9941_v61  ;;  %v4761_v17 = vsel %vm4697_vm10, %v4513_v24, %v4729_v4  ;;  %7302 = vmatpush3.bf16.msra.mxu1 %v8373_v51  ;;  %v8383_v13 = vld [vmem:[#allocation6 + $0x114] ss:$56 sps:$4 sm:$0xff]  }
 0x58c   : > { %v4524_v48 = vpop.f32.mrb[106].mxu0  ;;  %v4637_v27 = vpop.f32.mrb[122].mxu1  ;;  %v4857_v23 = vsel %vm4793_vm11, %v4626_v30, %v4825_v3  ;;  %v9991_v33 = vadd.f32 %v4522_v31, %v9944_v63  ;;  %v4919_v12 = vpack.c.bf16 %v4763_v10, %v4761_v17  ;;  %v4760_v14 = vsel %vm4696_vm1, %v9964_v53, %v4728_v52  ;;  %7303 = vmatprep.subr.bf16.mxu1 %v8377_v45  ;;  %v8354_v39 = vld [vmem:[#allocation6 + $0x170] ss:$56 sps:$4 sm:$0xff]   ;;  %v8359_v8 = vld [vmem:[#allocation6 + $0x1e4] ss:$56 sps:$4 sm:$0xff]  }
 0x58d   : > { %v4526_v55 = vpop.f32.mrb[107].mxu0  ;;  %v4639_v26 = vpop.f32.mrb[123].mxu1  ;;  %v4859_v49 = vsel %vm4795_vm15, %v4630_v57, %v4827_v9  ;;  %v4762_v62 = vsel %vm4698_vm12, %v4515_v19, %v4730_v40  ;;  %v4858_v46 = vsel %vm4794_vm14, %v4628_v6, %v4826_v21  ;;  %5965 = vmatpush1.bf16.msra.mxu0 %v8348_v37  ;;  %vm4700_vm0 = vcmp.ge.f32.partialorder %v9982_v2, 0.0  ;;  %v8388_v47 = vld [vmem:[#allocation6 + $0x184] ss:$56 sps:$4 sm:$0xff]  }
 0x58e   : > { %v9994_v20 = vadd.f32 %v4526_v55, %v9944_v63  ;;  %v10000_v1 = vadd.f32 %v4639_v26, %v9950_v15  ;;  %v10007_v50 = vmul.f32 0.3, %v9982_v2  ;;  %v4636_v43 = vadd.f32 %v4635_v44, %v9950_v15  ;;  %5146 = vmatprep.mubr.bf16.mxu0 %v4919_v12  ;;  %5966 = vmatprep.subr.bf16.mxu0 %v8353_v59  ;;  %v8392_v40 = vld [vmem:[#allocation6 + $0x574] ss:$56 sps:$4 sm:$0xff]   ;;  %v8357_v17 = vld [vmem:[#allocation6 + $0x1e0] ss:$56 sps:$4 sm:$0xff]  }
 0x58f   : > { %v10011_v32 = vadd.f32 %v4524_v48, %v9938_v35  ;;  %v10014_v53 = vadd.f32 %v4637_v27, %v9941_v61  ;;  %v5348_v38 = vpack.c.bf16 %v4859_v49, %v4857_v23  ;;  %v4918_v24 = vpack.c.bf16 %v4762_v62, %v4760_v14  ;;  %7304 = vmatpush3.bf16.msra.mxu1 %v8378_v58 }
 0x590   : > { %v4856_v30 = vsel %vm4792_vm7, %v9970_v11, %v4824_v22  ;;  %vm4796_vm2 = vcmp.ge.f32.partialorder %v9986_v36, 0.0  ;;  %v4828_v6 = vmul.f32 0.5, %v9986_v36  ;;  %v4733_v57 = vmul.f32 0.3, %v9991_v33  ;;  %7305 = vmatprep.subr.bf16.mxu1 %v8382_v28 }
 0x591   : > { %v5347_v5 = vpack.c.bf16 %v4858_v46, %v4856_v30  ;;  %vm4701_vm3 = vcmp.ge.f32.partialorder %v9991_v33, 0.0  ;;  %v4735_v11 = vmul.f32 0.3, %v9994_v20  ;;  %v4831_v51 = vmul.f32 0.5, %v10000_v1  ;;  %5575 = vmatprep.mubr.bf16.mxu1 %v5348_v38  ;;  %5147 = vmatmul.mubr.bf16.gmra.mrb[132].mxu0 %v4918_v24 }
 0x592   : > { %v4530_v16 = vpop.f32.mrb[108].mxu0  ;;  %v4643_v29 = vpop.f32.mrb[124].mxu1  ;;  %vm4797_vm4 = vcmp.ge.f32.partialorder %v4636_v43, 0.0  ;;  %v4829_v45 = vmul.f32 0.5, %v4636_v43  ;;  %vm4703_vm5 = vcmp.ge.f32.partialorder %v9994_v20, 0.0  ;;  %vm4799_vm6 = vcmp.ge.f32.partialorder %v10000_v1, 0.0  ;;  %5967 = vmatpush1.bf16.msra.mxu0 %v8351_v18 }
 0x593   : > { %v4532_v19 = vpop.f32.mrb[109].mxu0  ;;  %v4645_v7 = vpop.f32.mrb[125].mxu1  ;;  %v10026_v52 = vadd.f32 %v4530_v16, %v9938_v35  ;;  %5576 = vmatmul.mubr.bf16.gmra.mrb[148].mxu1 %v5347_v5  ;;  %vm4702_vm8 = vcmp.ge.f32.partialorder %v10011_v32, 0.0  ;;  %v4734_v3 = vmul.f32 0.3, %v10011_v32  ;;  %vm4798_vm9 = vcmp.ge.f32.partialorder %v10014_v53, 0.0  ;;  %5968 = vmatprep.subr.bf16.mxu0 %v8356_v60 }
 0x594   : > { %v4534_v41 = vpop.f32.mrb[110].mxu0  ;;  %v4647_v34 = vpop.f32.mrb[126].mxu1  ;;  %v10034_v25 = vadd.f32 %v4643_v29, %v9941_v61  ;;  %7306 = vmatpush3.bf16.msra.mxu1 %v8383_v13  ;;  %v4830_v31 = vmul.f32 0.5, %v10014_v53  ;;  %v10038_v37 = vadd.f32 %v4532_v19, %v9944_v63  ;;  %v10041_v44 = vadd.f32 %v4645_v7, %v9950_v15  ;;  %v8393_v16 = vld [vmem:[#allocation6 + $0x1f4] ss:$56 sps:$4 sm:$0xff]  }
 0x595   : > { %v4536_v42 = vpop.f32.mrb[111].mxu0  ;;  %v4649_v4 = vpop.f32.mrb[127].mxu1  ;;  %v10044_v48 = vadd.f32 %v4534_v41, %v9938_v35  ;;  %7307 = vmatprep.subr.bf16.mxu1 %v8387_v54  ;;  %vm4704_vm13 = vcmp.ge.f32.partialorder %v10026_v52, 0.0  ;;  %v4765_v21 = vsel %vm4701_vm3, %v9991_v33, %v4733_v57  ;;  %v4767_v9 = vsel %vm4703_vm5, %v9994_v20, %v4735_v11  ;;  %v8360_v29 = vld [vmem:[#allocation6 + $0x250] ss:$56 sps:$4 sm:$0xff]  }
 0x596   : > { %v4863_v27 = vsel %vm4799_vm6, %v10000_v1, %v4831_v51  ;;  %v10057_v55 = vmul.f32 0.3, %v10026_v52  ;;  %v10060_v10 = vadd.f32 %v4647_v34, %v9941_v61  ;;  %v10063_v26 = vadd.f32 %v4536_v42, %v9944_v63  ;;  %5969 = vmatpush1.bf16.msra.mxu0 %v8354_v39  ;;  %v8365_v19 = vld [vmem:[#allocation6 + $0x2c4] ss:$56 sps:$4 sm:$0xff]  }
 0x597   : > { %v4861_v59 = vsel %vm4797_vm4, %v4636_v43, %v4829_v45  ;;  %vm4800_vm1 = vcmp.ge.f32.partialorder %v10034_v25, 0.0  ;;  %v10068_v23 = vmul.f32 0.5, %v10034_v25  ;;  %v10071_v58 = vadd.f32 %v4649_v4, %v9950_v15  ;;  %5970 = vmatprep.subr.bf16.mxu0 %v8359_v8  ;;  %v8362_v43 = vld [vmem:[#allocation6 + $0x254] ss:$56 sps:$4 sm:$0xff]  }
 0x598   : > { %v4921_v33 = vpack.c.bf16 %v4767_v9, %v4765_v21  ;;  %v5350_v20 = vpack.c.bf16 %v4863_v27, %v4861_v59  ;;  %7308 = vmatpush3.bf16.msra.mxu1 %v8388_v47  ;;  %v4764_v28 = vsel %vm4700_vm0, %v9982_v2, %v10007_v50  ;;  %v4766_v1 = vsel %vm4702_vm8, %v10011_v32, %v4734_v3  ;;  %v8368_v59 = vld [vmem:[#allocation6 + $0x334] ss:$56 sps:$4 sm:$0xff]  }
 0x599   : > { %v4860_v49 = vsel %vm4796_vm2, %v9986_v36, %v4828_v6  ;;  %v4862_v62 = vsel %vm4798_vm9, %v10014_v53, %v4830_v31  ;;  %7309 = vmatprep.subr.bf16.mxu1 %v8392_v40  ;;  %vm4705_vm7 = vcmp.ge.f32.partialorder %v10038_v37, 0.0  ;;  %v4737_v2 = vmul.f32 0.3, %v10038_v37 }
 0x59a   : > { %v4540_v22 = vpop.f32.mrb[112].mxu0  ;;  %v4653_v12 = vpop.f32.mrb[128].mxu1  ;;  %5156 = vmatprep.mubr.bf16.mxu0 %v4921_v33  ;;  %5585 = vmatprep.mubr.bf16.mxu1 %v5350_v20  ;;  %v4920_v50 = vpack.c.bf16 %v4766_v1, %v4764_v28  ;;  %v5349_v32 = vpack.c.bf16 %v4862_v62, %v4860_v49  ;;  %vm4801_vm10 = vcmp.ge.f32.partialorder %v10041_v44, 0.0  ;;  %v4833_v13 = vmul.f32 0.5, %v10041_v44 }
 0x59b   : > { %v4542_v14 = vpop.f32.mrb[113].mxu0  ;;  %v4655_v46 = vpop.f32.mrb[129].mxu1  ;;  %v10090_v36 = vadd.f32 %v4540_v22, %v9938_v35  ;;  %v10093_v53 = vadd.f32 %v4653_v12, %v9941_v61  ;;  %5971 = vmatpush1.bf16.msra.mxu0 %v8357_v17  ;;  %vm4706_vm11 = vcmp.ge.f32.partialorder %v10044_v48, 0.0  ;;  %v4738_v54 = vmul.f32 0.3, %v10044_v48 }
 0x59c   : > { %v4544_v18 = vpop.f32.mrb[114].mxu0  ;;  %v4657_v60 = vpop.f32.mrb[130].mxu1  ;;  %v10096_v24 = vadd.f32 %v4542_v14, %v9944_v63  ;;  %v4739_v6 = vmul.f32 0.3, %v10063_v26  ;;  %5157 = vmatmul.mubr.bf16.gmra.mrb[136].mxu0 %v4920_v50  ;;  %5586 = vmatmul.mubr.bf16.gmra.mrb[152].mxu1 %v5349_v32  ;;  %vm4802_vm12 = vcmp.ge.f32.partialorder %v10060_v10, 0.0  ;;  %v4834_v57 = vmul.f32 0.5, %v10060_v10 }
 0x59d   : > { %v4546_v38 = vpop.f32.mrb[115].mxu0  ;;  %v4659_v30 = vpop.f32.mrb[131].mxu1  ;;  %vm4707_vm14 = vcmp.ge.f32.partialorder %v10063_v26, 0.0  ;;  %v4835_v5 = vmul.f32 0.5, %v10071_v58  ;;  %5972 = vmatprep.subr.bf16.mxu0 %v8362_v43  ;;  %7310 = vmatpush3.bf16.msra.mxu1 %v8393_v16  ;;  %vm4803_vm15 = vcmp.ge.f32.partialorder %v10071_v58, 0.0  ;;  %v10108_v7 = vadd.f32 %v4655_v46, %v9950_v15 }
 0x59e   : > { %v10111_v41 = vadd.f32 %v4544_v18, %v9938_v35  ;;  %v10114_v39 = vadd.f32 %v4546_v38, %v9944_v63  ;;  %v10117_v11 = vmul.f32 0.3, %v10090_v36  ;;  %v10120_v51 = vmul.f32 0.5, %v10093_v53  ;;  %v8371_v46 = vld [vmem:[#allocation6 + $0x3a4] ss:$56 sps:$4 sm:$0xff]  }
 0x59f   : > { %vm4709_vm0 = vcmp.ge.f32.partialorder %v10096_v24, 0.0  ;;  %v10124_v34 = vadd.f32 %v4657_v60, %v9941_v61  ;;  %5973 = vmatpush1.bf16.msra.mxu0 %v8360_v29  ;;  %vm4708_vm2 = vcmp.ge.f32.partialorder %v10090_v36, 0.0  ;;  %v4660_v8 = vadd.f32 %v4659_v30, %v9950_v15 }
 0x5a0   : > { %v4769_v45 = vsel %vm4705_vm7, %v10038_v37, %v4737_v2  ;;  %v4771_v4 = vsel %vm4707_vm14, %v10063_v26, %v4739_v6  ;;  %v4865_v3 = vsel %vm4801_vm10, %v10041_v44, %v4833_v13  ;;  %5974 = vmatprep.subr.bf16.mxu0 %v8365_v19  ;;  %vm4804_vm3 = vcmp.ge.f32.partialorder %v10093_v53, 0.0  ;;  %v8363_v26 = vld [vmem:[#allocation6 + $0x2c0] ss:$56 sps:$4 sm:$0xff]  }
 0x5a1   : > { %v4923_v40 = vpack.c.bf16 %v4771_v4, %v4769_v45  ;;  %v4867_v21 = vsel %vm4803_vm15, %v10071_v58, %v4835_v5  ;;  %v4768_v37 = vsel %vm4704_vm13, %v10026_v52, %v10057_v55  ;;  %v4770_v9 = vsel %vm4706_vm11, %v10044_v48, %v4738_v54 }
 0x5a2   : > { %v4550_v42 = vpop.f32.mrb[116].mxu0  ;;  %v4663_v47 = vpop.f32.mrb[132].mxu1  ;;  %v4741_v22 = vmul.f32 0.3, %v10096_v24  ;;  %v4743_v17 = vmul.f32 0.3, %v10114_v39  ;;  %v5352_v33 = vpack.c.bf16 %v4867_v21, %v4865_v3  ;;  %v4922_v20 = vpack.c.bf16 %v4770_v9, %v4768_v37 }
 0x5a3   : > { %v4552_v31 = vpop.f32.mrb[117].mxu0  ;;  %v4665_v44 = vpop.f32.mrb[133].mxu1  ;;  %5166 = vmatprep.mubr.bf16.mxu0 %v4923_v40  ;;  %v4864_v52 = vsel %vm4800_vm1, %v10034_v25, %v10068_v23  ;;  %v4866_v48 = vsel %vm4802_vm12, %v10060_v10, %v4834_v57  ;;  %v10158_v55 = vadd.f32 %v4550_v42, %v9938_v35  ;;  %v10161_v14 = vadd.f32 %v4663_v47, %v9941_v61  ;;  %v8366_v23 = vld [vmem:[#allocation6 + $0x330] ss:$56 sps:$4 sm:$0xff]  }
 0x5a4   : > { %v4554_v27 = vpop.f32.mrb[118].mxu0  ;;  %v4667_v58 = vpop.f32.mrb[134].mxu1  ;;  %v4839_v1 = vmul.f32 0.5, %v4660_v8  ;;  %5595 = vmatprep.mubr.bf16.mxu1 %v5352_v33  ;;  %5167 = vmatmul.mubr.bf16.gmra.mrb[140].mxu0 %v4922_v20  ;;  %v5351_v49 = vpack.c.bf16 %v4866_v48, %v4864_v52  ;;  %v10164_v62 = vadd.f32 %v4552_v31, %v9944_v63  ;;  %v10167_v25 = vadd.f32 %v4665_v44, %v9950_v15 }
 0x5a5   : > { %v4556_v12 = vpop.f32.mrb[119].mxu0  ;;  %v4669_v28 = vpop.f32.mrb[135].mxu1  ;;  %vm4805_vm4 = vcmp.ge.f32.partialorder %v10108_v7, 0.0  ;;  %v4837_v10 = vmul.f32 0.5, %v10108_v7  ;;  %vm4711_vm5 = vcmp.ge.f32.partialorder %v10114_v39, 0.0  ;;  %vm4807_vm6 = vcmp.ge.f32.partialorder %v4660_v8, 0.0  ;;  %5975 = vmatpush1.bf16.msra.mxu0 %v8363_v26 }
 0x5a6   : > { %vm4710_vm8 = vcmp.ge.f32.partialorder %v10111_v41, 0.0  ;;  %v4742_v18 = vmul.f32 0.3, %v10111_v41  ;;  %vm4806_vm9 = vcmp.ge.f32.partialorder %v10124_v34, 0.0  ;;  %v4838_v43 = vmul.f32 0.5, %v10124_v34  ;;  %5596 = vmatmul.mubr.bf16.gmra.mrb[156].mxu1 %v5351_v49  ;;  %5976 = vmatprep.subr.bf16.mxu0 %v8368_v59 }
 0x5a7   : > { %v10177_v16 = vmul.f32 0.3, %v10158_v55  ;;  %v10180_v2 = vmul.f32 0.5, %v10161_v14  ;;  %vm4713_vm13 = vcmp.ge.f32.partialorder %v10164_v62, 0.0  ;;  %v10184_v50 = vadd.f32 %v4554_v27, %v9938_v35 }
 0x5a8   : > { %vm4712_vm1 = vcmp.ge.f32.partialorder %v10158_v55, 0.0  ;;  %v10188_v38 = vmul.f32 0.3, %v10164_v62  ;;  %vm4809_vm7 = vcmp.ge.f32.partialorder %v10167_v25, 0.0  ;;  %v4775_v30 = vsel %vm4711_vm5, %v10114_v39, %v4743_v17  ;;  %v8381_v17 = vld [vmem:[#allocation6 + $0x484] ss:$56 sps:$4 sm:$0xff]  }
 0x5a9   : > { %v4871_v29 = vsel %vm4807_vm6, %v4660_v8, %v4839_v1  ;;  %v4841_v54 = vmul.f32 0.5, %v10167_v25  ;;  %v10197_v6 = vadd.f32 %v4667_v58, %v9941_v61  ;;  %v4557_v57 = vadd.f32 %v4556_v12, %v9944_v63  ;;  %5977 = vmatpush1.bf16.msra.mxu0 %v8366_v23 }
 0x5aa   : > { %v4560_v32 = vpop.f32.mrb[120].mxu0  ;;  %v4673_v60 = vpop.f32.mrb[136].mxu1  ;;  %v4670_v5 = vadd.f32 %v4669_v28, %v9950_v15  ;;  %vm4808_vm10 = vcmp.ge.f32.partialorder %v10161_v14, 0.0  ;;  %vm4714_vm11 = vcmp.ge.f32.partialorder %v10184_v50, 0.0  ;;  %v10204_v39 = vmul.f32 0.3, %v10184_v50  ;;  %5978 = vmatprep.subr.bf16.mxu0 %v8371_v46 }
 0x5ab   : > { %v4562_v19 = vpop.f32.mrb[121].mxu0  ;;  %v4675_v13 = vpop.f32.mrb[137].mxu1  ;;  %v4773_v8 = vsel %vm4709_vm0, %v10096_v24, %v4741_v22  ;;  %v4869_v45 = vsel %vm4805_vm4, %v10108_v7, %v4837_v10  ;;  %v4772_v31 = vsel %vm4708_vm2, %v10090_v36, %v10117_v11  ;;  %v4774_v40 = vsel %vm4710_vm8, %v10111_v41, %v4742_v18  ;;  %v8369_v24 = vld [vmem:[#allocation6 + $0x3a0] ss:$56 sps:$4 sm:$0xff]   ;;  %v8376_v36 = vld [vmem:[#allocation6 + $0x414] ss:$56 sps:$4 sm:$0xff]  }
 0x5ac   : > { %v4564_v42 = vpop.f32.mrb[122].mxu0  ;;  %v4677_v4 = vpop.f32.mrb[138].mxu1  ;;  %v4925_v3 = vpack.c.bf16 %v4775_v30, %v4773_v8  ;;  %v5354_v47 = vpack.c.bf16 %v4871_v29, %v4869_v45  ;;  %v4924_v9 = vpack.c.bf16 %v4774_v40, %v4772_v31  ;;  %v4868_v7 = vsel %vm4804_vm3, %v10093_v53, %v10120_v51  ;;  %v8374_v53 = vld [vmem:[#allocation6 + $0x410] ss:$56 sps:$4 sm:$0xff]  }
 0x5ad   : > { %v4566_v21 = vpop.f32.mrb[123].mxu0  ;;  %v4679_v37 = vpop.f32.mrb[139].mxu1  ;;  %v4870_v44 = vsel %vm4806_vm9, %v10124_v34, %v4838_v43  ;;  %v10227_v27 = vadd.f32 %v4560_v32, %v9938_v35  ;;  %vm4810_vm12 = vcmp.ge.f32.partialorder %v10197_v6, 0.0  ;;  %v10231_v11 = vadd.f32 %v4673_v60, %v9941_v61  ;;  %5979 = vmatpush1.bf16.msra.mxu0 %v8369_v24  ;;  %v8391_v24 = vld [vmem:[#allocation6 + $0x564] ss:$56 sps:$4 sm:$0xff]  }
 0x5ae   : > { %5176 = vmatprep.mubr.bf16.mxu0 %v4925_v3  ;;  %5605 = vmatprep.mubr.bf16.mxu1 %v5354_v47  ;;  %v5353_v41 = vpack.c.bf16 %v4870_v44, %v4868_v7  ;;  %v10234_v26 = vadd.f32 %v4562_v19, %v9944_v63  ;;  %v4747_v51 = vmul.f32 0.3, %v4557_v57  ;;  %v4843_v59 = vmul.f32 0.5, %v4670_v5 }
 0x5af   : > { %5177 = vmatmul.mubr.bf16.gmra.mrb[144].mxu0 %v4924_v9  ;;  %v10237_v34 = vadd.f32 %v4675_v13, %v9950_v15  ;;  %v10240_v22 = vadd.f32 %v4564_v42, %v9938_v35  ;;  %v4842_v33 = vmul.f32 0.5, %v10197_v6  ;;  %vm4715_vm14 = vcmp.ge.f32.partialorder %v4557_v57, 0.0  ;;  %5980 = vmatprep.subr.bf16.mxu0 %v8376_v36 }
 0x5b0   : > { %vm4811_vm15 = vcmp.ge.f32.partialorder %v4670_v5, 0.0  ;;  %5606 = vmatmul.mubr.bf16.gmra.mrb[160].mxu1 %v5353_v41  ;;  %v10244_v20 = vmul.f32 0.3, %v10227_v27  ;;  %v10247_v12 = vmul.f32 0.5, %v10231_v11  ;;  %vm4717_vm0 = vcmp.ge.f32.partialorder %v10234_v26, 0.0 }
 0x5b1   : > { %v10251_v52 = vmul.f32 0.3, %v10234_v26  ;;  %v10254_v48 = vmul.f32 0.5, %v10237_v34  ;;  %vm4716_vm2 = vcmp.ge.f32.partialorder %v10227_v27, 0.0  ;;  %vm4813_vm3 = vcmp.ge.f32.partialorder %v10237_v34, 0.0  ;;  %5981 = vmatpush1.bf16.msra.mxu0 %v8374_v53 }
 0x5b2   : > { %v4570_v58 = vpop.f32.mrb[124].mxu0  ;;  %v4683_v28 = vpop.f32.mrb[140].mxu1  ;;  %v10259_v1 = vmul.f32 0.3, %v10240_v22  ;;  %v10262_v49 = vadd.f32 %v4677_v4, %v9941_v61  ;;  %v4567_v23 = vadd.f32 %v4566_v21, %v9944_v63  ;;  %v10266_v10 = vadd.f32 %v4679_v37, %v9950_v15  ;;  %5982 = vmatprep.subr.bf16.mxu0 %v8381_v17  ;;  %v8386_v4 = vld [vmem:[#allocation6 + $0x4f4] ss:$56 sps:$4 sm:$0xff]  }
 0x5b3   : > { %v4572_v46 = vpop.f32.mrb[125].mxu0  ;;  %v4685_v18 = vpop.f32.mrb[141].mxu1  ;;  %v4777_v43 = vsel %vm4713_vm13, %v10164_v62, %v10188_v38  ;;  %v4779_v32 = vsel %vm4715_vm14, %v4557_v57, %v4747_v51  ;;  %v4873_v60 = vsel %vm4809_vm7, %v10167_v25, %v4841_v54  ;;  %v4875_v30 = vsel %vm4811_vm15, %v4670_v5, %v4843_v59  ;;  %v8379_v38 = vld [vmem:[#allocation6 + $0x480] ss:$56 sps:$4 sm:$0xff]  }
 0x5b4   : > { %v4574_v29 = vpop.f32.mrb[126].mxu0  ;;  %v4687_v19 = vpop.f32.mrb[142].mxu1  ;;  %vm4812_vm4 = vcmp.ge.f32.partialorder %v10231_v11, 0.0  ;;  %vm4718_vm5 = vcmp.ge.f32.partialorder %v10240_v22, 0.0  ;;  %vm4814_vm6 = vcmp.ge.f32.partialorder %v10262_v49, 0.0  ;;  %v10281_v13 = vmul.f32 0.5, %v10262_v49 }
 0x5b5   : > { %vm4719_vm8 = vcmp.ge.f32.partialorder %v4567_v23, 0.0  ;;  %v4776_v62 = vsel %vm4712_vm1, %v10158_v55, %v10177_v16  ;;  %v4576_v25 = vpop.f32.mrb[127].mxu0  ;;  %v4751_v54 = vmul.f32 0.3, %v4567_v23  ;;  %vm4815_vm9 = vcmp.ge.f32.partialorder %v10266_v10, 0.0  ;;  %v4689_v42 = vpop.f32.mrb[143].mxu1  ;;  %5983 = vmatpush1.bf16.msra.mxu0 %v8379_v38 }
 0x5b6   : > { %v4927_v57 = vpack.c.bf16 %v4779_v32, %v4777_v43  ;;  %v5356_v5 = vpack.c.bf16 %v4875_v30, %v4873_v60  ;;  %v4778_v8 = vsel %vm4714_vm11, %v10184_v50, %v10204_v39  ;;  %v4872_v55 = vsel %vm4808_vm10, %v10161_v14, %v10180_v2  ;;  %v8384_v39 = vld [vmem:[#allocation6 + $0x4f0] ss:$56 sps:$4 sm:$0xff]   ;;  %5984 = vmatprep.subr.bf16.mxu0 %v8386_v4  ;;  %v8389_v51 = vld [vmem:[#allocation6 + $0x560] ss:$56 sps:$4 sm:$0xff]   ;;  %v8403_v38 = vld [vmem:[#allocation6 + $0x2d4] ss:$56 sps:$4 sm:$0xff]  }
 0x5b7   : > { %v4874_v16 = vsel %vm4810_vm12, %v10197_v6, %v4842_v33  ;;  %v10300_v45 = vadd.f32 %v4570_v58, %v9938_v35  ;;  %v4847_v3 = vmul.f32 0.5, %v10266_v10  ;;  %v4926_v47 = vpack.c.bf16 %v4778_v8, %v4776_v62  ;;  %v8401_v62 = vld [vmem:[#allocation6 + $0x644] ss:$56 sps:$4 sm:$0xff]   ;;  %v8409_v8 = vld [vmem:[#allocation6 + $0x3a8] ss:$56 sps:$4 sm:$0xff]  }
 0x5b8   : > { %5186 = vmatprep.mubr.bf16.mxu0 %v4927_v57  ;;  %5615 = vmatprep.mubr.bf16.mxu1 %v5356_v5  ;;  %v5355_v31 = vpack.c.bf16 %v4874_v16, %v4872_v55  ;;  %v4684_v50 = vadd.f32 %v4683_v28, %v9941_v61  ;;  %v4573_v2 = vadd.f32 %v4572_v46, %v9944_v63  ;;  %v8394_v46 = vld [vmem:[#allocation6 + $0x5d0] ss:$56 sps:$4 sm:$0xff]   ;;  %v8407_v57 = vld [vmem:[#allocation6 + $0x6c4] ss:$56 sps:$4 sm:$0xff]   ;;  %v5361_v16 = vld [vmem:[%s10598_s5 + $0x16] sm:$0x3] }
 0x5b9   : > { %vm4720_vm13 = vcmp.ge.f32.partialorder %v10300_v45, 0.0  ;;  %v4752_v14 = vmul.f32 0.3, %v10300_v45  ;;  %v4686_v6 = vadd.f32 %v4685_v18, %v9950_v15  ;;  %5187 = vmatmul.mubr.bf16.gmra.mrb[148].mxu0 %v4926_v47  ;;  %v4575_v21 = vadd.f32 %v4574_v29, %v9938_v35  ;;  %v8397_v29 = vld [vmem:[#allocation6 + $0x5e4] ss:$56 sps:$4 sm:$0xff]  }
 0x5ba   : > { %5616 = vmatmul.mubr.bf16.gmra.mrb[164].mxu1 %v5355_v31  ;;  %vm4816_vm1 = vcmp.ge.f32.partialorder %v4684_v50, 0.0  ;;  %v4848_v40 = vmul.f32 0.5, %v4684_v50  ;;  %v4688_v37 = vadd.f32 %v4687_v19, %v9941_v61  ;;  %vm4721_vm7 = vcmp.ge.f32.partialorder %v4573_v2, 0.0  ;;  %5985 = vmatpush1.bf16.msra.mxu0 %v8384_v39  ;;  %v8398_v19 = vld [vmem:[#allocation6 + $0x264] ss:$56 sps:$4 sm:$0xff]  }
 0x5bb   : > { %v4753_v9 = vmul.f32 0.3, %v4573_v2  ;;  %vm4817_vm10 = vcmp.ge.f32.partialorder %v4686_v6, 0.0  ;;  %v4849_v7 = vmul.f32 0.5, %v4686_v6  ;;  %vm4722_vm11 = vcmp.ge.f32.partialorder %v4575_v21, 0.0  ;;  %5986 = vmatprep.subr.bf16.mxu0 %v8391_v24  ;;  %7311 = vmatprep.subr.bf16.mxu1 %v8397_v29 }
 0x5bc   : > { %v4754_v44 = vmul.f32 0.3, %v4575_v21  ;;  %vm4818_vm12 = vcmp.ge.f32.partialorder %v4688_v37, 0.0  ;;  %v4850_v36 = vmul.f32 0.5, %v4688_v37  ;;  %v4577_v41 = vadd.f32 %v4576_v25, %v9944_v63  ;;  %7312 = vmatpush3.bf16.msra.mxu1 %v8398_v19  ;;  %v8402_v25 = vld [vmem:[#allocation6 + $0x654] ss:$56 sps:$4 sm:$0xff]  }
 0x5bd   : > { %v4690_v53 = vadd.f32 %v4689_v42, %v9950_v15  ;;  %v4781_v35 = vsel %vm4717_vm0, %v10234_v26, %v10251_v52  ;;  %v4783_v61 = vsel %vm4719_vm8, %v4567_v23, %v4751_v54  ;;  %v4877_v17 = vsel %vm4813_vm3, %v10237_v34, %v10254_v48  ;;  %v8406_v54 = vld [vmem:[#allocation6 + $0x6b4] ss:$56 sps:$4 sm:$0xff]   ;;  %7313 = vmatprep.subr.bf16.mxu1 %v8402_v25  ;;  %v8404_v5 = vld [vmem:[#allocation6 + $0x6b0] ss:$56 sps:$4 sm:$0xff]   ;;  %v8408_v42 = vld [vmem:[#allocation6 + $0x344] ss:$56 sps:$4 sm:$0xff]  }
 0x5be   : > { %v4929_v59 = vpack.c.bf16 %v4783_v61, %v4781_v35  ;;  %v4879_v63 = vsel %vm4815_vm9, %v10266_v10, %v4847_v3  ;;  %v4780_v15 = vsel %vm4716_vm2, %v10227_v27, %v10244_v20  ;;  %vm4723_vm14 = vcmp.ge.f32.partialorder %v4577_v41, 0.0  ;;  %v8396_v20 = vld [vmem:[#allocation6 + $0x5d4] ss:$56 sps:$4 sm:$0xff]   ;;  %5987 = vmatpush1.bf16.msra.mxu0 %v8389_v51  ;;  %v4932_v55 = vld [vmem:[%s10598_s5 + $0x11] sm:$0x3] }
 0x5bf   : > { %v4755_v26 = vmul.f32 0.3, %v4577_v41  ;;  %vm4819_vm15 = vcmp.ge.f32.partialorder %v4690_v53, 0.0  ;;  %v4851_v33 = vmul.f32 0.5, %v4690_v53  ;;  %v5358_v58 = vpack.c.bf16 %v4879_v63, %v4877_v17  ;;  %5988 = vmatprep.subr.bf16.mxu0 %v8396_v20 }
 0x5c0   : > { %5196 = vmatprep.mubr.bf16.mxu0 %v4929_v59  ;;  %v4782_v34 = vsel %vm4718_vm5, %v10240_v22, %v10259_v1  ;;  %v4876_v52 = vsel %vm4812_vm4, %v10231_v11, %v10247_v12  ;;  %v4878_v27 = vsel %vm4814_vm6, %v10262_v49, %v10281_v13  ;;  %v4785_v23 = vsel %vm4721_vm7, %v4573_v2, %v4753_v9  ;;  %v8399_v13 = vld [vmem:[#allocation6 + $0x640] ss:$56 sps:$4 sm:$0xff]  }
 0x5c1   : > { %v4928_v48 = vpack.c.bf16 %v4782_v34, %v4780_v15  ;;  %v5357_v28 = vpack.c.bf16 %v4878_v27, %v4876_v52  ;;  %v4787_v10 = vsel %vm4723_vm14, %v4577_v41, %v4755_v26  ;;  %5625 = vmatprep.mubr.bf16.mxu1 %v5358_v58  ;;  %v4881_v1 = vsel %vm4817_vm10, %v4686_v6, %v4849_v7 }
 0x5c2   : > { %v4931_v22 = vpack.c.bf16 %v4787_v10, %v4785_v23  ;;  %v4883_v18 = vsel %vm4819_vm15, %v4690_v53, %v4851_v33  ;;  %v4784_v12 = vsel %vm4720_vm13, %v10300_v45, %v4752_v14  ;;  %v4786_v49 = vsel %vm4722_vm11, %v4575_v21, %v4754_v44  ;;  %5989 = vmatpush1.bf16.msra.mxu0 %v8394_v46 }
 0x5c3   : > { %5197 = vmatmul.mubr.bf16.gmra.mrb[152].mxu0 %v4928_v48  ;;  %5626 = vmatmul.mubr.bf16.gmra.mrb[168].mxu1 %v5357_v28  ;;  %v5360_v11 = vpack.c.bf16 %v4883_v18, %v4881_v1  ;;  %v4930_v43 = vpack.c.bf16 %v4786_v49, %v4784_v12  ;;  %v4880_v32 = vsel %vm4816_vm1, %v4684_v50, %v4848_v40  ;;  %v8410_v1 = vld [vmem:[#allocation6 + $0x28] ss:$56 sps:$4 sm:$0xff]  }
 0x5c4   : > { %5206 = vmatprep.mubr.bf16.mxu0 %v4931_v22  ;;  %v4882_v60 = vsel %vm4818_vm12, %v4688_v37, %v4850_v36  ;;  %5990 = vmatprep.subr.bf16.mxu0 %v8401_v62  ;;  %v10356_v45 = vrot.slane %v4932_v55, %v10657_v0  ;;  %v10359_v4 = vrot.slane %v4932_v55, %v10658_v56 }
 0x5c5   : > { %5635 = vmatprep.mubr.bf16.mxu1 %v5360_v11  ;;  %v5359_v30 = vpack.c.bf16 %v4882_v60, %v4880_v32  ;;  %7314 = vmatpush3.bf16.msra.mxu1 %v8403_v38  ;;  %v10362_v3 = vrot.slane %v5361_v16, %v10657_v0  ;;  %v10365_v31 = vrot.slane %v5361_v16, %v10658_v56  ;;  %v8411_v32 = vld [vmem:[#allocation6 + $0x418] ss:$56 sps:$4 sm:$0xff]  }
 0x5c6   : > { %5991 = vmatpush1.bf16.msra.mxu0 %v8399_v13  ;;  %7315 = vmatprep.subr.bf16.mxu1 %v8407_v57 }
 0x5c7   : > { %5992 = vmatprep.subr.bf16.mxu0 %v8406_v54  ;;  %v8412_v54 = vld [vmem:[#allocation6 + $0x98] ss:$56 sps:$4 sm:$0xff]  }
 0x5c9   : > { %7316 = vmatpush3.bf16.msra.mxu1 %v8408_v42 }
 0x5ca   : > { %5993 = vmatpush1.bf16.msra.mxu0 %v8404_v5 }
 0x5cb   : > { %5207 = vmatmul.mubr.bf16.gmra.mrb[156].mxu0 %v4930_v43  ;;  %5636 = vmatmul.mubr.bf16.gmra.mrb[172].mxu1 %v5359_v30 }
 0x5cc   : > { %7365 = vmatprep.subr.bf16.mxu0 %v8409_v8 }
 0x65b   : > { %v5138_v47 = vpop.f32.mrb[128].mxu0 }
 0x65c   : > { %v5139_v50 = vadd.f32 %v5138_v47, %v10356_v45  ;;  %v5140_v14 = vpop.f32.mrb[129].mxu0 }
 0x65d   : > { %v5567_v2 = vpop.f32.mrb[144].mxu1  ;;  %v5141_v6 = vadd.f32 %v5140_v14, %v10359_v4  ;;  %v5142_v39 = vpop.f32.mrb[130].mxu0 }
 0x65e   : > { %vm5217_vm0 = vcmp.ge.f32.partialorder %v5139_v50, 0.0  ;;  %v5249_v40 = vmul.f32 0.3, %v5139_v50  ;;  %v5568_v21 = vadd.f32 %v5567_v2, %v10362_v3  ;;  %v5569_v37 = vpop.f32.mrb[145].mxu1  ;;  %v5143_v24 = vadd.f32 %v5142_v39, %v10356_v45  ;;  %v5144_v9 = vpop.f32.mrb[131].mxu0 }
 0x65f   : > { %v5250_v7 = vmul.f32 0.3, %v5141_v6  ;;  %v5570_v44 = vadd.f32 %v5569_v37, %v10365_v31  ;;  %v5571_v36 = vpop.f32.mrb[146].mxu1  ;;  %v5145_v41 = vadd.f32 %v5144_v9, %v10359_v4  ;;  %vm5218_vm3 = vcmp.ge.f32.partialorder %v5141_v6, 0.0  ;;  %v8414_v9 = vld [vmem:[#allocation6 + $0x108] ss:$56 sps:$4 sm:$0xff]  }
 0x660   : > { %v5281_v53 = vsel %vm5217_vm0, %v5139_v50, %v5249_v40  ;;  %vm5646_vm2 = vcmp.ge.f32.partialorder %v5568_v21, 0.0  ;;  %vm5219_vm4 = vcmp.ge.f32.partialorder %v5143_v24, 0.0  ;;  %v5573_v35 = vpop.f32.mrb[147].mxu1  ;;  %v5678_v61 = vmul.f32 0.6, %v5568_v21 }
 0x661   : > { %vm5647_vm5 = vcmp.ge.f32.partialorder %v5570_v44, 0.0  ;;  %v5251_v51 = vmul.f32 0.3, %v5143_v24  ;;  %v5572_v59 = vadd.f32 %v5571_v36, %v10362_v3  ;;  %v5679_v17 = vmul.f32 0.6, %v5570_v44 }
 0x662   : > { %vm5220_vm6 = vcmp.ge.f32.partialorder %v5145_v41, 0.0  ;;  %v5252_v63 = vmul.f32 0.3, %v5145_v41  ;;  %v5574_v15 = vadd.f32 %v5573_v35, %v10365_v31  ;;  %v5282_v58 = vsel %vm5218_vm3, %v5141_v6, %v5250_v7  ;;  %v8413_v50 = vld [vmem:[#allocation6 + $0x488] ss:$56 sps:$4 sm:$0xff]  }
 0x663   : > { %v5283_v26 = vsel %vm5219_vm4, %v5143_v24, %v5251_v51  ;;  %vm5648_vm8 = vcmp.ge.f32.partialorder %v5572_v59, 0.0  ;;  %v5680_v33 = vmul.f32 0.6, %v5572_v59  ;;  %v5710_v48 = vsel %vm5646_vm2, %v5568_v21, %v5678_v61 }
 0x664   : > { %v5774_v34 = vpack.c.bf16 %v5283_v26, %v5281_v53  ;;  %vm5649_vm9 = vcmp.ge.f32.partialorder %v5574_v15, 0.0  ;;  %v5681_v52 = vmul.f32 0.6, %v5574_v15  ;;  %v5148_v27 = vpop.f32.mrb[132].mxu0  ;;  %v5284_v20 = vsel %vm5220_vm6, %v5145_v41, %v5252_v63  ;;  %v8415_v26 = vld [vmem:[#allocation6 + $0x4f8] ss:$56 sps:$4 sm:$0xff]  }
 0x665   : > { %v5712_v28 = vsel %vm5648_vm8, %v5572_v59, %v5680_v33  ;;  %v5149_v23 = vadd.f32 %v5148_v27, %v10356_v45  ;;  %v5150_v46 = vpop.f32.mrb[133].mxu0  ;;  %v5775_v22 = vpack.c.bf16 %v5284_v20, %v5282_v58  ;;  %v5711_v38 = vsel %vm5647_vm5, %v5570_v44, %v5679_v17 }
 0x666   : > { %v5577_v10 = vpop.f32.mrb[148].mxu1  ;;  %v6203_v18 = vpack.c.bf16 %v5712_v28, %v5710_v48  ;;  %v5151_v12 = vadd.f32 %v5150_v46, %v10359_v4  ;;  %v5152_v43 = vpop.f32.mrb[134].mxu0  ;;  %v5713_v62 = vsel %vm5649_vm9, %v5574_v15, %v5681_v52  ;;  %v8416_v28 = vld [vmem:[#allocation6 + $0x178] ss:$56 sps:$4 sm:$0xff]  }
 0x667   : > { %v5578_v11 = vadd.f32 %v5577_v10, %v10362_v3  ;;  %v5579_v49 = vpop.f32.mrb[149].mxu1  ;;  %v5253_v60 = vmul.f32 0.3, %v5149_v23  ;;  %v5153_v29 = vadd.f32 %v5152_v43, %v10356_v45  ;;  %v5154_v13 = vpop.f32.mrb[135].mxu0  ;;  %5994 = vmatprep.mubr.bf16.mxu0 %v5775_v22  ;;  %vm5221_vm13 = vcmp.ge.f32.partialorder %v5149_v23, 0.0 }
 0x668   : > { %v5580_v30 = vadd.f32 %v5579_v49, %v10365_v31  ;;  %v5581_v19 = vpop.f32.mrb[150].mxu1  ;;  %5995 = vmatmul.mubr.bf16.vlgmr.msra.gmra.mrb[160].mxu0 %v5774_v34  ;;  %vm5222_vm7 = vcmp.ge.f32.partialorder %v5151_v12, 0.0  ;;  %v5254_v57 = vmul.f32 0.3, %v5151_v12  ;;  %v5155_v55 = vadd.f32 %v5154_v13, %v10359_v4  ;;  %v8417_v10 = vld [vmem:[#allocation6 + $0x568] ss:$56 sps:$4 sm:$0xff]  }
 0x669   : > { %vm5650_vm1 = vcmp.ge.f32.partialorder %v5578_v11, 0.0  ;;  %v5682_v25 = vmul.f32 0.6, %v5578_v11  ;;  %vm5223_vm10 = vcmp.ge.f32.partialorder %v5153_v29, 0.0  ;;  %v5255_v5 = vmul.f32 0.3, %v5153_v29  ;;  %7366 = vmatpush3.bf16.msra.mxu0 %v8410_v1 }
 0x66a   : > { %v5683_v42 = vmul.f32 0.6, %v5580_v30  ;;  %v5582_v8 = vadd.f32 %v5581_v19, %v10362_v3  ;;  %v5583_v16 = vpop.f32.mrb[151].mxu1  ;;  %v6204_v47 = vpack.c.bf16 %v5713_v62, %v5711_v38  ;;  %7367 = vmatprep.subr.bf16.mxu0 %v8411_v32  ;;  %vm5651_vm11 = vcmp.ge.f32.partialorder %v5580_v30, 0.0  ;;  %v8418_v32 = vld [vmem:[#allocation6 + $0x1e8] ss:$56 sps:$4 sm:$0xff]  }
 0x66b   : > { %v5584_v14 = vadd.f32 %v5583_v16, %v10365_v31  ;;  %v5285_v2 = vsel %vm5221_vm13, %v5149_v23, %v5253_v60  ;;  %v5287_v6 = vsel %vm5223_vm10, %v5153_v29, %v5255_v5  ;;  %vm5224_vm14 = vcmp.ge.f32.partialorder %v5155_v55, 0.0  ;;  %v8419_v60 = vld [vmem:[#allocation6 + $0x5d8] ss:$56 sps:$4 sm:$0xff]  }
 0x66c   : > { %vm5652_vm12 = vcmp.ge.f32.partialorder %v5582_v8, 0.0  ;;  %v5684_v39 = vmul.f32 0.6, %v5582_v8  ;;  %v5256_v40 = vmul.f32 0.3, %v5155_v55  ;;  %6354 = vmatprep.mubr.bf16.mxu1 %v6204_v47  ;;  %v5286_v37 = vsel %vm5222_vm7, %v5151_v12, %v5254_v57 }
 0x66d   : > { %vm5653_vm15 = vcmp.ge.f32.partialorder %v5584_v14, 0.0  ;;  %v5685_v21 = vmul.f32 0.6, %v5584_v14  ;;  %6355 = vmatmul.mubr.bf16.vlgmr.msra.gmra.mrb[176].mxu1 %v6203_v18  ;;  %v5776_v24 = vpack.c.bf16 %v5287_v6, %v5285_v2  ;;  %7368 = vmatpush3.bf16.msra.mxu0 %v8412_v54  ;;  %v5715_v41 = vsel %vm5651_vm11, %v5580_v30, %v5683_v42 }
 0x66e   : > { %v5288_v36 = vsel %vm5224_vm14, %v5155_v55, %v5256_v40  ;;  %v5714_v53 = vsel %vm5650_vm1, %v5578_v11, %v5682_v25  ;;  %v5716_v35 = vsel %vm5652_vm12, %v5582_v8, %v5684_v39  ;;  %7369 = vmatprep.subr.bf16.mxu0 %v8413_v50 }
 0x66f   : > { %v5158_v7 = vpop.f32.mrb[136].mxu0  ;;  %v5587_v44 = vpop.f32.mrb[152].mxu1  ;;  %v5777_v63 = vpack.c.bf16 %v5288_v36, %v5286_v37  ;;  %v5717_v15 = vsel %vm5653_vm15, %v5584_v14, %v5685_v21  ;;  %v6205_v20 = vpack.c.bf16 %v5716_v35, %v5714_v53  ;;  %v8420_v21 = vld [vmem:[#allocation6 + $0x258] ss:$56 sps:$4 sm:$0xff]  }
 0x670   : > { %v5159_v61 = vadd.f32 %v5158_v7, %v10356_v45  ;;  %v10393_v51 = vadd.f32 %v5587_v44, %v10362_v3  ;;  %v5160_v59 = vpop.f32.mrb[137].mxu0  ;;  %v5589_v17 = vpop.f32.mrb[153].mxu1  ;;  %v6206_v27 = vpack.c.bf16 %v5717_v15, %v5715_v41  ;;  %v8421_v41 = vld [vmem:[#allocation6 + $0x648] ss:$56 sps:$4 sm:$0xff]  }
 0x671   : > { %v5161_v33 = vadd.f32 %v5160_v59, %v10359_v4  ;;  %v5590_v58 = vadd.f32 %v5589_v17, %v10365_v31  ;;  %v5162_v34 = vpop.f32.mrb[138].mxu0  ;;  %v5591_v52 = vpop.f32.mrb[154].mxu1  ;;  %6004 = vmatprep.mubr.bf16.mxu0 %v5777_v63  ;;  %7370 = vmatpush3.bf16.msra.mxu0 %v8414_v9 }
 0x672   : > { %v5257_v48 = vmul.f32 0.3, %v5159_v61  ;;  %vm5225_vm0 = vcmp.ge.f32.partialorder %v5159_v61, 0.0  ;;  %vm5654_vm2 = vcmp.ge.f32.partialorder %v10393_v51, 0.0  ;;  %v5686_v23 = vmul.f32 0.6, %v10393_v51  ;;  %6362 = vmatprep.mubr.bf16.mxu1 %v6206_v27  ;;  %6005 = vmatmul.mubr.bf16.gmra.mrb[164].mxu0 %v5776_v24 }
 0x673   : > { %v5258_v46 = vmul.f32 0.3, %v5161_v33  ;;  %v5687_v22 = vmul.f32 0.6, %v5590_v58  ;;  %v5163_v1 = vadd.f32 %v5162_v34, %v10356_v45  ;;  %v5592_v18 = vadd.f32 %v5591_v52, %v10362_v3  ;;  %v5164_v11 = vpop.f32.mrb[139].mxu0  ;;  %v5593_v12 = vpop.f32.mrb[155].mxu1  ;;  %7371 = vmatprep.subr.bf16.mxu0 %v8415_v26 }
 0x674   : > { %vm5226_vm3 = vcmp.ge.f32.partialorder %v5161_v33, 0.0  ;;  %vm5655_vm4 = vcmp.ge.f32.partialorder %v5590_v58, 0.0  ;;  %v5165_v49 = vadd.f32 %v5164_v11, %v10359_v4  ;;  %v5594_v43 = vadd.f32 %v5593_v12, %v10365_v31 }
 0x675   : > { %vm5227_vm5 = vcmp.ge.f32.partialorder %v5163_v1, 0.0  ;;  %v5259_v30 = vmul.f32 0.3, %v5163_v1  ;;  %v5688_v29 = vmul.f32 0.6, %v5592_v18  ;;  %6363 = vmatmul.mubr.bf16.gmra.mrb[180].mxu1 %v6205_v20  ;;  %v5289_v19 = vsel %vm5225_vm0, %v5159_v61, %v5257_v48  ;;  %7372 = vmatpush3.bf16.msra.mxu0 %v8416_v28 }
 0x676   : > { %vm5228_vm6 = vcmp.ge.f32.partialorder %v5165_v49, 0.0  ;;  %v5260_v13 = vmul.f32 0.3, %v5165_v49  ;;  %vm5657_vm8 = vcmp.ge.f32.partialorder %v5594_v43, 0.0  ;;  %v5689_v62 = vmul.f32 0.6, %v5594_v43  ;;  %7373 = vmatprep.subr.bf16.mxu0 %v8417_v10 }
 0x677   : > { %vm5656_vm9 = vcmp.ge.f32.partialorder %v5592_v18, 0.0  ;;  %v5168_v25 = vpop.f32.mrb[140].mxu0  ;;  %v5290_v38 = vsel %vm5226_vm3, %v5161_v33, %v5258_v46  ;;  %v5719_v54 = vsel %vm5655_vm4, %v5590_v58, %v5687_v22  ;;  %v5291_v57 = vsel %vm5227_vm5, %v5163_v1, %v5259_v30  ;;  %v8422_v58 = vld [vmem:[#allocation6 + $0x2c8] ss:$56 sps:$4 sm:$0xff]  }
 0x678   : > { %v5169_v5 = vadd.f32 %v5168_v25, %v10356_v45  ;;  %v5170_v8 = vpop.f32.mrb[141].mxu0  ;;  %v5292_v55 = vsel %vm5228_vm6, %v5165_v49, %v5260_v13  ;;  %v5721_v16 = vsel %vm5657_vm8, %v5594_v43, %v5689_v62  ;;  %v5778_v47 = vpack.c.bf16 %v5291_v57, %v5289_v19 }
 0x679   : > { %v5597_v42 = vpop.f32.mrb[156].mxu1  ;;  %v5171_v14 = vadd.f32 %v5170_v8, %v10359_v4  ;;  %v5172_v6 = vpop.f32.mrb[142].mxu0  ;;  %v5779_v39 = vpack.c.bf16 %v5292_v55, %v5290_v38  ;;  %v6208_v40 = vpack.c.bf16 %v5721_v16, %v5719_v54  ;;  %7374 = vmatpush3.bf16.msra.mxu0 %v8418_v32  ;;  %v5720_v36 = vsel %vm5656_vm9, %v5592_v18, %v5688_v29 }
 0x67a   : > { %v5598_v50 = vadd.f32 %v5597_v42, %v10362_v3  ;;  %v5599_v2 = vpop.f32.mrb[157].mxu1  ;;  %v5261_v37 = vmul.f32 0.3, %v5169_v5  ;;  %v5173_v9 = vadd.f32 %v5172_v6, %v10356_v45  ;;  %v5174_v44 = vpop.f32.mrb[143].mxu0  ;;  %7375 = vmatprep.subr.bf16.mxu0 %v8419_v60  ;;  %vm5229_vm13 = vcmp.ge.f32.partialorder %v5169_v5, 0.0 }
 0x67b   : > { %v5600_v24 = vadd.f32 %v5599_v2, %v10365_v31  ;;  %v5601_v7 = vpop.f32.mrb[158].mxu1  ;;  %6014 = vmatprep.mubr.bf16.mxu0 %v5779_v39  ;;  %6370 = vmatprep.mubr.bf16.mxu1 %v6208_v40  ;;  %v5718_v35 = vsel %vm5654_vm2, %v10393_v51, %v5686_v23  ;;  %vm5230_vm7 = vcmp.ge.f32.partialorder %v5171_v14, 0.0  ;;  %v5262_v61 = vmul.f32 0.3, %v5171_v14 }
 0x67c   : > { %vm5658_vm1 = vcmp.ge.f32.partialorder %v5598_v50, 0.0  ;;  %v5690_v53 = vmul.f32 0.6, %v5598_v50  ;;  %vm5231_vm10 = vcmp.ge.f32.partialorder %v5173_v9, 0.0  ;;  %v5263_v59 = vmul.f32 0.3, %v5173_v9  ;;  %6015 = vmatmul.mubr.bf16.gmra.mrb[168].mxu0 %v5778_v47 }
 0x67d   : > { %v5691_v17 = vmul.f32 0.6, %v5600_v24  ;;  %v5602_v63 = vadd.f32 %v5601_v7, %v10362_v3  ;;  %v5175_v15 = vadd.f32 %v5174_v44, %v10359_v4  ;;  %v5603_v26 = vpop.f32.mrb[159].mxu1  ;;  %v6207_v33 = vpack.c.bf16 %v5720_v36, %v5718_v35  ;;  %7376 = vmatpush3.bf16.msra.mxu0 %v8420_v21 }
 0x67e   : > { %vm5659_vm11 = vcmp.ge.f32.partialorder %v5600_v24, 0.0  ;;  %v5604_v34 = vadd.f32 %v5603_v26, %v10365_v31  ;;  %v5293_v52 = vsel %vm5229_vm13, %v5169_v5, %v5261_v37  ;;  %v5295_v51 = vsel %vm5231_vm10, %v5173_v9, %v5263_v59  ;;  %7377 = vmatprep.subr.bf16.mxu0 %v8421_v41 }
 0x67f   : > { %vm5660_vm12 = vcmp.ge.f32.partialorder %v5602_v63, 0.0  ;;  %v5692_v27 = vmul.f32 0.6, %v5602_v63  ;;  %vm5232_vm14 = vcmp.ge.f32.partialorder %v5175_v15, 0.0  ;;  %v5264_v20 = vmul.f32 0.3, %v5175_v15  ;;  %6371 = vmatmul.mubr.bf16.gmra.mrb[184].mxu1 %v6207_v33 }
 0x680   : > { %vm5661_vm15 = vcmp.ge.f32.partialorder %v5604_v34, 0.0  ;;  %v5693_v48 = vmul.f32 0.6, %v5604_v34  ;;  %v5294_v23 = vsel %vm5230_vm7, %v5171_v14, %v5262_v61  ;;  %v5780_v10 = vpack.c.bf16 %v5295_v51, %v5293_v52 }
 0x681   : > { %v5296_v18 = vsel %vm5232_vm14, %v5175_v15, %v5264_v20  ;;  %v5723_v11 = vsel %vm5659_vm11, %v5600_v24, %v5691_v17  ;;  %v5722_v12 = vsel %vm5658_vm1, %v5598_v50, %v5690_v53  ;;  %7378 = vmatpush3.bf16.msra.mxu0 %v8422_v58  ;;  %v5724_v29 = vsel %vm5660_vm12, %v5602_v63, %v5692_v27 }
 0x682   : > { %v5178_v28 = vpop.f32.mrb[144].mxu0  ;;  %v5781_v30 = vpack.c.bf16 %v5296_v18, %v5294_v23  ;;  %v5725_v54 = vsel %vm5661_vm15, %v5604_v34, %v5693_v48  ;;  %v6209_v14 = vpack.c.bf16 %v5724_v29, %v5722_v12 }
 0x683   : > { %v5179_v46 = vadd.f32 %v5178_v28, %v10356_v45  ;;  %v5607_v22 = vpop.f32.mrb[160].mxu1  ;;  %v5180_v1 = vpop.f32.mrb[145].mxu0  ;;  %v6210_v50 = vpack.c.bf16 %v5725_v54, %v5723_v11 }
 0x684   : > { %v5608_v49 = vadd.f32 %v5607_v22, %v10362_v3  ;;  %v5181_v43 = vadd.f32 %v5180_v1, %v10359_v4  ;;  %v5609_v32 = vpop.f32.mrb[161].mxu1  ;;  %v5182_v60 = vpop.f32.mrb[146].mxu0  ;;  %6024 = vmatprep.mubr.bf16.mxu0 %v5781_v30 }
 0x685   : > { %v5265_v19 = vmul.f32 0.3, %v5179_v46  ;;  %v5610_v13 = vadd.f32 %v5609_v32, %v10365_v31  ;;  %v5183_v62 = vadd.f32 %v5182_v60, %v10356_v45  ;;  %v5611_v25 = vpop.f32.mrb[162].mxu1  ;;  %v5184_v38 = vpop.f32.mrb[147].mxu0  ;;  %vm5233_vm0 = vcmp.ge.f32.partialorder %v5179_v46, 0.0  ;;  %6025 = vmatmul.mubr.bf16.gmra.mrb[172].mxu0 %v5780_v10  ;;  %6378 = vmatprep.mubr.bf16.mxu1 %v6210_v50 }
 0x686   : > { %v5694_v57 = vmul.f32 0.6, %v5608_v49  ;;  %vm5234_vm2 = vcmp.ge.f32.partialorder %v5181_v43, 0.0  ;;  %v5266_v5 = vmul.f32 0.3, %v5181_v43  ;;  %v5612_v55 = vadd.f32 %v5611_v25, %v10362_v3  ;;  %v5613_v47 = vpop.f32.mrb[163].mxu1 }
 0x687   : > { %vm5663_vm3 = vcmp.ge.f32.partialorder %v5610_v13, 0.0  ;;  %v5695_v42 = vmul.f32 0.6, %v5610_v13  ;;  %vm5235_vm4 = vcmp.ge.f32.partialorder %v5183_v62, 0.0  ;;  %v5267_v8 = vmul.f32 0.3, %v5183_v62  ;;  %6379 = vmatmul.mubr.bf16.gmra.mrb[188].mxu1 %v6209_v14 }
 0x688   : > { %v5185_v16 = vadd.f32 %v5184_v38, %v10359_v4  ;;  %vm5662_vm5 = vcmp.ge.f32.partialorder %v5608_v49, 0.0  ;;  %v5614_v2 = vadd.f32 %v5613_v47, %v10365_v31  ;;  %v5298_v6 = vsel %vm5234_vm2, %v5181_v43, %v5266_v5 }
 0x689   : > { %v5727_v39 = vsel %vm5663_vm3, %v5610_v13, %v5695_v42  ;;  %vm5664_vm6 = vcmp.ge.f32.partialorder %v5612_v55, 0.0  ;;  %v5696_v40 = vmul.f32 0.6, %v5612_v55  ;;  %v5297_v24 = vsel %vm5233_vm0, %v5179_v46, %v5265_v19 }
 0x68a   : > { %vm5236_vm8 = vcmp.ge.f32.partialorder %v5185_v16, 0.0  ;;  %v5268_v21 = vmul.f32 0.3, %v5185_v16  ;;  %vm5665_vm9 = vcmp.ge.f32.partialorder %v5614_v2, 0.0  ;;  %v5697_v37 = vmul.f32 0.6, %v5614_v2 }
 0x68b   : > { %v5299_v9 = vsel %vm5235_vm4, %v5183_v62, %v5267_v8  ;;  %v5726_v53 = vsel %vm5662_vm5, %v5608_v49, %v5694_v57  ;;  %v5728_v35 = vsel %vm5664_vm6, %v5612_v55, %v5696_v40 }
 0x68c   : > { %v5188_v7 = vpop.f32.mrb[148].mxu0  ;;  %v5300_v36 = vsel %vm5236_vm8, %v5185_v16, %v5268_v21  ;;  %v5782_v41 = vpack.c.bf16 %v5299_v9, %v5297_v24  ;;  %v5729_v26 = vsel %vm5665_vm9, %v5614_v2, %v5697_v37  ;;  %v6211_v27 = vpack.c.bf16 %v5728_v35, %v5726_v53 }
 0x68d   : > { %v5617_v44 = vpop.f32.mrb[164].mxu1  ;;  %v5189_v61 = vadd.f32 %v5188_v7, %v10356_v45  ;;  %v5190_v17 = vpop.f32.mrb[149].mxu0  ;;  %v5783_v15 = vpack.c.bf16 %v5300_v36, %v5298_v6  ;;  %v6212_v51 = vpack.c.bf16 %v5729_v26, %v5727_v39 }
 0x68e   : > { %v5618_v59 = vadd.f32 %v5617_v44, %v10362_v3  ;;  %v5619_v63 = vpop.f32.mrb[165].mxu1  ;;  %v5191_v33 = vadd.f32 %v5190_v17, %v10359_v4  ;;  %v5192_v34 = vpop.f32.mrb[150].mxu0 }
 0x68f   : > { %v5620_v58 = vadd.f32 %v5619_v63, %v10365_v31  ;;  %v5621_v52 = vpop.f32.mrb[166].mxu1  ;;  %vm5237_vm13 = vcmp.ge.f32.partialorder %v5189_v61, 0.0  ;;  %v5269_v20 = vmul.f32 0.3, %v5189_v61  ;;  %6034 = vmatprep.mubr.bf16.mxu0 %v5783_v15  ;;  %6386 = vmatprep.mubr.bf16.mxu1 %v6212_v51  ;;  %v5193_v10 = vadd.f32 %v5192_v34, %v10356_v45  ;;  %v5194_v22 = vpop.f32.mrb[151].mxu0 }
 0x690   : > { %vm5666_vm1 = vcmp.ge.f32.partialorder %v5618_v59, 0.0  ;;  %v5698_v48 = vmul.f32 0.6, %v5618_v59  ;;  %vm5238_vm7 = vcmp.ge.f32.partialorder %v5191_v33, 0.0  ;;  %v5270_v28 = vmul.f32 0.3, %v5191_v33  ;;  %6035 = vmatmul.mubr.bf16.gmra.mrb[176].mxu0 %v5782_v41  ;;  %6387 = vmatmul.mubr.bf16.gmra.mrb[192].mxu1 %v6211_v27 }
 0x691   : > { %vm5667_vm10 = vcmp.ge.f32.partialorder %v5620_v58, 0.0  ;;  %v5699_v23 = vmul.f32 0.6, %v5620_v58  ;;  %v5622_v46 = vadd.f32 %v5621_v52, %v10362_v3  ;;  %v5623_v1 = vpop.f32.mrb[167].mxu1  ;;  %v5195_v18 = vadd.f32 %v5194_v22, %v10359_v4 }
 0x692   : > { %v5624_v11 = vadd.f32 %v5623_v1, %v10365_v31  ;;  %v5301_v12 = vsel %vm5237_vm13, %v5189_v61, %v5269_v20  ;;  %v5730_v49 = vsel %vm5666_vm1, %v5618_v59, %v5698_v48  ;;  %vm5239_vm11 = vcmp.ge.f32.partialorder %v5193_v10, 0.0 }
 0x693   : > { %v5271_v43 = vmul.f32 0.3, %v5193_v10  ;;  %vm5668_vm12 = vcmp.ge.f32.partialorder %v5622_v46, 0.0  ;;  %v5700_v32 = vmul.f32 0.6, %v5622_v46  ;;  %vm5240_vm14 = vcmp.ge.f32.partialorder %v5195_v18, 0.0 }
 0x694   : > { %v5272_v60 = vmul.f32 0.3, %v5195_v18  ;;  %vm5669_vm15 = vcmp.ge.f32.partialorder %v5624_v11, 0.0  ;;  %v5701_v30 = vmul.f32 0.6, %v5624_v11  ;;  %v5302_v13 = vsel %vm5238_vm7, %v5191_v33, %v5270_v28 }
 0x695   : > { %v5731_v62 = vsel %vm5667_vm10, %v5620_v58, %v5699_v23  ;;  %v5303_v25 = vsel %vm5239_vm11, %v5193_v10, %v5271_v43  ;;  %v5732_v38 = vsel %vm5668_vm12, %v5622_v46, %v5700_v32 }
 0x696   : > { %v5198_v29 = vpop.f32.mrb[152].mxu0  ;;  %v5627_v19 = vpop.f32.mrb[168].mxu1  ;;  %v5304_v8 = vsel %vm5240_vm14, %v5195_v18, %v5272_v60  ;;  %v5733_v55 = vsel %vm5669_vm15, %v5624_v11, %v5701_v30  ;;  %v5784_v36 = vpack.c.bf16 %v5303_v25, %v5301_v12  ;;  %v6213_v41 = vpack.c.bf16 %v5732_v38, %v5730_v49 }
 0x697   : > { %v5199_v54 = vadd.f32 %v5198_v29, %v10356_v45  ;;  %v5628_v57 = vadd.f32 %v5627_v19, %v10362_v3  ;;  %v5200_v5 = vpop.f32.mrb[153].mxu0  ;;  %v5629_v42 = vpop.f32.mrb[169].mxu1  ;;  %v5785_v2 = vpack.c.bf16 %v5304_v8, %v5302_v13  ;;  %v6214_v6 = vpack.c.bf16 %v5733_v55, %v5731_v62 }
 0x698   : > { %v5201_v16 = vadd.f32 %v5200_v5, %v10359_v4  ;;  %v5630_v47 = vadd.f32 %v5629_v42, %v10365_v31  ;;  %v5202_v50 = vpop.f32.mrb[154].mxu0  ;;  %v5631_v14 = vpop.f32.mrb[170].mxu1 }
 0x699   : > { %vm5241_vm0 = vcmp.ge.f32.partialorder %v5199_v54, 0.0  ;;  %v5273_v39 = vmul.f32 0.3, %v5199_v54  ;;  %vm5670_vm2 = vcmp.ge.f32.partialorder %v5628_v57, 0.0  ;;  %v5702_v40 = vmul.f32 0.6, %v5628_v57  ;;  %6044 = vmatprep.mubr.bf16.mxu0 %v5785_v2  ;;  %6394 = vmatprep.mubr.bf16.mxu1 %v6214_v6 }
 0x69a   : > { %vm5242_vm3 = vcmp.ge.f32.partialorder %v5201_v16, 0.0  ;;  %v5274_v21 = vmul.f32 0.3, %v5201_v16  ;;  %vm5671_vm4 = vcmp.ge.f32.partialorder %v5630_v47, 0.0  ;;  %v5703_v37 = vmul.f32 0.6, %v5630_v47  ;;  %6045 = vmatmul.mubr.bf16.gmra.mrb[180].mxu0 %v5784_v36  ;;  %6395 = vmatmul.mubr.bf16.gmra.mrb[196].mxu1 %v6213_v41 }
 0x69b   : > { %v5203_v24 = vadd.f32 %v5202_v50, %v10356_v45  ;;  %v5632_v9 = vadd.f32 %v5631_v14, %v10362_v3  ;;  %v5204_v7 = vpop.f32.mrb[155].mxu0  ;;  %v5633_v44 = vpop.f32.mrb[171].mxu1  ;;  %v5305_v34 = vsel %vm5241_vm0, %v5199_v54, %v5273_v39  ;;  %v5734_v51 = vsel %vm5670_vm2, %v5628_v57, %v5702_v40 }
 0x69c   : > { %v5205_v53 = vadd.f32 %v5204_v7, %v10359_v4  ;;  %v5634_v35 = vadd.f32 %v5633_v44, %v10365_v31  ;;  %v5306_v61 = vsel %vm5242_vm3, %v5201_v16, %v5274_v21  ;;  %v5735_v59 = vsel %vm5671_vm4, %v5630_v47, %v5703_v37  ;;  %v8423_v21 = vld [vmem:[#allocation6 + $0x6b8] ss:$56 sps:$4 sm:$0xff]  }
 0x69d   : > { %vm5243_vm5 = vcmp.ge.f32.partialorder %v5203_v24, 0.0  ;;  %v5275_v17 = vmul.f32 0.3, %v5203_v24  ;;  %vm5672_vm6 = vcmp.ge.f32.partialorder %v5632_v9, 0.0  ;;  %v5704_v63 = vmul.f32 0.6, %v5632_v9  ;;  %7379 = vmatprep.subr.bf16.mxu0 %v8423_v21 }
 0x69e   : > { %vm5244_vm8 = vcmp.ge.f32.partialorder %v5205_v53, 0.0  ;;  %v5276_v15 = vmul.f32 0.3, %v5205_v53  ;;  %vm5673_vm9 = vcmp.ge.f32.partialorder %v5634_v35, 0.0  ;;  %v5705_v26 = vmul.f32 0.6, %v5634_v35 }
 0x69f   : > { %v5208_v33 = vpop.f32.mrb[156].mxu0  ;;  %v5637_v58 = vpop.f32.mrb[172].mxu1  ;;  %v5307_v52 = vsel %vm5243_vm5, %v5203_v24, %v5275_v17  ;;  %v5736_v27 = vsel %vm5672_vm6, %v5632_v9, %v5704_v63  ;;  %v8424_v37 = vld [vmem:[#allocation6 + $0x338] ss:$56 sps:$4 sm:$0xff]  }
 0x6a0   : > { %v5209_v20 = vadd.f32 %v5208_v33, %v10356_v45  ;;  %v5638_v48 = vadd.f32 %v5637_v58, %v10362_v3  ;;  %v5210_v28 = vpop.f32.mrb[157].mxu0  ;;  %v5639_v23 = vpop.f32.mrb[173].mxu1  ;;  %v5308_v10 = vsel %vm5244_vm8, %v5205_v53, %v5276_v15  ;;  %v5737_v46 = vsel %vm5673_vm9, %v5634_v35, %v5705_v26  ;;  %7380 = vmatpush3.bf16.msra.mxu0 %v8424_v37  ;;  %v5790_v24 = vld [vmem:[%s10598_s5 + $0x13] sm:$0x3]  ;;  %v10486_v26 = vld [vmem:[%s10598_s5 + $0x18] ss:$0 sm:$0xff] }
 0x6a1   : > { %v5211_v22 = vadd.f32 %v5210_v28, %v10359_v4  ;;  %v5640_v1 = vadd.f32 %v5639_v23, %v10365_v31  ;;  %v5212_v18 = vpop.f32.mrb[158].mxu0  ;;  %v5641_v11 = vpop.f32.mrb[174].mxu1  ;;  %v5787_v12 = vpack.c.bf16 %v5308_v10, %v5306_v61  ;;  %v6216_v49 = vpack.c.bf16 %v5737_v46, %v5735_v59 }
 0x6a2   : > { %vm5245_vm13 = vcmp.ge.f32.partialorder %v5209_v20, 0.0  ;;  %v5277_v43 = vmul.f32 0.3, %v5209_v20  ;;  %vm5674_vm1 = vcmp.ge.f32.partialorder %v5638_v48, 0.0  ;;  %v5706_v32 = vmul.f32 0.6, %v5638_v48 }
 0x6a3   : > { %vm5246_vm7 = vcmp.ge.f32.partialorder %v5211_v22, 0.0  ;;  %v5278_v60 = vmul.f32 0.3, %v5211_v22  ;;  %vm5675_vm10 = vcmp.ge.f32.partialorder %v5640_v1, 0.0  ;;  %v5707_v30 = vmul.f32 0.6, %v5640_v1  ;;  %6054 = vmatprep.mubr.bf16.mxu0 %v5787_v12  ;;  %6402 = vmatprep.mubr.bf16.mxu1 %v6216_v49 }
 0x6a4   : > { %v5213_v29 = vadd.f32 %v5212_v18, %v10356_v45  ;;  %v5642_v19 = vadd.f32 %v5641_v11, %v10362_v3  ;;  %v5214_v13 = vpop.f32.mrb[159].mxu0  ;;  %v5643_v62 = vpop.f32.mrb[175].mxu1  ;;  %v5786_v25 = vpack.c.bf16 %v5307_v52, %v5305_v34  ;;  %v6215_v38 = vpack.c.bf16 %v5736_v27, %v5734_v51 }
 0x6a5   : > { %v5215_v54 = vadd.f32 %v5214_v13, %v10359_v4  ;;  %v5644_v57 = vadd.f32 %v5643_v62, %v10365_v31  ;;  %v5310_v5 = vsel %vm5246_vm7, %v5211_v22, %v5278_v60  ;;  %v5739_v42 = vsel %vm5675_vm10, %v5640_v1, %v5707_v30 }
 0x6a6   : > { %vm5247_vm11 = vcmp.ge.f32.partialorder %v5213_v29, 0.0  ;;  %v5279_v8 = vmul.f32 0.3, %v5213_v29  ;;  %vm5676_vm12 = vcmp.ge.f32.partialorder %v5642_v19, 0.0  ;;  %v5708_v55 = vmul.f32 0.6, %v5642_v19  ;;  %6055 = vmatmul.mubr.bf16.gmra.mrb[184].mxu0 %v5786_v25  ;;  %6403 = vmatmul.mubr.bf16.gmra.mrb[200].mxu1 %v6215_v38 }
 0x6a7   : > { %vm5248_vm14 = vcmp.ge.f32.partialorder %v5215_v54, 0.0  ;;  %v5280_v45 = vmul.f32 0.3, %v5215_v54  ;;  %vm5677_vm15 = vcmp.ge.f32.partialorder %v5644_v57, 0.0  ;;  %v5709_v3 = vmul.f32 0.6, %v5644_v57 }
 0x6a8   : > { %v5309_v16 = vsel %vm5245_vm13, %v5209_v20, %v5277_v43  ;;  %v5311_v47 = vsel %vm5247_vm11, %v5213_v29, %v5279_v8  ;;  %v5738_v50 = vsel %vm5674_vm1, %v5638_v48, %v5706_v32  ;;  %v5740_v4 = vsel %vm5676_vm12, %v5642_v19, %v5708_v55 }
 0x6a9   : > { %v5312_v14 = vsel %vm5248_vm14, %v5215_v54, %v5280_v45  ;;  %v5741_v31 = vsel %vm5677_vm15, %v5644_v57, %v5709_v3  ;;  %v5788_v2 = vpack.c.bf16 %v5311_v47, %v5309_v16  ;;  %v6217_v6 = vpack.c.bf16 %v5740_v4, %v5738_v50 }
 0x6aa   : > { %v5789_v39 = vpack.c.bf16 %v5312_v14, %v5310_v5  ;;  %v6218_v40 = vpack.c.bf16 %v5741_v31, %v5739_v42  ;;  %v10473_v9 = vrot.slane %v5790_v24, %v10657_v0  ;;  %v10476_v7 = vrot.slane %v5790_v24, %v10658_v56 }
 0x6ac   : > { %6064 = vmatprep.mubr.bf16.mxu0 %v5789_v39  ;;  %6410 = vmatprep.mubr.bf16.mxu1 %v6218_v40 }
 0x6ae   : > { %6065 = vmatmul.mubr.bf16.gmra.mrb[188].mxu0 %v5788_v2  ;;  %6411 = vmatmul.mubr.bf16.gmra.mrb[204].mxu1 %v6217_v6 }
 0x73b   : > { %v5996_v44 = vpop.f32.mrb[160].mxu0 }
 0x73c   : > { %v5997_v36 = vadd.f32 %v5996_v44, %v10473_v9  ;;  %v5998_v41 = vpop.f32.mrb[161].mxu0 }
 0x73d   : > { %v5999_v53 = vadd.f32 %v5998_v41, %v10476_v7  ;;  %v6000_v35 = vpop.f32.mrb[162].mxu0 }
 0x73e   : > { %v6107_v61 = vmul.f32 0.5, %v5997_v36  ;;  %v6001_v59 = vadd.f32 %v6000_v35, %v10473_v9  ;;  %v6002_v17 = vpop.f32.mrb[163].mxu0  ;;  %vm6075_vm0 = vcmp.ge.f32.partialorder %v5997_v36, 0.0 }
 0x73f   : > { %v6108_v63 = vmul.f32 0.5, %v5999_v53  ;;  %v6003_v15 = vadd.f32 %v6002_v17, %v10476_v7  ;;  %vm6076_vm2 = vcmp.ge.f32.partialorder %v5999_v53, 0.0 }
 0x740   : > { %v7317_v0 = vpop.f32.mrb[176].mxu1  ;;  %vm6077_vm3 = vcmp.ge.f32.partialorder %v6001_v59, 0.0  ;;  %v6109_v56 = vmul.f32 0.5, %v6001_v59  ;;  %v6139_v34 = vsel %vm6075_vm0, %v5997_v36, %v6107_v61 }
 0x741   : > { %v7318_v33 = vpop.f32.mrb[177].mxu1  ;;  %vm6078_vm4 = vcmp.ge.f32.partialorder %v6003_v15, 0.0  ;;  %v6110_v58 = vmul.f32 0.5, %v6003_v15  ;;  %v6140_v28 = vsel %vm6076_vm2, %v5999_v53, %v6108_v63 }
 0x742   : > { %v7319_v52 = vadd.f32 %v7318_v33, %v7317_v0  ;;  %v6141_v51 = vsel %vm6077_vm3, %v6001_v59, %v6109_v56  ;;  %v7320_v27 = vpop.f32.mrb[178].mxu1 }
 0x743   : > { %v6451_v20 = vpack.c.bf16 %v6141_v51, %v6139_v34  ;;  %v7321_v48 = vpop.f32.mrb[179].mxu1  ;;  %v6142_v23 = vsel %vm6078_vm4, %v6003_v15, %v6110_v58 }
 0x744   : > { %v6357_v10 = vadd.f32 %v7319_v52, %v10486_v26  ;;  %v7322_v46 = vadd.f32 %v7321_v48, %v7320_v27  ;;  %v6452_v22 = vpack.c.bf16 %v6142_v23, %v6140_v28 }
 0x745   : > { %v6006_v1 = vpop.f32.mrb[164].mxu0 }
 0x746   : > { %6683 = vst [vmem:[%s10491_s29 + $0x8] sm:$0xff] %v6357_v10  ;;  %v6360_v18 = vadd.f32 %v7322_v46, %v10486_v26  ;;  %v6007_v11 = vadd.f32 %v6006_v1, %v10473_v9  ;;  %v6008_v12 = vpop.f32.mrb[165].mxu0  ;;  %6602 = vmatprep.mubr.bf16.mxu0 %v6452_v22 }
 0x747   : > { %v6009_v49 = vadd.f32 %v6008_v12, %v10476_v7  ;;  %v6010_v43 = vpop.f32.mrb[166].mxu0  ;;  %6603 = vmatmul.mubr.bf16.vlgmr.msra.gmra.mrb[192].mxu0 %v6451_v20 }
 0x748   : > { %6684 = vst [vmem:[%s10491_s29 + $0x18] sm:$0xff] %v6360_v18  ;;  %v6111_v32 = vmul.f32 0.5, %v6007_v11  ;;  %v7323_v60 = vpop.f32.mrb[180].mxu1  ;;  %v6011_v30 = vadd.f32 %v6010_v43, %v10473_v9  ;;  %v6012_v29 = vpop.f32.mrb[167].mxu0  ;;  %vm6079_vm5 = vcmp.ge.f32.partialorder %v6007_v11, 0.0 }
 0x749   : > { %v6112_v19 = vmul.f32 0.5, %v6009_v49  ;;  %v7324_v13 = vpop.f32.mrb[181].mxu1  ;;  %v6013_v62 = vadd.f32 %v6012_v29, %v10476_v7  ;;  %vm6080_vm6 = vcmp.ge.f32.partialorder %v6009_v49, 0.0 }
 0x74a   : > { %v7325_v25 = vadd.f32 %v7324_v13, %v7323_v60  ;;  %vm6081_vm8 = vcmp.ge.f32.partialorder %v6011_v30, 0.0  ;;  %v6113_v38 = vmul.f32 0.5, %v6011_v30  ;;  %v7326_v54 = vpop.f32.mrb[182].mxu1  ;;  %v6143_v55 = vsel %vm6079_vm5, %v6007_v11, %v6111_v32 }
 0x74b   : > { %vm6082_vm9 = vcmp.ge.f32.partialorder %v6013_v62, 0.0  ;;  %v6114_v57 = vmul.f32 0.5, %v6013_v62  ;;  %v7327_v5 = vpop.f32.mrb[183].mxu1  ;;  %v6144_v3 = vsel %vm6080_vm6, %v6009_v49, %v6112_v19 }
 0x74c   : > { %v6365_v42 = vadd.f32 %v7325_v25, %v10486_v26  ;;  %v7328_v8 = vadd.f32 %v7327_v5, %v7326_v54  ;;  %v6145_v45 = vsel %vm6081_vm8, %v6011_v30, %v6113_v38 }
 0x74d   : > { %v6146_v16 = vsel %vm6082_vm9, %v6013_v62, %v6114_v57  ;;  %v6453_v47 = vpack.c.bf16 %v6145_v45, %v6143_v55 }
 0x74e   : > { %6685 = vst [vmem:[%s10491_s29 + $0x28] sm:$0xff] %v6365_v42  ;;  %v6368_v50 = vadd.f32 %v7328_v8, %v10486_v26  ;;  %v6454_v4 = vpack.c.bf16 %v6146_v16, %v6144_v3 }
 0x74f   : > { %v6016_v14 = vpop.f32.mrb[168].mxu0 }
 0x750   : > { %6686 = vst [vmem:[%s10491_s29 + $0x38] sm:$0xff] %v6368_v50  ;;  %v6017_v31 = vadd.f32 %v6016_v14, %v10473_v9  ;;  %v6018_v2 = vpop.f32.mrb[169].mxu0  ;;  %6610 = vmatprep.mubr.bf16.mxu0 %v6454_v4 }
 0x751   : > { %v6019_v6 = vadd.f32 %v6018_v2, %v10476_v7  ;;  %v6020_v39 = vpop.f32.mrb[170].mxu0  ;;  %6611 = vmatmul.mubr.bf16.gmra.mrb[196].mxu0 %v6453_v47 }
 0x752   : > { %v6115_v40 = vmul.f32 0.5, %v6017_v31  ;;  %v7329_v21 = vpop.f32.mrb[184].mxu1  ;;  %v6021_v37 = vadd.f32 %v6020_v39, %v10473_v9  ;;  %v6022_v24 = vpop.f32.mrb[171].mxu0  ;;  %vm6083_vm13 = vcmp.ge.f32.partialorder %v6017_v31, 0.0 }
 0x753   : > { %v6116_v44 = vmul.f32 0.5, %v6019_v6  ;;  %v7330_v36 = vpop.f32.mrb[185].mxu1  ;;  %v6023_v41 = vadd.f32 %v6022_v24, %v10476_v7  ;;  %vm6084_vm1 = vcmp.ge.f32.partialorder %v6019_v6, 0.0 }
 0x754   : > { %v7331_v53 = vadd.f32 %v7330_v36, %v7329_v21  ;;  %vm6085_vm7 = vcmp.ge.f32.partialorder %v6021_v37, 0.0  ;;  %v6117_v35 = vmul.f32 0.5, %v6021_v37  ;;  %v7332_v61 = vpop.f32.mrb[186].mxu1  ;;  %v6147_v0 = vsel %vm6083_vm13, %v6017_v31, %v6115_v40 }
 0x755   : > { %vm6086_vm10 = vcmp.ge.f32.partialorder %v6023_v41, 0.0  ;;  %v6118_v59 = vmul.f32 0.5, %v6023_v41  ;;  %v7333_v17 = vpop.f32.mrb[187].mxu1  ;;  %v6148_v33 = vsel %vm6084_vm1, %v6019_v6, %v6116_v44 }
 0x756   : > { %v6373_v63 = vadd.f32 %v7331_v53, %v10486_v26  ;;  %v7334_v15 = vadd.f32 %v7333_v17, %v7332_v61  ;;  %v6149_v56 = vsel %vm6085_vm7, %v6021_v37, %v6117_v35 }
 0x757   : > { %v6150_v58 = vsel %vm6086_vm10, %v6023_v41, %v6118_v59  ;;  %v6455_v34 = vpack.c.bf16 %v6149_v56, %v6147_v0 }
 0x758   : > { %6687 = vst [vmem:[%s10491_s29 + $0x48] sm:$0xff] %v6373_v63  ;;  %v6376_v52 = vadd.f32 %v7334_v15, %v10486_v26  ;;  %v6026_v51 = vpop.f32.mrb[172].mxu0  ;;  %v6456_v27 = vpack.c.bf16 %v6150_v58, %v6148_v33 }
 0x759   : > { %v6027_v20 = vadd.f32 %v6026_v51, %v10473_v9  ;;  %v6028_v48 = vpop.f32.mrb[173].mxu0 }
 0x75a   : > { %6688 = vst [vmem:[%s10491_s29 + $0x58] sm:$0xff] %v6376_v52  ;;  %v6029_v28 = vadd.f32 %v6028_v48, %v10476_v7  ;;  %v6030_v23 = vpop.f32.mrb[174].mxu0  ;;  %6618 = vmatprep.mubr.bf16.mxu0 %v6456_v27  ;;  %v7335_v1 = vpop.f32.mrb[188].mxu1 }
 0x75b   : > { %v6119_v10 = vmul.f32 0.5, %v6027_v20  ;;  %v6031_v46 = vadd.f32 %v6030_v23, %v10473_v9  ;;  %v6032_v22 = vpop.f32.mrb[175].mxu0  ;;  %6619 = vmatmul.mubr.bf16.gmra.mrb[200].mxu0 %v6455_v34  ;;  %vm6087_vm11 = vcmp.ge.f32.partialorder %v6027_v20, 0.0  ;;  %v7336_v12 = vpop.f32.mrb[189].mxu1 }
 0x75c   : > { %vm6088_vm12 = vcmp.ge.f32.partialorder %v6029_v28, 0.0  ;;  %v6120_v18 = vmul.f32 0.5, %v6029_v28  ;;  %v6033_v11 = vadd.f32 %v6032_v22, %v10476_v7  ;;  %v7337_v43 = vadd.f32 %v7336_v12, %v7335_v1  ;;  %v7338_v32 = vpop.f32.mrb[190].mxu1 }
 0x75d   : > { %vm6089_vm14 = vcmp.ge.f32.partialorder %v6031_v46, 0.0  ;;  %v6121_v49 = vmul.f32 0.5, %v6031_v46  ;;  %v7339_v30 = vpop.f32.mrb[191].mxu1  ;;  %v6151_v19 = vsel %vm6087_vm11, %v6027_v20, %v6119_v10 }
 0x75e   : > { %vm6090_vm15 = vcmp.ge.f32.partialorder %v6033_v11, 0.0  ;;  %v6122_v60 = vmul.f32 0.5, %v6033_v11  ;;  %v6152_v29 = vsel %vm6088_vm12, %v6029_v28, %v6120_v18  ;;  %v6381_v62 = vadd.f32 %v7337_v43, %v10486_v26 }
 0x75f   : > { %v6153_v13 = vsel %vm6089_vm14, %v6031_v46, %v6121_v49  ;;  %v7340_v25 = vadd.f32 %v7339_v30, %v7338_v32 }
 0x760   : > { %v6154_v38 = vsel %vm6090_vm15, %v6033_v11, %v6122_v60  ;;  %v6457_v54 = vpack.c.bf16 %v6153_v13, %v6151_v19  ;;  %6689 = vst [vmem:[%s10491_s29 + $0x68] sm:$0xff] %v6381_v62 }
 0x761   : > { %v6458_v5 = vpack.c.bf16 %v6154_v38, %v6152_v29  ;;  %v6384_v42 = vadd.f32 %v7340_v25, %v10486_v26 }
 0x763   : > { %v6036_v57 = vpop.f32.mrb[176].mxu0  ;;  %6626 = vmatprep.mubr.bf16.mxu0 %v6458_v5  ;;  %6690 = vst [vmem:[%s10491_s29 + $0x78] sm:$0xff] %v6384_v42  ;;  %v7341_v47 = vpop.f32.mrb[192].mxu1 }
 0x764   : > { %v6037_v8 = vadd.f32 %v6036_v57, %v10473_v9  ;;  %v6038_v55 = vpop.f32.mrb[177].mxu0  ;;  %6627 = vmatmul.mubr.bf16.gmra.mrb[204].mxu0 %v6457_v54  ;;  %v7342_v31 = vpop.f32.mrb[193].mxu1 }
 0x765   : > { %v6039_v45 = vadd.f32 %v6038_v55, %v10476_v7  ;;  %v6040_v3 = vpop.f32.mrb[178].mxu0  ;;  %v7343_v6 = vadd.f32 %v7342_v31, %v7341_v47  ;;  %v7344_v40 = vpop.f32.mrb[194].mxu1 }
 0x766   : > { %v6123_v16 = vmul.f32 0.5, %v6037_v8  ;;  %v6041_v50 = vadd.f32 %v6040_v3, %v10473_v9  ;;  %v6042_v4 = vpop.f32.mrb[179].mxu0  ;;  %vm6091_vm0 = vcmp.ge.f32.partialorder %v6037_v8, 0.0  ;;  %v7345_v37 = vpop.f32.mrb[195].mxu1 }
 0x767   : > { %v6124_v14 = vmul.f32 0.5, %v6039_v45  ;;  %v6043_v2 = vadd.f32 %v6042_v4, %v10476_v7  ;;  %vm6092_vm2 = vcmp.ge.f32.partialorder %v6039_v45, 0.0  ;;  %v6389_v24 = vadd.f32 %v7343_v6, %v10486_v26 }
 0x768   : > { %vm6093_vm3 = vcmp.ge.f32.partialorder %v6041_v50, 0.0  ;;  %v6125_v39 = vmul.f32 0.5, %v6041_v50  ;;  %v7346_v44 = vadd.f32 %v7345_v37, %v7344_v40  ;;  %v6155_v36 = vsel %vm6091_vm0, %v6037_v8, %v6123_v16 }
 0x769   : > { %vm6094_vm4 = vcmp.ge.f32.partialorder %v6043_v2, 0.0  ;;  %v6126_v21 = vmul.f32 0.5, %v6043_v2  ;;  %v6156_v53 = vsel %vm6092_vm2, %v6039_v45, %v6124_v14  ;;  %6691 = vst [vmem:[%s10491_s29 + $0x88] sm:$0xff] %v6389_v24 }
 0x76a   : > { %v6157_v41 = vsel %vm6093_vm3, %v6041_v50, %v6125_v39  ;;  %v6392_v59 = vadd.f32 %v7346_v44, %v10486_v26 }
 0x76b   : > { %v6158_v35 = vsel %vm6094_vm4, %v6043_v2, %v6126_v21  ;;  %v6459_v61 = vpack.c.bf16 %v6157_v41, %v6155_v36 }
 0x76c   : > { %v6460_v17 = vpack.c.bf16 %v6158_v35, %v6156_v53  ;;  %6692 = vst [vmem:[%s10491_s29 + $0x98] sm:$0xff] %v6392_v59 }
 0x76d   : > { %v6046_v63 = vpop.f32.mrb[180].mxu0  ;;  %v7347_v15 = vpop.f32.mrb[196].mxu1 }
 0x76e   : > { %6634 = vmatprep.mubr.bf16.mxu0 %v6460_v17  ;;  %v6047_v0 = vadd.f32 %v6046_v63, %v10473_v9  ;;  %v6048_v56 = vpop.f32.mrb[181].mxu0  ;;  %v7348_v33 = vpop.f32.mrb[197].mxu1 }
 0x76f   : > { %6635 = vmatmul.mubr.bf16.gmra.mrb[208].mxu0 %v6459_v61  ;;  %v6049_v58 = vadd.f32 %v6048_v56, %v10476_v7  ;;  %v7349_v34 = vadd.f32 %v7348_v33, %v7347_v15  ;;  %v6050_v52 = vpop.f32.mrb[182].mxu0  ;;  %v7350_v51 = vpop.f32.mrb[198].mxu1 }
 0x770   : > { %v6127_v27 = vmul.f32 0.5, %v6047_v0  ;;  %v6051_v20 = vadd.f32 %v6050_v52, %v10473_v9  ;;  %v6052_v48 = vpop.f32.mrb[183].mxu0  ;;  %v7351_v28 = vpop.f32.mrb[199].mxu1  ;;  %vm6095_vm5 = vcmp.ge.f32.partialorder %v6047_v0, 0.0 }
 0x771   : > { %v6128_v23 = vmul.f32 0.5, %v6049_v58  ;;  %v6397_v10 = vadd.f32 %v7349_v34, %v10486_v26  ;;  %v6053_v46 = vadd.f32 %v6052_v48, %v10476_v7  ;;  %vm6096_vm6 = vcmp.ge.f32.partialorder %v6049_v58, 0.0 }
 0x772   : > { %vm6097_vm8 = vcmp.ge.f32.partialorder %v6051_v20, 0.0  ;;  %v6129_v22 = vmul.f32 0.5, %v6051_v20  ;;  %v7352_v1 = vadd.f32 %v7351_v28, %v7350_v51  ;;  %v6159_v12 = vsel %vm6095_vm5, %v6047_v0, %v6127_v27 }
 0x773   : > { %6693 = vst [vmem:[%s10491_s29 + $0xa8] sm:$0xff] %v6397_v10  ;;  %vm6098_vm9 = vcmp.ge.f32.partialorder %v6053_v46, 0.0  ;;  %v6130_v18 = vmul.f32 0.5, %v6053_v46  ;;  %v6160_v43 = vsel %vm6096_vm6, %v6049_v58, %v6128_v23 }
 0x774   : > { %v6400_v11 = vadd.f32 %v7352_v1, %v10486_v26  ;;  %v6161_v49 = vsel %vm6097_vm8, %v6051_v20, %v6129_v22  ;;  %v10556_v22 = vld [vmem:[%s10598_s5 + $0x15] ss:$0 sm:$0xff] }
 0x775   : > { %v6162_v32 = vsel %vm6098_vm9, %v6053_v46, %v6130_v18  ;;  %v6461_v60 = vpack.c.bf16 %v6161_v49, %v6159_v12 }
 0x776   : > { %6694 = vst [vmem:[%s10491_s29 + $0xb8] sm:$0xff] %v6400_v11  ;;  %v6462_v19 = vpack.c.bf16 %v6162_v32, %v6160_v43 }
 0x778   : > { %6642 = vmatprep.mubr.bf16.mxu0 %v6462_v19 }
 0x779   : > { %v6056_v30 = vpop.f32.mrb[184].mxu0  ;;  %v7353_v29 = vpop.f32.mrb[200].mxu1  ;;  %6643 = vmatmul.mubr.bf16.gmra.mrb[212].mxu0 %v6461_v60 }
 0x77a   : > { %v6057_v13 = vadd.f32 %v6056_v30, %v10473_v9  ;;  %v6058_v62 = vpop.f32.mrb[185].mxu0  ;;  %v7354_v25 = vpop.f32.mrb[201].mxu1 }
 0x77b   : > { %v6059_v38 = vadd.f32 %v6058_v62, %v10476_v7  ;;  %v7355_v54 = vadd.f32 %v7354_v25, %v7353_v29  ;;  %v6060_v57 = vpop.f32.mrb[186].mxu0  ;;  %v7356_v5 = vpop.f32.mrb[202].mxu1 }
 0x77c   : > { %v6131_v42 = vmul.f32 0.5, %v6057_v13  ;;  %v6061_v8 = vadd.f32 %v6060_v57, %v10473_v9  ;;  %v6062_v55 = vpop.f32.mrb[187].mxu0  ;;  %v7357_v45 = vpop.f32.mrb[203].mxu1  ;;  %vm6099_vm13 = vcmp.ge.f32.partialorder %v6057_v13, 0.0 }
 0x77d   : > { %v6132_v3 = vmul.f32 0.5, %v6059_v38  ;;  %v6405_v16 = vadd.f32 %v7355_v54, %v10486_v26  ;;  %v6063_v47 = vadd.f32 %v6062_v55, %v10476_v7  ;;  %vm6100_vm1 = vcmp.ge.f32.partialorder %v6059_v38, 0.0 }
 0x77e   : > { %vm6101_vm7 = vcmp.ge.f32.partialorder %v6061_v8, 0.0  ;;  %v6133_v50 = vmul.f32 0.5, %v6061_v8  ;;  %v7358_v4 = vadd.f32 %v7357_v45, %v7356_v5  ;;  %v6163_v2 = vsel %vm6099_vm13, %v6057_v13, %v6131_v42 }
 0x77f   : > { %6695 = vst [vmem:[%s10491_s29 + $0xc8] sm:$0xff] %v6405_v16  ;;  %vm6102_vm10 = vcmp.ge.f32.partialorder %v6063_v47, 0.0  ;;  %v6134_v14 = vmul.f32 0.5, %v6063_v47  ;;  %v6164_v21 = vsel %vm6100_vm1, %v6059_v38, %v6132_v3 }
 0x780   : > { %v6408_v31 = vadd.f32 %v7358_v4, %v10486_v26  ;;  %v6165_v6 = vsel %vm6101_vm7, %v6061_v8, %v6133_v50 }
 0x781   : > { %v6066_v39 = vpop.f32.mrb[188].mxu0  ;;  %v7359_v40 = vpop.f32.mrb[204].mxu1  ;;  %v6166_v37 = vsel %vm6102_vm10, %v6063_v47, %v6134_v14  ;;  %v6463_v24 = vpack.c.bf16 %v6165_v6, %v6163_v2 }
 0x782   : > { %6696 = vst [vmem:[%s10491_s29 + $0xd8] sm:$0xff] %v6408_v31  ;;  %v6067_v44 = vadd.f32 %v6066_v39, %v10473_v9  ;;  %v6068_v36 = vpop.f32.mrb[189].mxu0  ;;  %v7360_v41 = vpop.f32.mrb[205].mxu1  ;;  %v6464_v53 = vpack.c.bf16 %v6166_v37, %v6164_v21 }
 0x783   : > { %v6069_v35 = vadd.f32 %v6068_v36, %v10476_v7  ;;  %v7361_v61 = vadd.f32 %v7360_v41, %v7359_v40  ;;  %v6070_v59 = vpop.f32.mrb[190].mxu0  ;;  %v7362_v17 = vpop.f32.mrb[206].mxu1 }
 0x784   : > { %v6135_v63 = vmul.f32 0.5, %v6067_v44  ;;  %v6071_v15 = vadd.f32 %v6070_v59, %v10473_v9  ;;  %v6072_v0 = vpop.f32.mrb[191].mxu0  ;;  %v7363_v56 = vpop.f32.mrb[207].mxu1  ;;  %6650 = vmatprep.mubr.bf16.mxu0 %v6464_v53  ;;  %vm6103_vm11 = vcmp.ge.f32.partialorder %v6067_v44, 0.0 }
 0x785   : > { %v6136_v33 = vmul.f32 0.5, %v6069_v35  ;;  %v6413_v58 = vadd.f32 %v7361_v61, %v10486_v26  ;;  %v6073_v34 = vadd.f32 %v6072_v0, %v10476_v7  ;;  %6651 = vmatmul.mubr.bf16.gmra.mrb[216].mxu0 %v6463_v24  ;;  %vm6104_vm12 = vcmp.ge.f32.partialorder %v6069_v35, 0.0 }
 0x786   : > { %vm6105_vm14 = vcmp.ge.f32.partialorder %v6071_v15, 0.0  ;;  %v6137_v52 = vmul.f32 0.5, %v6071_v15  ;;  %v7364_v51 = vadd.f32 %v7363_v56, %v7362_v17  ;;  %v6167_v20 = vsel %vm6103_vm11, %v6067_v44, %v6135_v63 }
 0x787   : > { %6697 = vst [vmem:[%s10491_s29 + $0xe8] sm:$0xff] %v6413_v58  ;;  %vm6106_vm15 = vcmp.ge.f32.partialorder %v6073_v34, 0.0  ;;  %v6138_v27 = vmul.f32 0.5, %v6073_v34  ;;  %v6168_v28 = vsel %vm6104_vm12, %v6069_v35, %v6136_v33 }
 0x788   : > { %v6416_v9 = vadd.f32 %v7364_v51, %v10486_v26  ;;  %v6169_v48 = vsel %vm6105_vm14, %v6071_v15, %v6137_v52 }
 0x789   : > { %v6170_v23 = vsel %vm6106_vm15, %v6073_v34, %v6138_v27  ;;  %v6465_v10 = vpack.c.bf16 %v6169_v48, %v6167_v20 }
 0x78a   : > { %6698 = vst [vmem:[%s10491_s29 + $0xf8] sm:$0xff] %v6416_v9  ;;  %v6466_v46 = vpack.c.bf16 %v6170_v23, %v6168_v28 }
 0x78c   : > { %6658 = vmatprep.mubr.bf16.mxu0 %v6466_v46 }
 0x78d   : > { %6659 = vmatmul.mubr.bf16.gmra.mrb[220].mxu0 %v6465_v10 }
 0x81a   : > { %v7381_v7 = vpop.f32.mrb[192].mxu0 }
 0x81b   : > { %v7382_v1 = vpop.f32.mrb[193].mxu0 }
 0x81c   : > { %v7383_v26 = vadd.f32 %v7382_v1, %v7381_v7  ;;  %v7384_v18 = vpop.f32.mrb[194].mxu0 }
 0x81d   : > { %v7385_v11 = vpop.f32.mrb[195].mxu0 }
 0x81e   : > { %v6605_v12 = vadd.f32 %v7383_v26, %v10556_v22  ;;  %v7386_v49 = vadd.f32 %v7385_v11, %v7384_v18 }
 0x820   : > { %6667 = vst [vmem:[%s10491_s29] sm:$0xff] %v6605_v12  ;;  %v6608_v43 = vadd.f32 %v7386_v49, %v10556_v22 }
 0x822   : > { %6668 = vst [vmem:[%s10491_s29 + $0x10] sm:$0xff] %v6608_v43 }
 0x824   : > { %v7387_v32 = vpop.f32.mrb[196].mxu0 }
 0x825   : > { %v7388_v60 = vpop.f32.mrb[197].mxu0 }
 0x826   : > { %v7389_v30 = vadd.f32 %v7388_v60, %v7387_v32  ;;  %v7390_v29 = vpop.f32.mrb[198].mxu0 }
 0x827   : > { %v7391_v19 = vpop.f32.mrb[199].mxu0 }
 0x828   : > { %v6613_v13 = vadd.f32 %v7389_v30, %v10556_v22  ;;  %v7392_v62 = vadd.f32 %v7391_v19, %v7390_v29 }
 0x82a   : > { %6669 = vst [vmem:[%s10491_s29 + $0x20] sm:$0xff] %v6613_v13  ;;  %v6616_v25 = vadd.f32 %v7392_v62, %v10556_v22 }
 0x82c   : > { %6670 = vst [vmem:[%s10491_s29 + $0x30] sm:$0xff] %v6616_v25 }
 0x82e   : > { %v7393_v38 = vpop.f32.mrb[200].mxu0 }
 0x82f   : > { %v7394_v54 = vpop.f32.mrb[201].mxu0 }
 0x830   : > { %v7395_v57 = vadd.f32 %v7394_v54, %v7393_v38  ;;  %v7396_v5 = vpop.f32.mrb[202].mxu0 }
 0x831   : > { %v7397_v42 = vpop.f32.mrb[203].mxu0 }
 0x832   : > { %v6621_v8 = vadd.f32 %v7395_v57, %v10556_v22  ;;  %v7398_v55 = vadd.f32 %v7397_v42, %v7396_v5 }
 0x834   : > { %6671 = vst [vmem:[%s10491_s29 + $0x40] sm:$0xff] %v6621_v8  ;;  %v6624_v45 = vadd.f32 %v7398_v55, %v10556_v22 }
 0x836   : > { %6672 = vst [vmem:[%s10491_s29 + $0x50] sm:$0xff] %v6624_v45 }
 0x837   : > { %v7399_v3 = vpop.f32.mrb[204].mxu0 }
 0x838   : > { %v7400_v16 = vpop.f32.mrb[205].mxu0 }
 0x839   : > { %v7401_v47 = vadd.f32 %v7400_v16, %v7399_v3  ;;  %v7402_v50 = vpop.f32.mrb[206].mxu0 }
 0x83a   : > { %v7403_v4 = vpop.f32.mrb[207].mxu0 }
 0x83b   : > { %v6629_v14 = vadd.f32 %v7401_v47, %v10556_v22  ;;  %v7404_v31 = vadd.f32 %v7403_v4, %v7402_v50 }
 0x83d   : > { %6673 = vst [vmem:[%s10491_s29 + $0x60] sm:$0xff] %v6629_v14  ;;  %v6632_v2 = vadd.f32 %v7404_v31, %v10556_v22 }
 0x83f   : > { %6674 = vst [vmem:[%s10491_s29 + $0x70] sm:$0xff] %v6632_v2 }
 0x842   : > { %v7405_v6 = vpop.f32.mrb[208].mxu0 }
 0x843   : > { %v7406_v39 = vpop.f32.mrb[209].mxu0 }
 0x844   : > { %v7407_v40 = vadd.f32 %v7406_v39, %v7405_v6  ;;  %v7408_v21 = vpop.f32.mrb[210].mxu0 }
 0x845   : > { %v7409_v37 = vpop.f32.mrb[211].mxu0 }
 0x846   : > { %v6637_v24 = vadd.f32 %v7407_v40, %v10556_v22  ;;  %v7410_v44 = vadd.f32 %v7409_v37, %v7408_v21 }
 0x848   : > { %6675 = vst [vmem:[%s10491_s29 + $0x80] sm:$0xff] %v6637_v24  ;;  %v6640_v36 = vadd.f32 %v7410_v44, %v10556_v22 }
 0x84a   : > { %6676 = vst [vmem:[%s10491_s29 + $0x90] sm:$0xff] %v6640_v36 }
 0x84c   : > { %v7411_v41 = vpop.f32.mrb[212].mxu0 }
 0x84d   : > { %v7412_v53 = vpop.f32.mrb[213].mxu0 }
 0x84e   : > { %v7413_v35 = vadd.f32 %v7412_v53, %v7411_v41  ;;  %v7414_v61 = vpop.f32.mrb[214].mxu0 }
 0x84f   : > { %v7415_v59 = vpop.f32.mrb[215].mxu0 }
 0x850   : > { %v6645_v17 = vadd.f32 %v7413_v35, %v10556_v22  ;;  %v7416_v63 = vadd.f32 %v7415_v59, %v7414_v61 }
 0x852   : > { %6677 = vst [vmem:[%s10491_s29 + $0xa0] sm:$0xff] %v6645_v17  ;;  %v6648_v15 = vadd.f32 %v7416_v63, %v10556_v22 }
 0x854   : > { %6678 = vst [vmem:[%s10491_s29 + $0xb0] sm:$0xff] %v6648_v15 }
 0x858   : > { %v7417_v0 = vpop.f32.mrb[216].mxu0 }
 0x859   : > { %v7418_v56 = vpop.f32.mrb[217].mxu0 }
 0x85a   : > { %v7419_v33 = vadd.f32 %v7418_v56, %v7417_v0  ;;  %v7420_v58 = vpop.f32.mrb[218].mxu0 }
 0x85b   : > { %v7421_v34 = vpop.f32.mrb[219].mxu0 }
 0x85c   : > { %v6653_v52 = vadd.f32 %v7419_v33, %v10556_v22  ;;  %v7422_v51 = vadd.f32 %v7421_v34, %v7420_v58 }
 0x85e   : > { %6679 = vst [vmem:[%s10491_s29 + $0xc0] sm:$0xff] %v6653_v52  ;;  %v6656_v27 = vadd.f32 %v7422_v51, %v10556_v22 }
 0x860   : > { %6680 = vst [vmem:[%s10491_s29 + $0xd0] sm:$0xff] %v6656_v27  ;;  %v7423_v9 = vpop.f32.mrb[220].mxu0 }
 0x861   : > { %v7424_v20 = vpop.f32.mrb[221].mxu0 }
 0x862   : > { %v7425_v48 = vadd.f32 %v7424_v20, %v7423_v9  ;;  %v7426_v28 = vpop.f32.mrb[222].mxu0 }
 0x863   : > { %v7427_v23 = vpop.f32.mrb[223].mxu0 }
 0x864   : > { %v6661_v10 = vadd.f32 %v7425_v48, %v10556_v22  ;;  %v7428_v46 = vadd.f32 %v7427_v23, %v7426_v28 }
 0x866   : > { %6681 = vst [vmem:[%s10491_s29 + $0xe0] sm:$0xff] %v6661_v10  ;;  %v6664_v7 = vadd.f32 %v7428_v46, %v10556_v22 }
 0x868   : > { %6682 = vst [vmem:[%s10491_s29 + $0xf0] sm:$0xff] %v6664_v7 }
 0x869 PF: > { %s18_s21 = sadd.s32 1, %s8523_s21  }
 0x86a   : > { %p15_p3 = scmp.ge.s32.totalorder %s18_s21, 4  }
 0x86c   :  { %17 = sbr.rel (!%p15_p3) target bundleno = 2 (0x2), region = 87 }
 0x873   :  { %6723 = vsyncpa [#allocation3], 1 }
 0x874   :  { %6725 = vsyncpa [#allocation3 + $0x1], 1 }
 0x875   :  { %6726 = vsyncpa [#allocation5], 1 }

</bundles_post_ra>
